<compile_context>
chip_gen: v5e
topology: v5e:2x2
jax: 0.10.0
libtpu: 0.0.40
codegen_flags: <defaults>
</compile_context>

<pallas_src>
import jax
import jax.numpy as jnp
from jax.experimental import pallas as pl
from jax.experimental.pallas import tpu as pltpu


def _round_up(x: int, m: int) -> int:
    return (x + m - 1) // m * m


def generator_kernel(z_ref, w1_ref, b1_ref, w2_ref, b2_ref, o_ref):
    # Hidden layer: bf16 MXU matmul with f32 accumulation, then bias + LeakyReLU in f32.
    h = jnp.dot(z_ref[...], w1_ref[...], preferred_element_type=jnp.float32)
    h = h + b1_ref[...]                       # b1 is (1, Hp): clean full-vreg broadcast add
    h = jnp.where(h > 0, h, 0.2 * h)          # LeakyReLU(negative_slope=0.2)
    # (Dropout == identity at inference.)
    # TODO(synk): training-mode dropout (stochastic masking via pltpu.prng_random_bits) not implemented.
    # Output layer: cast activations back to bf16 for the MXU, accumulate in f32.
    out = jnp.dot(h.astype(w2_ref.dtype), w2_ref[...],
                  preferred_element_type=jnp.float32)
    out = out + b2_ref[...]                   # b2 is (1, Op)
    o_ref[...] = out.astype(o_ref.dtype)      # lane-dense (TB, Op) store, Op % 128 == 0


def generator_forward(z, w1, b1, w2, b2, *, block_batch=128):
    """y = LeakyReLU(z @ w1 + b1, 0.2) @ w2 + b2  (dropout = identity).

    z: (B, K) f32; w1: (K, H); b1: (1, H) or (H,); w2: (H, O); b2: (1, O) or (O,).
    Returns (B, O) float32.
    """
    B, K = z.shape
    Kw, H = w1.shape
    Hw, O = w2.shape
    assert K == Kw and H == Hw, "weight shapes must be (in_features, out_features)"

    # Pad every matmul dim to a 128-multiple; pad batch to a tile multiple.
    Kp = _round_up(K, 128)
    Hp = _round_up(H, 128)
    Op = _round_up(O, 128)
    TB = block_batch
    Bp = _round_up(max(B, 1), TB)

    # Zero padding is exact: padded z rows / w1 cols / w2 rows / bias lanes contribute
    # nothing to the (sliced) result.
    zp = jnp.zeros((Bp, Kp), jnp.bfloat16).at[:B, :K].set(z.astype(jnp.bfloat16))
    w1p = jnp.zeros((Kp, Hp), jnp.bfloat16).at[:K, :H].set(w1.astype(jnp.bfloat16))
    b1p = jnp.zeros((1, Hp), jnp.float32).at[:, :H].set(
        b1.reshape(1, H).astype(jnp.float32))
    w2p = jnp.zeros((Hp, Op), jnp.bfloat16).at[:H, :O].set(w2.astype(jnp.bfloat16))
    b2p = jnp.zeros((1, Op), jnp.float32).at[:, :O].set(
        b2.reshape(1, O).astype(jnp.float32))

    grid = (Bp // TB,)

    # Advisory cost estimate for XLA's scheduler around the custom call.
    flops = 2 * Bp * (Kp * Hp + Hp * Op)
    bytes_accessed = (zp.size * 2 + w1p.size * 2 + w2p.size * 2
                      + b1p.size * 4 + b2p.size * 4 + Bp * Op * 4)

    out_padded = pl.pallas_call(
        generator_kernel,
        out_shape=jax.ShapeDtypeStruct((Bp, Op), jnp.float32),
        grid=grid,
        in_specs=[
            # Batch-tiled activations: double-buffered across grid steps.
            pl.BlockSpec((TB, Kp), lambda i: (i, 0)),
            # Weights / biases: constant block index -> stay resident in VMEM.
            pl.BlockSpec((Kp, Hp), lambda i: (0, 0)),
            pl.BlockSpec((1, Hp), lambda i: (0, 0)),
            pl.BlockSpec((Hp, Op), lambda i: (0, 0)),
            pl.BlockSpec((1, Op), lambda i: (0, 0)),
        ],
        out_specs=pl.BlockSpec((TB, Op), lambda i: (i, 0)),
        compiler_params=pltpu.CompilerParams(
            # Batch tiles are independent -> shard across TCs on v7x; harmless on v5e/v6e.
            dimension_semantics=("parallel",),
            # Working set (~few MiB at these sizes) fits easily; 32 MiB leaves ample
            # headroom on v7x's 64 MiB physical VMEM and raises v5e's 16 MiB default.
            vmem_limit_bytes=32 * 1024 * 1024,
        ),
        cost_estimate=pl.CostEstimate(
            flops=flops, transcendentals=0, bytes_accessed=bytes_accessed),
    )(zp, w1p, b1p, w2p, b2p)

    return out_padded[:B, :O]


def init_params(key, latent_dim, hidden_dim, output_dim):
    """Deterministic PyTorch-style uniform(-1/sqrt(fan_in), 1/sqrt(fan_in)) init."""
    k1, k2, k3, k4 = jax.random.split(key, 4)
    bound1 = 1.0 / jnp.sqrt(latent_dim)
    bound2 = 1.0 / jnp.sqrt(hidden_dim)
    # Stored as (in_features, out_features) — see layout comment above.
    w1 = jax.random.uniform(k1, (latent_dim, hidden_dim), jnp.float32, -bound1, bound1)
    b1 = jax.random.uniform(k2, (1, hidden_dim), jnp.float32, -bound1, bound1)
    w2 = jax.random.uniform(k3, (hidden_dim, output_dim), jnp.float32, -bound2, bound2)
    b2 = jax.random.uniform(k4, (1, output_dim), jnp.float32, -bound2, bound2)
    return w1, b1, w2, b2


def reference_forward_f32(z, w1, b1, w2, b2):
    h = z @ w1 + b1
    h = jnp.where(h > 0, h, 0.2 * h)
    return h @ w2 + b2


def reference_forward_bf16(z, w1, b1, w2, b2):
    """Same bf16-operand / f32-accumulate recipe as the kernel, in plain XLA."""
    h = jnp.dot(z.astype(jnp.bfloat16), w1.astype(jnp.bfloat16),
                preferred_element_type=jnp.float32) + b1
    h = jnp.where(h > 0, h, 0.2 * h)
    return jnp.dot(h.astype(jnp.bfloat16), w2.astype(jnp.bfloat16),
                   preferred_element_type=jnp.float32) + b2


if __name__ == "__main__":
    # Shapes consistent with the module defaults:
    #   Generator(latent_dim=100, hidden_dims=[768], output_dim=768)
    batch = 64
    latent_dim = 100      # padded to 128 inside the wrapper
    hidden_dim = 768
    output_dim = 768

    key = jax.random.PRNGKey(0)
    kz, kp = jax.random.split(key)
    z = jax.random.normal(kz, (batch, latent_dim), jnp.float32)
    w1, b1, w2, b2 = init_params(kp, latent_dim, hidden_dim, output_dim)

    out = generator_forward(z, w1, b1, w2, b2)
    out = jax.block_until_ready(out)

    ref_bf16 = reference_forward_bf16(z, w1, b1, w2, b2)
    ref_f32 = reference_forward_f32(z, w1, b1, w2, b2)

    assert out.shape == (batch, output_dim)
    # Tight check against a reference using the identical bf16/f32 mixed precision.
    assert jnp.allclose(out, ref_bf16, atol=1e-3, rtol=1e-3), "mismatch vs bf16 reference"
    # Loose check against the pure-f32 reference (bf16 rounding of operands).
    assert jnp.allclose(out, ref_f32, atol=3e-2, rtol=3e-2), "mismatch vs f32 reference"

    print("KERNEL_OK")
</pallas_src>

<mosaic_0001>
module attributes {stable_mosaic.version = 11 : i64} {
  func.func @generator_kernel(%arg0: i32, %arg1: memref<128x128xbf16, #tpu.memory_space<vmem>>, %arg2: memref<128x768xbf16, #tpu.memory_space<vmem>>, %arg3: memref<1x768xf32, #tpu.memory_space<vmem>>, %arg4: memref<768x768xbf16, #tpu.memory_space<vmem>>, %arg5: memref<1x768xf32, #tpu.memory_space<vmem>>, %arg6: memref<128x768xf32, #tpu.memory_space<vmem>>) attributes {dimension_semantics = [#tpu.dimension_semantics<parallel>], iteration_bounds = array<i64: 1>, scalar_prefetch = 0 : i64, scratch_operands = 0 : i64, tpu.core_type = #tpu.core_type<tc>, window_params = [{transform_indices = @transform_0, window_bounds = array<i64: 128, 128>}, {pipeline_mode = #tpu.pipeline_mode<synchronous>, transform_indices = @transform_1, window_bounds = array<i64: 128, 768>}, {pipeline_mode = #tpu.pipeline_mode<synchronous>, transform_indices = @transform_2, window_bounds = array<i64: 1, 768>}, {pipeline_mode = #tpu.pipeline_mode<synchronous>, transform_indices = @transform_3, window_bounds = array<i64: 768, 768>}, {pipeline_mode = #tpu.pipeline_mode<synchronous>, transform_indices = @transform_4, window_bounds = array<i64: 1, 768>}, {transform_indices = @transform_5, window_bounds = array<i64: 128, 768>}]} {
    %c0 = arith.constant 0 : index
    %c0_0 = arith.constant 0 : index
    %0 = vector.load %arg1[%c0, %c0_0] : memref<128x128xbf16, #tpu.memory_space<vmem>>, vector<128x128xbf16>
    %c0_1 = arith.constant 0 : index
    %c0_2 = arith.constant 0 : index
    %1 = vector.load %arg2[%c0_1, %c0_2] : memref<128x768xbf16, #tpu.memory_space<vmem>>, vector<128x768xbf16>
    %cst = arith.constant dense<0.000000e+00> : vector<128x768xf32>
    %2 = tpu.matmul %0, %1, %cst {dimension_numbers = #tpu.dot_dimension_numbers<[1], [0], [0], [1], [0, 0, 1, 1], [], []>} : vector<128x128xbf16>, vector<128x768xbf16>, vector<128x768xf32> -> vector<128x768xf32>
    %c0_3 = arith.constant 0 : index
    %c0_4 = arith.constant 0 : index
    %3 = vector.load %arg3[%c0_3, %c0_4] : memref<1x768xf32, #tpu.memory_space<vmem>>, vector<1x768xf32>
    %4 = vector.broadcast %3 : vector<1x768xf32> to vector<128x768xf32>
    %5 = arith.addf %2, %4 : vector<128x768xf32>
    %cst_5 = arith.constant 0.000000e+00 : f32
    %6 = vector.broadcast %cst_5 : f32 to vector<128x768xf32>
    %7 = arith.cmpf ogt, %5, %6 : vector<128x768xf32>
    %cst_6 = arith.constant 2.000000e-01 : f32
    %8 = vector.broadcast %cst_6 : f32 to vector<128x768xf32>
    %9 = arith.mulf %8, %5 : vector<128x768xf32>
    %10 = arith.select %7, %5, %9 : vector<128x768xi1>, vector<128x768xf32>
    %11 = arith.truncf %10 : vector<128x768xf32> to vector<128x768xbf16>
    %c0_7 = arith.constant 0 : index
    %c0_8 = arith.constant 0 : index
    %12 = vector.load %arg4[%c0_7, %c0_8] : memref<768x768xbf16, #tpu.memory_space<vmem>>, vector<768x768xbf16>
    %cst_9 = arith.constant dense<0.000000e+00> : vector<128x768xf32>
    %13 = tpu.matmul %11, %12, %cst_9 {dimension_numbers = #tpu.dot_dimension_numbers<[1], [0], [0], [1], [0, 0, 1, 1], [], []>} : vector<128x768xbf16>, vector<768x768xbf16>, vector<128x768xf32> -> vector<128x768xf32>
    %c0_10 = arith.constant 0 : index
    %c0_11 = arith.constant 0 : index
    %14 = vector.load %arg5[%c0_10, %c0_11] : memref<1x768xf32, #tpu.memory_space<vmem>>, vector<1x768xf32>
    %15 = vector.broadcast %14 : vector<1x768xf32> to vector<128x768xf32>
    %16 = arith.addf %13, %15 : vector<128x768xf32>
    %c0_12 = arith.constant 0 : index
    %c0_13 = arith.constant 0 : index
    %17 = vector.load %arg6[%c0_12, %c0_13] : memref<128x768xf32, #tpu.memory_space<vmem>>, vector<128x768xf32>
    tpu.vector_store %arg6[%c0_12, %c0_13], %16 {strides = array<i32>} : memref<128x768xf32, #tpu.memory_space<vmem>>, vector<128x768xf32>,
    return
  }
  func.func @transform_0(%arg0: i32) -> (i32, i32) {
    %c0_i32 = arith.constant 0 : i32
    %c0_i32_0 = arith.constant 0 : i32
    return %arg0, %c0_i32 : i32, i32
  }
  func.func @transform_1(%arg0: i32) -> (i32, i32) {
    %c0_i32 = arith.constant 0 : i32
    %c0_i32_0 = arith.constant 0 : i32
    %c0_i32_1 = arith.constant 0 : i32
    return %c0_i32, %c0_i32_0 : i32, i32
  }
  func.func @transform_2(%arg0: i32) -> (i32, i32) {
    %c0_i32 = arith.constant 0 : i32
    %c0_i32_0 = arith.constant 0 : i32
    %c0_i32_1 = arith.constant 0 : i32
    return %c0_i32, %c0_i32_0 : i32, i32
  }
  func.func @transform_3(%arg0: i32) -> (i32, i32) {
    %c0_i32 = arith.constant 0 : i32
    %c0_i32_0 = arith.constant 0 : i32
    %c0_i32_1 = arith.constant 0 : i32
    return %c0_i32, %c0_i32_0 : i32, i32
  }
  func.func @transform_4(%arg0: i32) -> (i32, i32) {
    %c0_i32 = arith.constant 0 : i32
    %c0_i32_0 = arith.constant 0 : i32
    %c0_i32_1 = arith.constant 0 : i32
    return %c0_i32, %c0_i32_0 : i32, i32
  }
  func.func @transform_5(%arg0: i32) -> (i32, i32) {
    %c0_i32 = arith.constant 0 : i32
    %c0_i32_0 = arith.constant 0 : i32
    return %arg0, %c0_i32 : i32, i32
  }
}

</mosaic_0001>

<bundles_post_ra>
// kernel: tpu_custom_call.1
= control target key start
LH: loop header
LB: loop body
LE: loop exit
PB: predicated region body
PF: predicated region fallthrough
CT: control target
= control target key end

     0   :  { %10 = vsyncpa [#allocation3], 0  ;;  %s7803_s0 = inlined_call_operand.hbm [shape: bf16[128,128], index: 0, kind: input, shape index: {}]   ;;  %s7804_s1 = inlined_call_operand.hbm [shape: bf16[128,768], index: 1, kind: input, shape index: {}]   ;;  %s7805_s2 = inlined_call_operand.hbm [shape: f32[1,768], index: 2, kind: input, shape index: {}]   ;;  %s7806_s3 = inlined_call_operand.hbm [shape: bf16[768,768], index: 3, kind: input, shape index: {}]   ;;  %s7807_s4 = inlined_call_operand.hbm [shape: f32[1,768], index: 4, kind: input, shape index: {}]   ;;  %s7808_s5 = inlined_call_operand.hbm [shape: f32[128,768], index: 5, kind: output, shape index: {}]  }
   0x1   :  { %11 = vsyncpa [#allocation6], 0 }
   0x2   :  { %12 = vsyncpa [#allocation9], 0  ;;  %s31_s20 = sshll.u32 %s7804_s1, 4  ;;  %s32_s20 = int_to_ptr.hbm [resolvable:$true] %s31_s20 }
   0x3   :  { %13 = vsyncpa [#allocation4], 0  ;;  %s6617_s21 = smov [#allocation5]   ;;  %s55_s25 = sshll.u32 %s7806_s3, 4  ;;  %s56_s25 = int_to_ptr.hbm [resolvable:$true] %s55_s25 }
   0x4   :  { %s33_s22 = sshll.u32 %s6617_s21, 4  ;;  %s6618_s26 = smov 384   ;;  %s34_s22 = int_to_ptr.vmem [resolvable:$true] %s33_s22 }
   0x5   :  { %s6619_s27 = smov 24   ;;  %s6620_s28 = smov [#allocation8]  }
   0x6   :  { %39 = dma.hbm_to_vmem [thread:$0]  %s32_s20, 6144, %s34_s22, [#allocation6], %s6618_s26, %s6618_s26, %s6619_s27  }
   0x7   :  { %s57_s29 = sshll.u32 %s6620_s28, 4  ;;  %s18_s7 = sshll.u32 %s7803_s0, 4  ;;  %s58_s29 = int_to_ptr.vmem [resolvable:$true] %s57_s29  ;;  %s19_s7 = int_to_ptr.hbm [resolvable:$true] %s18_s7 }
   0x8   :  { %63 = dma.hbm_to_vmem [thread:$0]  %s56_s25, 36864, %s58_s29, [#allocation9], %s6618_s26, %s6618_s26, %s6619_s27  }
   0x9   :  { %s6621_s1 = smov [#allocation2]   ;;  %s45_s3 = sshll.u32 %s7805_s2, 4  ;;  %s46_s3 = int_to_ptr.hbm [resolvable:$true] %s45_s3 }
   0xa   :  { %s20_s8 = sshll.u32 %s6621_s1, 4  ;;  %s6622_s11 = smov 64   ;;  %s21_s8 = int_to_ptr.vmem [resolvable:$true] %s20_s8 }
   0xb   :  { %s6623_s12 = smov 4   ;;  %s6624_s13 = smov [#allocation7]  }
   0xc   :  { %26 = dma.hbm_to_vmem [thread:$0]  %s19_s7, 1024, %s21_s8, [#allocation3], %s6622_s11, %s6622_s11, %s6623_s12  }
   0xd   :  { %s47_s14 = sshll.u32 %s6624_s13, 4  ;;  %s69_s0 = sshll.u32 %s7807_s4, 4  ;;  %s48_s14 = int_to_ptr.vmem [resolvable:$true] %s47_s14  ;;  %s70_s0 = int_to_ptr.hbm [resolvable:$true] %s69_s0 }
   0xe   :  { %50 = dma.hbm_to_vmem [thread:$0]  %s46_s3, 96, %s48_s14, [#allocation6]  }
   0xf   :  { %s6625_s17 = smov [#allocation10]  }
  0x10   :  { %s71_s18 = sshll.u32 %s6625_s17, 4  ;;  %s72_s18 = int_to_ptr.vmem [resolvable:$true] %s71_s18 }
  0x11   :  { %74 = dma.hbm_to_vmem [thread:$0]  %s70_s0, 96, %s72_s18, [#allocation9]  }
  0x12   :  { %6609 = dma.done.wait [#allocation3], 1024  }
  0x13   :  { %6610 = vsyncadd [#allocation3], 4294966272 }
  0x14   :  { %6611 = dma.done.wait [#allocation6], 6240  }
  0x15   :  { %6612 = vsyncadd [#allocation6], 4294961056 }
  0x16   :  { %6613 = dma.done.wait [#allocation9], 36960  }
  0x17   :  { %6614 = vsyncadd [#allocation9], 4294930336  ;;  %v4916_v0 = vld [vmem:[#allocation5 + $0x150] sm:$0xf]  ;;  %v6143_v1 = vld [vmem:[#allocation5 + $0x164] sm:$0xf0] }
  0x18   :  { %v6140_v2 = vld [vmem:[#allocation5 + $0x154] sm:$0xf]  ;;  %v4917_v3 = vor.u32 %v6143_v1, %v4916_v0  ;;  %v4918_v4 = vld [vmem:[#allocation5 + $0x168] sm:$0xf0]  ;;  %v4892_v5 = vld [vmem:[#allocation5 + $0x120] sm:$0xf] }
  0x19   :  { %v6137_v6 = vld [vmem:[#allocation5 + $0x134] sm:$0xf0]  ;;  %v4921_v7 = vor.u32 %v6140_v2, %v4918_v4  ;;  %v6134_v8 = vld [vmem:[#allocation5 + $0x124] sm:$0xf]  ;;  %v4894_v9 = vld [vmem:[#allocation5 + $0x138] sm:$0xf0] }
  0x1a   :  { %6434 = vmatpush.bf16.msra.mxu2 %v4917_v3  ;;  %v4893_v10 = vor.u32 %v6137_v6, %v4892_v5  ;;  %461 = vmatpush.bf16.msra.mxu0 %v4917_v3  ;;  %v4897_v11 = vor.u32 %v6134_v8, %v4894_v9  ;;  %v4868_v12 = vld [vmem:[#allocation5 + $0xf0] sm:$0xf]  ;;  %v6131_v13 = vld [vmem:[#allocation5 + $0x104] sm:$0xf0]  ;;  %v6128_v14 = vld [vmem:[#allocation5 + $0xf4] sm:$0xf] }
  0x1b   :  { %6442 = vmatpush.bf16.msra.mxu3 %v4921_v7  ;;  %510 = vmatpush.bf16.msra.mxu1 %v4921_v7  ;;  %v4870_v15 = vld [vmem:[#allocation5 + $0x108] sm:$0xf0]  ;;  %v4869_v16 = vor.u32 %v6131_v13, %v4868_v12  ;;  %v4844_v18 = vld [vmem:[#allocation5 + $0xc0] sm:$0xf]  ;;  %v6125_v19 = vld [vmem:[#allocation5 + $0xd4] sm:$0xf0] }
  0x1c   :  { %v4873_v17 = vor.u32 %v6128_v14, %v4870_v15  ;;  %v6122_v20 = vld [vmem:[#allocation5 + $0xc4] sm:$0xf]  ;;  %v4846_v21 = vld [vmem:[#allocation5 + $0xd8] sm:$0xf0]  ;;  %v4845_v22 = vor.u32 %v6125_v19, %v4844_v18  ;;  %v4820_v24 = vld [vmem:[#allocation5 + $0x90] sm:$0xf] }
  0x1d   :  { %v4849_v23 = vor.u32 %v6122_v20, %v4846_v21  ;;  %v6119_v25 = vld [vmem:[#allocation5 + $0xa4] sm:$0xf0]  ;;  %v6116_v26 = vld [vmem:[#allocation5 + $0x94] sm:$0xf]  ;;  %v4822_v27 = vld [vmem:[#allocation5 + $0xa8] sm:$0xf0] }
  0x1e   :  { %6435 = vmatpush.bf16.msra.mxu2 %v4893_v10  ;;  %462 = vmatpush.bf16.msra.mxu0 %v4893_v10  ;;  %v4821_v28 = vor.u32 %v6119_v25, %v4820_v24  ;;  %v4825_v29 = vor.u32 %v6116_v26, %v4822_v27  ;;  %v4796_v30 = vld [vmem:[#allocation5 + $0x60] sm:$0xf]  ;;  %v6113_v31 = vld [vmem:[#allocation5 + $0x74] sm:$0xf0]  ;;  %v6110_v32 = vld [vmem:[#allocation5 + $0x64] sm:$0xf] }
  0x1f   :  { %6443 = vmatpush.bf16.msra.mxu3 %v4897_v11  ;;  %511 = vmatpush.bf16.msra.mxu1 %v4897_v11  ;;  %v4798_v33 = vld [vmem:[#allocation5 + $0x78] sm:$0xf0]  ;;  %v4797_v34 = vor.u32 %v6113_v31, %v4796_v30  ;;  %v4772_v36 = vld [vmem:[#allocation5 + $0x30] sm:$0xf]  ;;  %v6107_v37 = vld [vmem:[#allocation5 + $0x44] sm:$0xf0] }
  0x20   :  { %v4801_v35 = vor.u32 %v6110_v32, %v4798_v33  ;;  %v6104_v38 = vld [vmem:[#allocation5 + $0x34] sm:$0xf]  ;;  %v4774_v39 = vld [vmem:[#allocation5 + $0x48] sm:$0xf0]  ;;  %v4773_v40 = vor.u32 %v6107_v37, %v4772_v36  ;;  %v4748_v42 = vld [vmem:[#allocation5] sm:$0xf] }
  0x21   :  { %v4777_v41 = vor.u32 %v6104_v38, %v4774_v39  ;;  %v6101_v43 = vld [vmem:[#allocation5 + $0x14] sm:$0xf0]  ;;  %v6098_v44 = vld [vmem:[#allocation5 + $0x4] sm:$0xf]  ;;  %v4750_v45 = vld [vmem:[#allocation5 + $0x18] sm:$0xf0] }
  0x22   :  { %6436 = vmatpush.bf16.msra.mxu2 %v4869_v16  ;;  %463 = vmatpush.bf16.msra.mxu0 %v4869_v16  ;;  %v4924_v46 = vld [vmem:[#allocation5 + $0x158] sm:$0xf]  ;;  %v6144_v47 = vld [vmem:[#allocation5 + $0x16c] sm:$0xf0]  ;;  %v6141_v48 = vld [vmem:[#allocation5 + $0x15c] sm:$0xf]  ;;  %v4749_v50 = vor.u32 %v6101_v43, %v4748_v42  ;;  %v4753_v51 = vor.u32 %v6098_v44, %v4750_v45 }
  0x23   :  { %6444 = vmatpush.bf16.msra.mxu3 %v4873_v17  ;;  %512 = vmatpush.bf16.msra.mxu1 %v4873_v17  ;;  %v4926_v49 = vld [vmem:[#allocation5 + $0x170] sm:$0xf0]  ;;  %v6674_v52 = vld [vmem:[#allocation2 + $0x20] sm:$0xff]  ;;  %v4925_v53 = vor.u32 %v6144_v47, %v4924_v46  ;;  %v4900_v54 = vld [vmem:[#allocation5 + $0x128] sm:$0xf]  ;;  %s6626_s2 = smov [#allocation11]  }
  0x24   :  { %v4932_v55 = vld [vmem:[#allocation5 + $0x160] sm:$0xf]  ;;  %v6145_v56 = vld [vmem:[#allocation5 + $0x174] sm:$0xf0]  ;;  %v4929_v57 = vor.u32 %v6141_v48, %v4926_v49  ;;  %v6135_v60 = vld [vmem:[#allocation5 + $0x12c] sm:$0xf] }
  0x25   :  { %v6138_v58 = vld [vmem:[#allocation5 + $0x13c] sm:$0xf0]  ;;  %v4902_v61 = vld [vmem:[#allocation5 + $0x140] sm:$0xf0]  ;;  %v4934_v63 = vld [vmem:[#allocation5 + $0x178] sm:$0xf0]  ;;  %v4933_v0 = vor.u32 %v6145_v56, %v4932_v55 }
  0x26   :  { %6437 = vmatpush.bf16.msra.mxu2 %v4845_v22  ;;  %464 = vmatpush.bf16.msra.mxu0 %v4845_v22  ;;  %v6676_v59 = vld [vmem:[#allocation2] sm:$0xff]  ;;  %v4901_v1 = vor.u32 %v6138_v58, %v4900_v54  ;;  %v4908_v2 = vld [vmem:[#allocation5 + $0x130] sm:$0xf]  ;;  %v6139_v3 = vld [vmem:[#allocation5 + $0x144] sm:$0xf0]  ;;  %v4905_v4 = vor.u32 %v6135_v60, %v4902_v61  ;;  %s4697_s4 = sshll.u32 %s6626_s2, 4  ;;  %s4698_s4 = int_to_ptr.vmem [resolvable:$true] %s4697_s4 }
  0x27   :  { %6445 = vmatpush.bf16.msra.mxu3 %v4849_v23  ;;  %513 = vmatpush.bf16.msra.mxu1 %v4849_v23  ;;  %v6142_v62 = vld [vmem:[#allocation5 + $0x164] sm:$0xf]  ;;  %v4876_v5 = vld [vmem:[#allocation5 + $0xf8] sm:$0xf]  ;;  %v6132_v6 = vld [vmem:[#allocation5 + $0x10c] sm:$0xf0]  ;;  %v4909_v12 = vor.u32 %v6139_v3, %v4908_v2 }
  0x28   :  { %v6129_v7 = vld [vmem:[#allocation5 + $0xfc] sm:$0xf]  ;;  %v4937_v8 = vor.u32 %v6142_v62, %v4934_v63  ;;  %v4878_v9 = vld [vmem:[#allocation5 + $0x110] sm:$0xf0]  ;;  %v4910_v11 = vld [vmem:[#allocation5 + $0x148] sm:$0xf0]  ;;  %v4877_v13 = vor.u32 %v6132_v6, %v4876_v5 }
  0x29   :  { %v6136_v10 = vld [vmem:[#allocation5 + $0x134] sm:$0xf]  ;;  %v4884_v14 = vld [vmem:[#allocation5 + $0x100] sm:$0xf]  ;;  %v6133_v15 = vld [vmem:[#allocation5 + $0x114] sm:$0xf0]  ;;  %v4881_v16 = vor.u32 %v6129_v7, %v4878_v9 }
  0x2a   :  { %6438 = vmatpush.bf16.msra.mxu2 %v4821_v28  ;;  %465 = vmatpush.bf16.msra.mxu0 %v4821_v28  ;;  %v4852_v17 = vld [vmem:[#allocation5 + $0xc8] sm:$0xf]  ;;  %v6126_v18 = vld [vmem:[#allocation5 + $0xdc] sm:$0xf0]  ;;  %v6123_v19 = vld [vmem:[#allocation5 + $0xcc] sm:$0xf]  ;;  %v4913_v20 = vor.u32 %v6136_v10, %v4910_v11  ;;  %v4885_v24 = vor.u32 %v6133_v15, %v4884_v14 }
  0x2b   :  { %6446 = vmatpush.bf16.msra.mxu3 %v4825_v29  ;;  %514 = vmatpush.bf16.msra.mxu1 %v4825_v29  ;;  %v4854_v21 = vld [vmem:[#allocation5 + $0xe0] sm:$0xf0]  ;;  %v4886_v23 = vld [vmem:[#allocation5 + $0x118] sm:$0xf0]  ;;  %v4853_v25 = vor.u32 %v6126_v18, %v4852_v17  ;;  %v4860_v26 = vld [vmem:[#allocation5 + $0xd0] sm:$0xf] }
  0x2c   :  { %v6130_v22 = vld [vmem:[#allocation5 + $0x104] sm:$0xf]  ;;  %v6127_v27 = vld [vmem:[#allocation5 + $0xe4] sm:$0xf0]  ;;  %v4857_v28 = vor.u32 %v6123_v19, %v4854_v21  ;;  %v4828_v29 = vld [vmem:[#allocation5 + $0x98] sm:$0xf] }
  0x2d   :  { %v6120_v30 = vld [vmem:[#allocation5 + $0xac] sm:$0xf0]  ;;  %v6117_v31 = vld [vmem:[#allocation5 + $0x9c] sm:$0xf]  ;;  %v4889_v32 = vor.u32 %v6130_v22, %v4886_v23  ;;  %v4830_v33 = vld [vmem:[#allocation5 + $0xb0] sm:$0xf0]  ;;  %v4861_v36 = vor.u32 %v6127_v27, %v4860_v26 }
  0x2e   :  { %6439 = vmatpush.bf16.msra.mxu2 %v4797_v34  ;;  %466 = vmatpush.bf16.msra.mxu0 %v4797_v34  ;;  %v6124_v34 = vld [vmem:[#allocation5 + $0xd4] sm:$0xf]  ;;  %v4829_v37 = vor.u32 %v6120_v30, %v4828_v29  ;;  %v6682_v38 = vld [vmem:[#allocation2 + $0x28] sm:$0xff]  ;;  %v4833_v39 = vor.u32 %v6117_v31, %v4830_v33  ;;  %v4806_v45 = vld [vmem:[#allocation5 + $0x80] sm:$0xf0]  ;;  %s4699_s21 = sshll.u32 %s7808_s5, 4  ;;  %s4700_s21 = int_to_ptr.hbm [resolvable:$true] %s4699_s21 }
  0x2f   :  { %6447 = vmatpush.bf16.msra.mxu3 %v4801_v35  ;;  %515 = vmatpush.bf16.msra.mxu1 %v4801_v35  ;;  %v4862_v35 = vld [vmem:[#allocation5 + $0xe8] sm:$0xf0]  ;;  %v4780_v48 = vld [vmem:[#allocation5 + $0x38] sm:$0xf]  ;;  %v6108_v49 = vld [vmem:[#allocation5 + $0x4c] sm:$0xf0] }
  0x30   :  { %v4865_v42 = vor.u32 %v6124_v34, %v4862_v35  ;;  %v6684_v43 = vld [vmem:[#allocation2 + $0x8] sm:$0xff]  ;;  %v4836_v54 = vld [vmem:[#allocation5 + $0xa0] sm:$0xf]  ;;  %v6121_v55 = vld [vmem:[#allocation5 + $0xb4] sm:$0xf0]  ;;  %s6627_s22 = smov 768  }
  0x31   :  { %v6111_v44 = vld [vmem:[#allocation5 + $0x6c] sm:$0xf]  ;;  %v6118_v58 = vld [vmem:[#allocation5 + $0xa4] sm:$0xf]  ;;  %v4838_v60 = vld [vmem:[#allocation5 + $0xb8] sm:$0xf0] }
  0x32   :  { %6440 = vmatpush.bf16.msra.mxu2 %v4773_v40  ;;  %467 = vmatpush.bf16.msra.mxu0 %v4773_v40  ;;  %v4804_v40 = vld [vmem:[#allocation5 + $0x68] sm:$0xf]  ;;  %v4809_v47 = vor.u32 %v6111_v44, %v4806_v45  ;;  %v4841_v62 = vor.u32 %v6118_v58, %v4838_v60  ;;  %v6102_v63 = vld [vmem:[#allocation5 + $0x1c] sm:$0xf0]  ;;  %v4812_v2 = vld [vmem:[#allocation5 + $0x70] sm:$0xf] }
  0x33   :  { %6448 = vmatpush.bf16.msra.mxu3 %v4777_v41  ;;  %516 = vmatpush.bf16.msra.mxu1 %v4777_v41  ;;  %v6114_v41 = vld [vmem:[#allocation5 + $0x7c] sm:$0xf0]  ;;  %v4756_v61 = vld [vmem:[#allocation5 + $0x8] sm:$0xf]  ;;  %v6112_v6 = vld [vmem:[#allocation5 + $0x74] sm:$0xf] }
  0x34   :  { %v4805_v46 = vor.u32 %v6114_v41, %v4804_v40  ;;  %v6115_v3 = vld [vmem:[#allocation5 + $0x84] sm:$0xf0]  ;;  %v4814_v7 = vld [vmem:[#allocation5 + $0x88] sm:$0xf0]  ;;  %v6690_v10 = vld [vmem:[#allocation2 + $0x30] sm:$0xff]  ;;  %s6628_s23 = smov 48  }
  0x35   :  { %v4813_v5 = vor.u32 %v6115_v3, %v4812_v2  ;;  %v4817_v9 = vor.u32 %v6112_v6, %v4814_v7  ;;  %v6692_v11 = vld [vmem:[#allocation2 + $0x10] sm:$0xff]  ;;  %v6106_v15 = vld [vmem:[#allocation5 + $0x44] sm:$0xf]  ;;  %v6103_v19 = vld [vmem:[#allocation5 + $0x24] sm:$0xf0] }
  0x36   :  { %6441 = vmatpush.bf16.msra.mxu2 %v4749_v50  ;;  %468 = vmatpush.bf16.msra.mxu0 %v4749_v50  ;;  %v6105_v50 = vld [vmem:[#allocation5 + $0x3c] sm:$0xf]  ;;  %v4764_v17 = vld [vmem:[#allocation5 + $0x10] sm:$0xf]  ;;  %v4766_v21 = vld [vmem:[#allocation5 + $0x28] sm:$0xf0] }
  0x37   :  { %6449 = vmatpush.bf16.msra.mxu3 %v4753_v51  ;;  %517 = vmatpush.bf16.msra.mxu1 %v4753_v51  ;;  %v4781_v51 = vor.u32 %v6108_v49, %v4780_v48  ;;  %v4765_v22 = vor.u32 %v6103_v19, %v4764_v17  ;;  %v5108_v23 = vld [vmem:[#allocation8 + $0x150] sm:$0xf]  ;;  %v6287_v33 = vld [vmem:[#allocation8 + $0x464] sm:$0xf0]  ;;  %v6233_v44 = vld [vmem:[#allocation8 + $0x2b4] sm:$0xf0] }
  0x38   :  { %v6698_v30 = vld [vmem:[#allocation2 + $0x38] sm:$0xff]  ;;  %v5660_v48 = vld [vmem:[#allocation8 + $0x5a0] sm:$0xf]  ;;  %v6275_v60 = vld [vmem:[#allocation8 + $0x404] sm:$0xf0] }
  0x39   :  { %489 = vmatmul.bf16.vlgmr.msra.gmra.mxu2 %v6674_v52  ;;  %469 = vmatmul.bf16.vlgmr.msra.gmra.mxu0 %v6676_v59  ;;  %v6700_v31 = vld [vmem:[#allocation2 + $0x18] sm:$0xff]  ;;  %v6215_v17 = vld [vmem:[#allocation8 + $0x224] sm:$0xf0] }
  0x3a   :  { %559 = vmatpush.bf16.msrb.mxu2 %v4925_v53  ;;  %538 = vmatmul.bf16.vlgmr.msra.gmra.mxu3 %v6674_v52  ;;  %v4782_v53 = vld [vmem:[#allocation5 + $0x50] sm:$0xf0]  ;;  %v6269_v7 = vld [vmem:[#allocation8 + $0x3d4] sm:$0xf0] }
  0x3b   :  { %608 = vmatpush.bf16.msrb.mxu3 %v4929_v57  ;;  %657 = vmatpush.bf16.msrb.mxu0 %v4933_v0  ;;  %v4785_v56 = vor.u32 %v6105_v50, %v4782_v53  ;;  %v4837_v57 = vor.u32 %v6121_v55, %v4836_v54  ;;  %v6099_v0 = vld [vmem:[#allocation5 + $0xc] sm:$0xf]  ;;  %v5684_v34 = vld [vmem:[#allocation8 + $0x5d0] sm:$0xf]  ;;  %v6329_v50 = vld [vmem:[#allocation8 + $0x5b4] sm:$0xf0] }
  0x3c   :  { %518 = vmatmul.bf16.vlgmr.msra.gmra.mxu1 %v6676_v59  ;;  %v6179_v53 = vld [vmem:[#allocation8 + $0x104] sm:$0xf0]  ;;  %v5661_v54 = vor.u32 %v6329_v50, %v5660_v48  ;;  %v5396_v19 = vld [vmem:[#allocation8 + $0x390] sm:$0xf] }
  0x3d   :  { %706 = vmatpush.bf16.msrb.mxu1 %v4937_v8 }
  0x3e   :  { %560 = vmatpush.bf16.msrb.mxu2 %v4901_v1  ;;  %v4758_v1 = vld [vmem:[#allocation5 + $0x20] sm:$0xf0] }
  0x3f   :  { %609 = vmatpush.bf16.msrb.mxu3 %v4905_v4  ;;  %658 = vmatpush.bf16.msrb.mxu0 %v4909_v12  ;;  %v4757_v4 = vor.u32 %v6102_v63, %v4756_v61  ;;  %v4761_v8 = vor.u32 %v6099_v0, %v4758_v1  ;;  %v4788_v12 = vld [vmem:[#allocation5 + $0x40] sm:$0xf]  ;;  %v5636_v61 = vld [vmem:[#allocation8 + $0x570] sm:$0xf]  ;;  %v6323_v63 = vld [vmem:[#allocation8 + $0x584] sm:$0xf0] }
  0x40   :  { %v5036_v0 = vld [vmem:[#allocation8 + $0xc0] sm:$0xf]  ;;  %v6173_v1 = vld [vmem:[#allocation8 + $0xd4] sm:$0xf0]  ;;  %v5637_v2 = vor.u32 %v6323_v63, %v5636_v61 }
  0x41   :  { %707 = vmatpush.bf16.msrb.mxu1 %v4913_v20  ;;  %v6100_v20 = vld [vmem:[#allocation5 + $0x14] sm:$0xf]  ;;  %v5037_v3 = vor.u32 %v6173_v1, %v5036_v0 }
  0x42   :  { %561 = vmatpush.bf16.msrb.mxu2 %v4877_v13  ;;  %v6109_v13 = vld [vmem:[#allocation5 + $0x54] sm:$0xf0]  ;;  %v4769_v26 = vor.u32 %v6100_v20, %v4766_v21  ;;  %v6263_v20 = vld [vmem:[#allocation8 + $0x3a4] sm:$0xf0] }
  0x43   :  { %610 = vmatpush.bf16.msrb.mxu3 %v4881_v16  ;;  %659 = vmatpush.bf16.msrb.mxu0 %v4885_v24  ;;  %v4789_v14 = vor.u32 %v6109_v13, %v4788_v12  ;;  %v4790_v16 = vld [vmem:[#allocation5 + $0x58] sm:$0xf0]  ;;  %v6191_v24 = vld [vmem:[#allocation8 + $0x164] sm:$0xf0]  ;;  %v5012_v13 = vld [vmem:[#allocation8 + $0x90] sm:$0xf] }
  0x44   :  { %v4793_v18 = vor.u32 %v6106_v15, %v4790_v16  ;;  %v5109_v27 = vor.u32 %v6191_v24, %v5108_v23  ;;  %v6317_v12 = vld [vmem:[#allocation8 + $0x554] sm:$0xf0]  ;;  %v5588_v21 = vld [vmem:[#allocation8 + $0x510] sm:$0xf]  ;;  %v6311_v23 = vld [vmem:[#allocation8 + $0x524] sm:$0xf0] }
  0x45   :  { %708 = vmatpush.bf16.msrb.mxu1 %v4889_v32  ;;  %v5492_v32 = vld [vmem:[#allocation8 + $0x450] sm:$0xf]  ;;  %v4988_v24 = vld [vmem:[#allocation8 + $0x60] sm:$0xf] }
  0x46   :  { %562 = vmatpush.bf16.msrb.mxu2 %v4853_v25  ;;  %v5300_v25 = vld [vmem:[#allocation8 + $0x2d0] sm:$0xf]  ;;  %v5493_v35 = vor.u32 %v6287_v33, %v5492_v32 }
  0x47   :  { %611 = vmatpush.bf16.msrb.mxu3 %v4857_v28  ;;  %660 = vmatpush.bf16.msrb.mxu0 %v4861_v36  ;;  %v6239_v28 = vld [vmem:[#allocation8 + $0x2e4] sm:$0xf0] }
  0x48   :  { %v5301_v29 = vor.u32 %v6239_v28, %v5300_v25  ;;  %v6335_v36 = vld [vmem:[#allocation8 + $0x5e4] sm:$0xf0]  ;;  %v6161_v25 = vld [vmem:[#allocation8 + $0x74] sm:$0xf0] }
  0x49   :  { %709 = vmatpush.bf16.msrb.mxu1 %v4865_v42  ;;  %494 = vmatmul.bf16.gmra.mxu2 %v6682_v38  ;;  %v5685_v40 = vor.u32 %v6335_v36, %v5684_v34  ;;  %v5276_v42 = vld [vmem:[#allocation8 + $0x2a0] sm:$0xf]  ;;  %v6722_v28 = vld [vmem:[#allocation7] sm:$0x3f] }
  0x4a   :  { %563 = vmatpush.bf16.msrb.mxu2 %v4829_v37  ;;  %474 = vmatmul.bf16.gmra.mxu0 %v6684_v43  ;;  %v5084_v37 = vld [vmem:[#allocation8 + $0x120] sm:$0xf]  ;;  %v5277_v45 = vor.u32 %v6233_v44, %v5276_v42  ;;  %v6730_v32 = vperm.slane %v6722_v28, 0  ;;  %v6735_v33 = vperm.slane %v6722_v28, 1  ;;  %v6209_v36 = vld [vmem:[#allocation8 + $0x1f4] sm:$0xf0] }
  0x4b   :  { %612 = vmatpush.bf16.msrb.mxu3 %v4833_v39  ;;  %661 = vmatpush.bf16.msrb.mxu0 %v4837_v57  ;;  %v6185_v39 = vld [vmem:[#allocation8 + $0x134] sm:$0xf0]  ;;  %v6227_v57 = vld [vmem:[#allocation8 + $0x284] sm:$0xf0]  ;;  %v5180_v34 = vld [vmem:[#allocation8 + $0x1e0] sm:$0xf] }
  0x4c   :  { %543 = vmatmul.bf16.gmra.mxu3 %v6682_v38  ;;  %523 = vmatmul.bf16.gmra.mxu1 %v6684_v43  ;;  %v5085_v41 = vor.u32 %v6185_v39, %v5084_v37 }
  0x4d   :  { %710 = vmatpush.bf16.msrb.mxu1 %v4841_v62 }
  0x4e   :  { %564 = vmatpush.bf16.msrb.mxu2 %v4805_v46  ;;  %v5468_v46 = vld [vmem:[#allocation8 + $0x420] sm:$0xf] }
  0x4f   :  { %613 = vmatpush.bf16.msrb.mxu3 %v4809_v47  ;;  %662 = vmatpush.bf16.msrb.mxu0 %v4813_v5  ;;  %v6281_v47 = vld [vmem:[#allocation8 + $0x434] sm:$0xf0] }
  0x50   :  { %v5469_v49 = vor.u32 %v6281_v47, %v5468_v46  ;;  %v6221_v5 = vld [vmem:[#allocation8 + $0x254] sm:$0xf0]  ;;  %v5564_v47 = vld [vmem:[#allocation8 + $0x4e0] sm:$0xf] }
  0x51   :  { %711 = vmatpush.bf16.msrb.mxu1 %v4817_v9  ;;  %v6257_v46 = vld [vmem:[#allocation8 + $0x374] sm:$0xf0] }
  0x52   :  { %565 = vmatpush.bf16.msrb.mxu2 %v4781_v51  ;;  %v5060_v51 = vld [vmem:[#allocation8 + $0xf0] sm:$0xf] }
  0x53   :  { %614 = vmatpush.bf16.msrb.mxu3 %v4785_v56  ;;  %663 = vmatpush.bf16.msrb.mxu0 %v4789_v14  ;;  %v5061_v55 = vor.u32 %v6179_v53, %v5060_v51  ;;  %v5252_v56 = vld [vmem:[#allocation8 + $0x270] sm:$0xf]  ;;  %v6167_v14 = vld [vmem:[#allocation8 + $0xa4] sm:$0xf0] }
  0x54   :  { %v5253_v58 = vor.u32 %v6227_v57, %v5252_v56  ;;  %v5013_v16 = vor.u32 %v6167_v14, %v5012_v13  ;;  %v4964_v51 = vld [vmem:[#allocation8 + $0x30] sm:$0xf]  ;;  %v6155_v53 = vld [vmem:[#allocation8 + $0x44] sm:$0xf0] }
  0x55   :  { %712 = vmatpush.bf16.msrb.mxu1 %v4793_v18  ;;  %v4965_v57 = vor.u32 %v6155_v53, %v4964_v51 }
  0x56   :  { %566 = vmatpush.bf16.msrb.mxu2 %v4757_v4  ;;  %v5228_v4 = vld [vmem:[#allocation8 + $0x240] sm:$0xf] }
  0x57   :  { %615 = vmatpush.bf16.msrb.mxu3 %v4761_v8  ;;  %664 = vmatpush.bf16.msrb.mxu0 %v4765_v22  ;;  %v5229_v6 = vor.u32 %v6221_v5, %v5228_v4  ;;  %v5612_v8 = vld [vmem:[#allocation8 + $0x540] sm:$0xf]  ;;  %v5397_v22 = vor.u32 %v6263_v20, %v5396_v19  ;;  %v6299_v19 = vld [vmem:[#allocation8 + $0x4c4] sm:$0xf0] }
  0x58   :  { %v5613_v15 = vor.u32 %v6317_v12, %v5612_v8 }
  0x59   :  { %499 = vmatmul.bf16.gmra.mxu2 %v6690_v10  ;;  %713 = vmatpush.bf16.msrb.mxu1 %v4769_v26  ;;  %v5589_v26 = vor.u32 %v6311_v23, %v5588_v21  ;;  %v4940_v21 = vld [vmem:[#allocation8] sm:$0xf] }
  0x5a   :  { %479 = vmatmul.bf16.gmra.mxu0 %v6692_v11  ;;  %2833 = vmatpush.bf16.msra.mxu2 %v5109_v27  ;;  %v4989_v27 = vor.u32 %v6161_v25, %v4988_v24  ;;  %v5132_v23 = vld [vmem:[#allocation8 + $0x180] sm:$0xf] }
  0x5b   :  { %2882 = vmatpush.bf16.msra.mxu3 %v5301_v29  ;;  %2931 = vmatpush.bf16.msra.mxu0 %v5493_v35 }
  0x5c   :  { %548 = vmatmul.bf16.gmra.mxu3 %v6690_v10  ;;  %528 = vmatmul.bf16.gmra.mxu1 %v6692_v11 }
  0x5d   :  { %2980 = vmatpush.bf16.msra.mxu1 %v5685_v40  ;;  %v5181_v40 = vor.u32 %v6209_v36, %v5180_v34  ;;  %v6197_v34 = vld [vmem:[#allocation8 + $0x194] sm:$0xf0] }
  0x5e   :  { %2834 = vmatpush.bf16.msra.mxu2 %v5085_v41 }
  0x5f   :  { %2883 = vmatpush.bf16.msra.mxu3 %v5277_v45  ;;  %2932 = vmatpush.bf16.msra.mxu0 %v5469_v49  ;;  %v5372_v45 = vld [vmem:[#allocation8 + $0x360] sm:$0xf]  ;;  %v6305_v49 = vld [vmem:[#allocation8 + $0x4f4] sm:$0xf0] }
  0x60   :  { %v5373_v48 = vor.u32 %v6257_v46, %v5372_v45  ;;  %v5565_v50 = vor.u32 %v6305_v49, %v5564_v47 }
  0x61   :  { %2981 = vmatpush.bf16.msra.mxu1 %v5661_v54 }
  0x62   :  { %2835 = vmatpush.bf16.msra.mxu2 %v5061_v55 }
  0x63   :  { %2884 = vmatpush.bf16.msra.mxu3 %v5253_v58 }
  0x65   :  { %2982 = vmatpush.bf16.msra.mxu1 %v5637_v2 }
  0x66   :  { %2836 = vmatpush.bf16.msra.mxu2 %v5037_v3 }
  0x67   :  { %2885 = vmatpush.bf16.msra.mxu3 %v5229_v6  ;;  %v5156_v6 = vld [vmem:[#allocation8 + $0x1b0] sm:$0xf] }
  0x69   :  { %504 = vmatmul.bf16.gmra.mxu2 %v6698_v30  ;;  %2983 = vmatpush.bf16.msra.mxu1 %v5613_v15 }
  0x6a   :  { %484 = vmatmul.bf16.gmra.mxu0 %v6700_v31  ;;  %2837 = vmatpush.bf16.msra.mxu2 %v5013_v16  ;;  %v5348_v16 = vld [vmem:[#allocation8 + $0x330] sm:$0xf] }
  0x6c   :  { %553 = vmatmul.bf16.gmra.mxu3 %v6698_v30  ;;  %533 = vmatmul.bf16.gmra.mxu1 %v6700_v31 }
  0x6d   :  { %2984 = vmatpush.bf16.msra.mxu1 %v5589_v26 }
  0x6e   :  { %2838 = vmatpush.bf16.msra.mxu2 %v4989_v27 }
  0x71   :  { %2985 = vmatpush.bf16.msra.mxu1 %v5565_v50 }
  0x72   :  { %2839 = vmatpush.bf16.msra.mxu2 %v4965_v57 }
  0x79   :  { %567 = vmatmul.bf16.vlgmr.msrb.gmra.mxu2 %v6676_v59 }
  0x7a   :  { %665 = vmatmul.bf16.vlgmr.msrb.gmra.mxu0 %v6676_v59 }
  0x7c   :  { %616 = vmatmul.bf16.vlgmr.msrb.gmra.mxu3 %v6676_v59  ;;  %714 = vmatmul.bf16.vlgmr.msrb.gmra.mxu1 %v6676_v59  ;;  %v5444_v59 = vld [vmem:[#allocation8 + $0x3f0] sm:$0xf] }
  0x7d   :  { %v5445_v62 = vor.u32 %v6275_v60, %v5444_v59 }
  0x7f   :  { %2933 = vmatpush.bf16.msra.mxu0 %v5445_v62 }
  0x89   :  { %572 = vmatmul.bf16.gmra.mxu2 %v6684_v43 }
  0x8a   :  { %670 = vmatmul.bf16.gmra.mxu0 %v6684_v43 }
  0x8c   :  { %621 = vmatmul.bf16.gmra.mxu3 %v6684_v43  ;;  %719 = vmatmul.bf16.gmra.mxu1 %v6684_v43  ;;  %v5420_v43 = vld [vmem:[#allocation8 + $0x3c0] sm:$0xf] }
  0x8d   :  { %v5421_v9 = vor.u32 %v6269_v7, %v5420_v43  ;;  %v6203_v7 = vld [vmem:[#allocation8 + $0x1c4] sm:$0xf0] }
  0x8e   :  { %v5157_v12 = vor.u32 %v6203_v7, %v5156_v6  ;;  %v6383_v6 = vld [vmem:[#allocation8 + $0x764] sm:$0xf0] }
  0x8f   :  { %2934 = vmatpush.bf16.msra.mxu0 %v5421_v9 }
  0x93   :  { %2935 = vmatpush.bf16.msra.mxu0 %v5397_v22  ;;  %v6149_v22 = vld [vmem:[#allocation8 + $0x14] sm:$0xf0] }
  0x94   :  { %v4941_v27 = vor.u32 %v6149_v22, %v4940_v21 }
  0x96   :  { %2840 = vmatpush.bf16.msra.mxu2 %v4941_v27 }
  0x97   :  { %2936 = vmatpush.bf16.msra.mxu0 %v5373_v48 }
  0x99   :  { %577 = vmatmul.bf16.gmra.mxu2 %v6692_v11 }
  0x9a   :  { %675 = vmatmul.bf16.gmra.mxu0 %v6692_v11 }
  0x9c   :  { %626 = vmatmul.bf16.gmra.mxu3 %v6692_v11  ;;  %724 = vmatmul.bf16.gmra.mxu1 %v6692_v11  ;;  %v5204_v11 = vld [vmem:[#allocation8 + $0x210] sm:$0xf] }
  0x9d   :  { %v5205_v18 = vor.u32 %v6215_v17, %v5204_v11  ;;  %v6251_v11 = vld [vmem:[#allocation8 + $0x344] sm:$0xf0]  ;;  %v5540_v17 = vld [vmem:[#allocation8 + $0x4b0] sm:$0xf] }
  0x9e   :  { %v5541_v20 = vor.u32 %v6299_v19, %v5540_v17 }
  0x9f   :  { %2886 = vmatpush.bf16.msra.mxu3 %v5205_v18  ;;  %v5349_v18 = vor.u32 %v6251_v11, %v5348_v16 }
  0xa0   :  { %2986 = vmatpush.bf16.msra.mxu1 %v5541_v20 }
  0xa1   :  { %2937 = vmatpush.bf16.msra.mxu0 %v5349_v18 }
  0xa3   :  { %2887 = vmatpush.bf16.msra.mxu3 %v5181_v40 }
  0xa7   :  { %2888 = vmatpush.bf16.msra.mxu3 %v5157_v12 }
  0xa9   :  { %582 = vmatmul.bf16.gmra.mxu2 %v6700_v31 }
  0xaa   :  { %680 = vmatmul.bf16.gmra.mxu0 %v6700_v31 }
  0xac   :  { %631 = vmatmul.bf16.gmra.mxu3 %v6700_v31  ;;  %729 = vmatmul.bf16.gmra.mxu1 %v6700_v31 }
  0xb6   :  { %v6724_v29 = vpop.f32.mrf.mxu0 }
  0xb7   :  { %v471_v22 = vadd.f32 %v6724_v29, %v6730_v32 }
  0xb9   :  { %v6726_v31 = vpop.f32.mrf.mxu1  ;;  %587 = vmatmul.bf16.gmra.mxu2 %v6674_v52  ;;  %vm755_vm12 = vcmp.gt.f32.partialorder %v471_v22, 0.0 }
  0xba   :  { %685 = vmatmul.bf16.gmra.mxu0 %v6674_v52 }
  0xbc   :  { %636 = vmatmul.bf16.gmra.mxu3 %v6674_v52  ;;  %734 = vmatmul.bf16.gmra.mxu1 %v6674_v52  ;;  %v490_v35 = vpop.f32.mrf.mxu2 }
  0xbd   :  { %v491_v37 = vadd.f32 %v490_v35, %v6730_v32  ;;  %v539_v39 = vpop.f32.mrf.mxu3 }
  0xbe   :  { %v540_v41 = vadd.f32 %v539_v39, %v6735_v33  ;;  %v6740_v42 = vpop.f32.mrf.mxu0  ;;  %v5133_v39 = vor.u32 %v6197_v34, %v5132_v23  ;;  %v6431_v34 = vld [vmem:[#allocation8 + $0x8e4] sm:$0xf0] }
  0xbf   :  { %v899_v54 = vmul.f32 0.2, %v491_v37  ;;  %vm803_vm0 = vcmp.gt.f32.partialorder %v491_v37, 0.0 }
  0xc0   :  { %v900_v58 = vmul.f32 0.2, %v540_v41  ;;  %vm804_vm1 = vcmp.gt.f32.partialorder %v540_v41, 0.0  ;;  %2889 = vmatpush.bf16.msra.mxu3 %v5133_v39 }
  0xc1   :  { %v6742_v44 = vpop.f32.mrf.mxu1  ;;  %v995_v0 = vsel %vm803_vm0, %v491_v37, %v899_v54 }
  0xc2   :  { %v996_v2 = vsel %vm804_vm1, %v540_v41, %v900_v58  ;;  %v5324_v58 = vld [vmem:[#allocation8 + $0x300] sm:$0xf] }
  0xc4   :  { %v492_v52 = vpop.f32.mrf.mxu2 }
  0xc5   :  { %v493_v55 = vadd.f32 %v492_v52, %v6730_v32  ;;  %v541_v56 = vpop.f32.mrf.mxu3 }
  0xc6   :  { %v542_v59 = vadd.f32 %v541_v56, %v6735_v33 }
  0xc7   :  { %v6746_v60 = vpop.f32.mrf.mxu0  ;;  %vm809_vm2 = vcmp.gt.f32.partialorder %v493_v55, 0.0  ;;  %v905_v61 = vmul.f32 0.2, %v493_v55 }
  0xc8   :  { %vm810_vm3 = vcmp.gt.f32.partialorder %v542_v59, 0.0  ;;  %v906_v62 = vmul.f32 0.2, %v542_v59 }
  0xc9   :  { %v6748_v63 = vpop.f32.mrf.mxu1  ;;  %v1001_v1 = vsel %vm809_vm2, %v493_v55, %v905_v61  ;;  %592 = vmatmul.bf16.gmra.mxu2 %v6682_v38  ;;  %v5516_v61 = vld [vmem:[#allocation8 + $0x480] sm:$0xf] }
  0xca   :  { %690 = vmatmul.bf16.gmra.mxu0 %v6682_v38  ;;  %v6752_v3 = vpack.c.bf16 %v1001_v1, %v995_v0  ;;  %v1002_v4 = vsel %vm810_vm3, %v542_v59, %v906_v62  ;;  %v6245_v59 = vld [vmem:[#allocation8 + $0x314] sm:$0xf0] }
  0xcb   :  { %v6755_v5 = vpack.c.bf16 %v1002_v4, %v996_v2  ;;  %v5325_v62 = vor.u32 %v6245_v59, %v5324_v58  ;;  %v6293_v0 = vld [vmem:[#allocation8 + $0x494] sm:$0xf0]  ;;  %v5876_v4 = vld [vmem:[#allocation8 + $0x750] sm:$0xf] }
  0xcc   :  { %7919 = vst [vmem:[#allocation16_spill] sm:$0xff] %v6752_v3  ;;  %641 = vmatmul.bf16.gmra.mxu3 %v6682_v38  ;;  %739 = vmatmul.bf16.gmra.mxu1 %v6682_v38  ;;  %v495_v43 = vpop.f32.mrf.mxu2  ;;  %v5517_v2 = vor.u32 %v6293_v0, %v5516_v61  ;;  %v6377_v0 = vld [vmem:[#allocation8 + $0x734] sm:$0xf0] }
  0xcd   :  { %7920 = vst [vmem:[#allocation17_spill] sm:$0xff] %v6755_v5  ;;  %v496_v8 = vadd.f32 %v495_v43, %v6730_v32  ;;  %2938 = vmatpush.bf16.msra.mxu0 %v5325_v62  ;;  %v5852_v62 = vld [vmem:[#allocation8 + $0x720] sm:$0xf] }
  0xce   :  { %2987 = vmatpush.bf16.msra.mxu1 %v5517_v2 }
  0xcf   :  { %v544_v9 = vpop.f32.mrf.mxu3  ;;  %v6760_v14 = vpop.f32.mrf.mxu0  ;;  %v911_v24 = vmul.f32 0.2, %v496_v8  ;;  %vm815_vm4 = vcmp.gt.f32.partialorder %v496_v8, 0.0 }
  0xd0   :  { %v545_v13 = vadd.f32 %v544_v9, %v6735_v33 }
  0xd1   :  { %v6762_v15 = vpop.f32.mrf.mxu1  ;;  %v1007_v46 = vsel %vm815_vm4, %v496_v8, %v911_v24  ;;  %v5877_v8 = vor.u32 %v6383_v6, %v5876_v4  ;;  %v6068_v24 = vld [vmem:[#allocation8 + $0x8d0] sm:$0xf] }
  0xd2   :  { %v912_v35 = vmul.f32 0.2, %v545_v13  ;;  %vm816_vm5 = vcmp.gt.f32.partialorder %v545_v13, 0.0  ;;  %v6069_v29 = vor.u32 %v6431_v34, %v6068_v24  ;;  %v525_v34 = vadd.f32 %v6748_v63, %v6735_v33 }
  0xd3   :  { %3029 = vmatpush.bf16.msrb.mxu2 %v5877_v8 }
  0xd4   :  { %v497_v38 = vpop.f32.mrf.mxu2  ;;  %v1008_v48 = vsel %vm816_vm5, %v545_v13, %v912_v35  ;;  %v522_v35 = vadd.f32 %v6742_v44, %v6735_v33  ;;  %3078 = vmatpush.bf16.msrb.mxu3 %v6069_v29  ;;  %v6188_v44 = vld [vmem:[#allocation8 + $0x154] sm:$0xf]  ;;  %v527_v29 = vadd.f32 %v6762_v15, %v6735_v33  ;;  %vm768_vm5 = vcmp.gt.f32.partialorder %v525_v34, 0.0 }
  0xd5   :  { %v498_v25 = vadd.f32 %v497_v38, %v6730_v32  ;;  %v864_v63 = vmul.f32 0.2, %v525_v34 }
  0xd6   :  { %vm762_vm15 = vcmp.gt.f32.partialorder %v522_v35, 0.0  ;;  %v870_v15 = vmul.f32 0.2, %v527_v29 }
  0xd7   :  { %v546_v26 = vpop.f32.mrf.mxu3  ;;  %v6766_v37 = vpop.f32.mrf.mxu0  ;;  %vm821_vm6 = vcmp.gt.f32.partialorder %v498_v25, 0.0  ;;  %v917_v40 = vmul.f32 0.2, %v498_v25 }
  0xd8   :  { %v547_v36 = vadd.f32 %v546_v26, %v6735_v33  ;;  %v473_v26 = vadd.f32 %v6740_v42, %v6730_v32  ;;  %v858_v42 = vmul.f32 0.2, %v522_v35 }
  0xd9   :  { %v6768_v45 = vpop.f32.mrf.mxu1  ;;  %v1013_v47 = vsel %vm821_vm6, %v498_v25, %v917_v40  ;;  %597 = vmatmul.bf16.gmra.mxu2 %v6690_v10  ;;  %v520_v25 = vadd.f32 %v6726_v31, %v6735_v33 }
  0xda   :  { %vm822_vm7 = vcmp.gt.f32.partialorder %v547_v36, 0.0  ;;  %v918_v41 = vmul.f32 0.2, %v547_v36  ;;  %695 = vmatmul.bf16.gmra.mxu0 %v6690_v10  ;;  %v6772_v49 = vpack.c.bf16 %v1013_v47, %v1007_v46  ;;  %v857_v46 = vmul.f32 0.2, %v473_v26 }
  0xdb   :  { %v852_v31 = vmul.f32 0.2, %v520_v25  ;;  %vm756_vm13 = vcmp.gt.f32.partialorder %v520_v25, 0.0  ;;  %vm761_vm14 = vcmp.gt.f32.partialorder %v473_v26, 0.0 }
  0xdc   :  { %7921 = vst [vmem:[#allocation18_spill] sm:$0xff] %v6772_v49  ;;  %v1014_v52 = vsel %vm822_vm7, %v547_v36, %v918_v41  ;;  %646 = vmatmul.bf16.gmra.mxu3 %v6690_v10  ;;  %744 = vmatmul.bf16.gmra.mxu1 %v6690_v10  ;;  %v500_v51 = vpop.f32.mrf.mxu2  ;;  %v953_v58 = vsel %vm761_vm14, %v473_v26, %v857_v46  ;;  %vm774_vm7 = vcmp.gt.f32.partialorder %v527_v29, 0.0 }
  0xdd   :  { %v6775_v50 = vpack.c.bf16 %v1014_v52, %v1008_v48  ;;  %v501_v53 = vadd.f32 %v500_v51, %v6730_v32  ;;  %v5110_v48 = vld [vmem:[#allocation8 + $0x168] sm:$0xf0]  ;;  %v6236_v52 = vld [vmem:[#allocation8 + $0x2d4] sm:$0xf] }
  0xde   :  { %v5113_v51 = vor.u32 %v6188_v44, %v5110_v48 }
  0xdf   :  { %7922 = vst [vmem:[#allocation19_spill] sm:$0xff] %v6775_v50  ;;  %v549_v54 = vpop.f32.mrf.mxu3  ;;  %v6780_v56 = vpop.f32.mrf.mxu0  ;;  %v923_v10 = vmul.f32 0.2, %v501_v53  ;;  %vm827_vm8 = vcmp.gt.f32.partialorder %v501_v53, 0.0 }
  0xe0   :  { %v550_v55 = vadd.f32 %v549_v54, %v6735_v33  ;;  %3127 = vmatpush.bf16.msrb.mxu0 %v5113_v51  ;;  %v6182_v51 = vld [vmem:[#allocation8 + $0x124] sm:$0xf] }
  0xe1   :  { %v6782_v57 = vpop.f32.mrf.mxu1  ;;  %v1019_v18 = vsel %vm827_vm8, %v501_v53, %v923_v10  ;;  %v5302_v53 = vld [vmem:[#allocation8 + $0x2e8] sm:$0xf0]  ;;  %v5853_v10 = vor.u32 %v6377_v0, %v5852_v62 }
  0xe2   :  { %v924_v9 = vmul.f32 0.2, %v550_v55  ;;  %vm828_vm9 = vcmp.gt.f32.partialorder %v550_v55, 0.0  ;;  %v5305_v61 = vor.u32 %v6236_v52, %v5302_v53  ;;  %v6230_v53 = vld [vmem:[#allocation8 + $0x2a4] sm:$0xf] }
  0xe3   :  { %3030 = vmatpush.bf16.msrb.mxu2 %v5853_v10 }
  0xe4   :  { %v502_v1 = vpop.f32.mrf.mxu2  ;;  %v1020_v38 = vsel %vm828_vm9, %v550_v55, %v924_v9  ;;  %v948_v55 = vsel %vm756_vm13, %v520_v25, %v852_v31  ;;  %3176 = vmatpush.bf16.msrb.mxu1 %v5305_v61  ;;  %v476_v25 = vadd.f32 %v6746_v60, %v6730_v32  ;;  %v6840_v60 = vperm.slane %v6722_v28, 3 }
  0xe5   :  { %v503_v43 = vadd.f32 %v502_v1, %v6730_v32  ;;  %v954_v1 = vsel %vm762_vm15, %v522_v35, %v858_v42  ;;  %v478_v35 = vadd.f32 %v6760_v14, %v6730_v32 }
  0xe6   :  { %v863_v42 = vmul.f32 0.2, %v476_v25  ;;  %vm767_vm4 = vcmp.gt.f32.partialorder %v476_v25, 0.0 }
  0xe7   :  { %v551_v7 = vpop.f32.mrf.mxu3  ;;  %v6786_v13 = vpop.f32.mrf.mxu0  ;;  %vm833_vm10 = vcmp.gt.f32.partialorder %v503_v43, 0.0  ;;  %v929_v16 = vmul.f32 0.2, %v503_v43  ;;  %v869_v14 = vmul.f32 0.2, %v478_v35  ;;  %vm773_vm6 = vcmp.gt.f32.partialorder %v478_v35, 0.0 }
  0xe8   :  { %v552_v12 = vadd.f32 %v551_v7, %v6735_v33 }
  0xe9   :  { %v6788_v17 = vpop.f32.mrf.mxu1  ;;  %v1025_v19 = vsel %vm833_vm10, %v503_v43, %v929_v16  ;;  %602 = vmatmul.bf16.gmra.mxu2 %v6698_v30  ;;  %v6818_v16 = vpack.c.bf16 %v954_v1, %v948_v55  ;;  %v5278_v55 = vld [vmem:[#allocation8 + $0x2b8] sm:$0xf0]  ;;  %v965_v61 = vsel %vm773_vm6, %v478_v35, %v869_v14  ;;  %v5828_v1 = vld [vmem:[#allocation8 + $0x6f0] sm:$0xf]  ;;  %v483_v14 = vadd.f32 %v6780_v56, %v6730_v32 }
  0xea   :  { %vm834_vm11 = vcmp.gt.f32.partialorder %v552_v12, 0.0  ;;  %v930_v11 = vmul.f32 0.2, %v552_v12  ;;  %700 = vmatmul.bf16.gmra.mxu0 %v6698_v30  ;;  %v6792_v20 = vpack.c.bf16 %v1025_v19, %v1019_v18  ;;  %v5281_v0 = vor.u32 %v6230_v53, %v5278_v55 }
  0xeb   :  { %7926 = vst [vmem:[#allocation23_spill] sm:$0xff] %v6818_v16  ;;  %vm785_vm14 = vcmp.gt.f32.partialorder %v483_v14, 0.0 }
  0xec   :  { %7923 = vst [vmem:[#allocation20_spill] sm:$0xff] %v6792_v20  ;;  %v1026_v21 = vsel %vm834_vm11, %v552_v12, %v930_v11  ;;  %651 = vmatmul.bf16.gmra.mxu3 %v6698_v30  ;;  %749 = vmatmul.bf16.gmra.mxu1 %v6698_v30  ;;  %v505_v27 = vpop.f32.mrf.mxu2  ;;  %v851_v30 = vmul.f32 0.2, %v471_v22 }
  0xed   :  { %v6797_v23 = vpack.c.bf16 %v1026_v21, %v1020_v38  ;;  %v506_v36 = vadd.f32 %v505_v27, %v6730_v32  ;;  %v6044_v27 = vld [vmem:[#allocation8 + $0x8a0] sm:$0xf]  ;;  %3177 = vmatpush.bf16.msrb.mxu1 %v5281_v0 }
  0xee   :  { %v947_v54 = vsel %vm755_vm12, %v471_v22, %v851_v30 }
  0xef   :  { %7924 = vst [vmem:[#allocation21_spill] sm:$0xff] %v6797_v23  ;;  %v554_v39 = vpop.f32.mrf.mxu3  ;;  %v6808_v41 = vpop.f32.mrf.mxu0  ;;  %v935_v2 = vmul.f32 0.2, %v506_v36  ;;  %vm839_vm0 = vcmp.gt.f32.partialorder %v506_v36, 0.0  ;;  %v6816_v9 = vpack.c.bf16 %v953_v58, %v947_v54  ;;  %v959_v58 = vsel %vm767_vm4, %v476_v25, %v863_v42  ;;  %v6020_v42 = vld [vmem:[#allocation8 + $0x870] sm:$0xf] }
  0xf0   :  { %v555_v40 = vadd.f32 %v554_v39, %v6735_v33  ;;  %v6425_v39 = vld [vmem:[#allocation8 + $0x8b4] sm:$0xf0] }
  0xf1   :  { %v6810_v47 = vpop.f32.mrf.mxu1  ;;  %7925 = vst [vmem:[#allocation22_spill] sm:$0xff] %v6816_v9  ;;  %v1031_v19 = vsel %vm839_vm0, %v506_v36, %v935_v2  ;;  %v6045_v31 = vor.u32 %v6425_v39, %v6044_v27  ;;  %v6371_v2 = vld [vmem:[#allocation8 + $0x704] sm:$0xf0] }
  0xf2   :  { %v936_v43 = vmul.f32 0.2, %v555_v40  ;;  %vm840_vm1 = vcmp.gt.f32.partialorder %v555_v40, 0.0 }
  0xf3   :  { %3079 = vmatpush.bf16.msrb.mxu3 %v6045_v31 }
  0xf4   :  { %v507_v59 = vpop.f32.mrf.mxu2  ;;  %v1032_v21 = vsel %vm840_vm1, %v555_v40, %v936_v43  ;;  %v6837_v40 = vperm.slane %v6722_v28, 2  ;;  %v5086_v28 = vld [vmem:[#allocation8 + $0x138] sm:$0xf0] }
  0xf5   :  { %v508_v4 = vadd.f32 %v507_v59, %v6730_v32  ;;  %v5089_v54 = vor.u32 %v6182_v51, %v5086_v28  ;;  %v960_v59 = vsel %vm768_vm5, %v525_v34, %v864_v63  ;;  %v530_v63 = vadd.f32 %v6768_v45, %v6735_v33 }
  0xf7   :  { %v556_v6 = vpop.f32.mrf.mxu3  ;;  %v6814_v8 = vpop.f32.mrf.mxu0  ;;  %vm845_vm2 = vcmp.gt.f32.partialorder %v508_v4, 0.0  ;;  %v941_v12 = vmul.f32 0.2, %v508_v4  ;;  %3128 = vmatpush.bf16.msrb.mxu0 %v5089_v54  ;;  %vm780_vm13 = vcmp.gt.f32.partialorder %v530_v63, 0.0  ;;  %v876_v45 = vmul.f32 0.2, %v530_v63 }
  0xf8   :  { %v557_v7 = vadd.f32 %v556_v6, %v6735_v33  ;;  %v881_v54 = vmul.f32 0.2, %v483_v14 }
  0xf9   :  { %v6820_v18 = vpop.f32.mrf.mxu1  ;;  %v1037_v38 = vsel %vm845_vm2, %v508_v4, %v941_v12  ;;  %2841 = vmatmul.bf16.vlgmr.msra.gmra.mxu2 %v6816_v9  ;;  %v966_v4 = vsel %vm774_vm7, %v527_v29, %v870_v15 }
  0xfa   :  { %vm846_vm3 = vcmp.gt.f32.partialorder %v557_v7, 0.0  ;;  %v942_v11 = vmul.f32 0.2, %v557_v7  ;;  %v6823_v22 = vpack.c.bf16 %v1037_v38, %v1031_v19  ;;  %v6853_v38 = vpack.c.bf16 %v965_v61, %v959_v58  ;;  %v5062_v61 = vld [vmem:[#allocation8 + $0x108] sm:$0xf0] }
  0xfc   :  { %7927 = vst [vmem:[#allocation24_spill] sm:$0xff] %v6823_v22  ;;  %v1038_v24 = vsel %vm846_vm3, %v557_v7, %v942_v11  ;;  %2890 = vmatmul.bf16.vlgmr.msra.gmra.mxu3 %v6818_v16  ;;  %v568_v36 = vpop.f32.mrf.mxu2  ;;  %v5829_v7 = vor.u32 %v6371_v2, %v5828_v1  ;;  %v5254_v1 = vld [vmem:[#allocation8 + $0x288] sm:$0xf0] }
  0xfd   :  { %v6828_v26 = vpack.c.bf16 %v1038_v24, %v1032_v21  ;;  %v569_v48 = vadd.f32 %v568_v36, %v6837_v40  ;;  %7929 = vst [vmem:[#allocation26_spill] sm:$0xff] %v6853_v38  ;;  %v6855_v24 = vpack.c.bf16 %v966_v4, %v960_v59  ;;  %v6176_v59 = vld [vmem:[#allocation8 + $0xf4] sm:$0xf]  ;;  %v972_v4 = vsel %vm780_vm13, %v530_v63, %v876_v45 }
  0xfe   :  { %3031 = vmatpush.bf16.msrb.mxu2 %v5829_v7  ;;  %v5065_v0 = vor.u32 %v6176_v59, %v5062_v61  ;;  %v5804_v7 = vld [vmem:[#allocation8 + $0x6c0] sm:$0xf]  ;;  %v535_v61 = vadd.f32 %v6788_v17, %v6735_v33 }
  0xff   :  { %7928 = vst [vmem:[#allocation25_spill] sm:$0xff] %v6828_v26  ;;  %v617_v30 = vpop.f32.mrf.mxu3  ;;  %v6842_v46 = vpop.f32.mrf.mxu0  ;;  %v853_v6 = vmul.f32 0.2, %v569_v48  ;;  %vm757_vm8 = vcmp.gt.f32.partialorder %v569_v48, 0.0  ;;  %v5996_v59 = vld [vmem:[#allocation8 + $0x840] sm:$0xf] }
 0x100   :  { %v618_v52 = vadd.f32 %v617_v30, %v6840_v60  ;;  %7930 = vst [vmem:[#allocation27_spill] sm:$0xff] %v6855_v24  ;;  %v481_v30 = vadd.f32 %v6766_v37, %v6730_v32  ;;  %3129 = vmatpush.bf16.msrb.mxu0 %v5065_v0  ;;  %v537_v0 = vadd.f32 %v6810_v47, %v6735_v33  ;;  %vm792_vm5 = vcmp.gt.f32.partialorder %v535_v61, 0.0  ;;  %v6170_v47 = vld [vmem:[#allocation8 + $0xc4] sm:$0xf] }
 0x101   :  { %v6844_v44 = vpop.f32.mrf.mxu1  ;;  %v949_v34 = vsel %vm757_vm8, %v569_v48, %v853_v6  ;;  %v6419_v48 = vld [vmem:[#allocation8 + $0x884] sm:$0xf0]  ;;  %v977_v6 = vsel %vm785_vm14, %v483_v14, %v881_v54  ;;  %v486_v54 = vadd.f32 %v6786_v13, %v6730_v32  ;;  %v888_v17 = vmul.f32 0.2, %v535_v61 }
 0x102   :  { %v854_v12 = vmul.f32 0.2, %v618_v52  ;;  %vm758_vm9 = vcmp.gt.f32.partialorder %v618_v52, 0.0  ;;  %v6021_v37 = vor.u32 %v6419_v48, %v6020_v42  ;;  %v875_v53 = vmul.f32 0.2, %v481_v30 }
 0x103   :  { %vm779_vm12 = vcmp.gt.f32.partialorder %v481_v30, 0.0  ;;  %vm791_vm4 = vcmp.gt.f32.partialorder %v486_v54, 0.0  ;;  %vm798_vm7 = vcmp.gt.f32.partialorder %v537_v0, 0.0 }
 0x104   :  { %v570_v62 = vpop.f32.mrf.mxu2  ;;  %v950_v36 = vsel %vm758_vm9, %v618_v52, %v854_v12  ;;  %v532_v52 = vadd.f32 %v6782_v57, %v6735_v33  ;;  %3080 = vmatpush.bf16.msrb.mxu3 %v6021_v37  ;;  %v971_v2 = vsel %vm779_vm12, %v481_v30, %v875_v53  ;;  %v6365_v12 = vld [vmem:[#allocation8 + $0x6d4] sm:$0xf0] }
 0x105   :  { %v571_v10 = vadd.f32 %v570_v62, %v6837_v40  ;;  %v6224_v62 = vld [vmem:[#allocation8 + $0x274] sm:$0xf]  ;;  %v6886_v30 = vpack.c.bf16 %v977_v6, %v971_v2 }
 0x106   :  { %vm786_vm15 = vcmp.gt.f32.partialorder %v532_v52, 0.0  ;;  %v882_v55 = vmul.f32 0.2, %v532_v52 }
 0x107   :  { %v619_v43 = vpop.f32.mrf.mxu3  ;;  %v6851_v19 = vpop.f32.mrf.mxu0  ;;  %vm763_vm10 = vcmp.gt.f32.partialorder %v571_v10, 0.0  ;;  %v859_v21 = vmul.f32 0.2, %v571_v10  ;;  %7933 = vst [vmem:[#allocation30_spill] sm:$0xff] %v6886_v30 }
 0x108   :  { %v620_v11 = vadd.f32 %v619_v43, %v6840_v60  ;;  %v5257_v43 = vor.u32 %v6224_v62, %v5254_v1 }
 0x109   :  { %v6857_v27 = vpop.f32.mrf.mxu1  ;;  %v955_v35 = vsel %vm763_vm10, %v571_v10, %v859_v21  ;;  %2846 = vmatmul.bf16.gmra.mxu2 %v6853_v38 }
 0x10a   :  { %vm764_vm11 = vcmp.gt.f32.partialorder %v620_v11, 0.0  ;;  %v860_v25 = vmul.f32 0.2, %v620_v11  ;;  %v6860_v39 = vpack.c.bf16 %v955_v35, %v949_v34  ;;  %v5805_v35 = vor.u32 %v6365_v12, %v5804_v7  ;;  %3178 = vmatpush.bf16.msrb.mxu1 %v5257_v43  ;;  %v5038_v43 = vld [vmem:[#allocation8 + $0xd8] sm:$0xf0] }
 0x10b   :  { %v6218_v7 = vld [vmem:[#allocation8 + $0x244] sm:$0xf]  ;;  %v5041_v12 = vor.u32 %v6170_v47, %v5038_v43  ;;  %v5972_v43 = vld [vmem:[#allocation8 + $0x810] sm:$0xf] }
 0x10c   :  { %7931 = vst [vmem:[#allocation28_spill] sm:$0xff] %v6860_v39  ;;  %v956_v29 = vsel %vm764_vm11, %v620_v11, %v860_v25  ;;  %2895 = vmatmul.bf16.gmra.mxu3 %v6855_v24  ;;  %v573_v15 = vpop.f32.mrf.mxu2  ;;  %2939 = vmatmul.bf16.vlgmr.msra.gmra.mxu0 %v6860_v39  ;;  %v978_v11 = vsel %vm786_vm15, %v532_v52, %v882_v55 }
 0x10d   :  { %v6865_v31 = vpack.c.bf16 %v956_v29, %v950_v36  ;;  %v574_v58 = vadd.f32 %v573_v15, %v6837_v40  ;;  %3032 = vmatpush.bf16.msrb.mxu2 %v5805_v35  ;;  %v6888_v14 = vpack.c.bf16 %v978_v11, %v972_v4  ;;  %v887_v4 = vmul.f32 0.2, %v486_v54  ;;  %v5230_v11 = vld [vmem:[#allocation8 + $0x258] sm:$0xf0]  ;;  %3130 = vmatpush.bf16.msrb.mxu0 %v5041_v12  ;;  %v6407_v12 = vld [vmem:[#allocation8 + $0x824] sm:$0xf0] }
 0x10f   :  { %7932 = vst [vmem:[#allocation29_spill] sm:$0xff] %v6865_v31  ;;  %v622_v51 = vpop.f32.mrf.mxu3  ;;  %2988 = vmatmul.bf16.vlgmr.msra.gmra.mxu1 %v6865_v31  ;;  %v6875_v28 = vpop.f32.mrf.mxu0  ;;  %v865_v21 = vmul.f32 0.2, %v574_v58  ;;  %vm769_vm0 = vcmp.gt.f32.partialorder %v574_v58, 0.0 }
 0x110   :  { %v623_v57 = vadd.f32 %v622_v51, %v6840_v60  ;;  %7934 = vst [vmem:[#allocation31_spill] sm:$0xff] %v6888_v14 }
 0x111   :  { %v6877_v56 = vpop.f32.mrf.mxu1  ;;  %v961_v52 = vsel %vm769_vm0, %v574_v58, %v865_v21  ;;  %v488_v58 = vadd.f32 %v6808_v41, %v6730_v32  ;;  %v894_v41 = vmul.f32 0.2, %v537_v0  ;;  %v983_v21 = vsel %vm791_vm4, %v486_v54, %v887_v4 }
 0x112   :  { %v866_v36 = vmul.f32 0.2, %v623_v57  ;;  %vm770_vm1 = vcmp.gt.f32.partialorder %v623_v57, 0.0 }
 0x113   :  { %v893_v6 = vmul.f32 0.2, %v488_v58  ;;  %vm797_vm6 = vcmp.gt.f32.partialorder %v488_v58, 0.0 }
 0x114   :  { %v575_v10 = vpop.f32.mrf.mxu2  ;;  %v962_v37 = vsel %vm770_vm1, %v623_v57, %v866_v36  ;;  %v6413_v57 = vld [vmem:[#allocation8 + $0x854] sm:$0xf0]  ;;  %v5233_v36 = vor.u32 %v6218_v7, %v5230_v11 }
 0x115   :  { %v576_v25 = vadd.f32 %v575_v10, %v6837_v40  ;;  %v5997_v13 = vor.u32 %v6413_v57, %v5996_v59 }
 0x116   :  { %3179 = vmatpush.bf16.msrb.mxu1 %v5233_v36  ;;  %v5014_v36 = vld [vmem:[#allocation8 + $0xa8] sm:$0xf0] }
 0x117   :  { %v624_v34 = vpop.f32.mrf.mxu3  ;;  %v6884_v42 = vpop.f32.mrf.mxu0  ;;  %vm775_vm2 = vcmp.gt.f32.partialorder %v576_v25, 0.0  ;;  %v871_v63 = vmul.f32 0.2, %v576_v25  ;;  %3081 = vmatpush.bf16.msrb.mxu3 %v5997_v13 }
 0x118   :  { %v625_v29 = vadd.f32 %v624_v34, %v6840_v60  ;;  %v989_v34 = vsel %vm797_vm6, %v488_v58, %v893_v6 }
 0x119   :  { %v6890_v48 = vpop.f32.mrf.mxu1  ;;  %v967_v51 = vsel %vm775_vm2, %v576_v25, %v871_v63  ;;  %2851 = vmatmul.bf16.gmra.mxu2 %v6886_v30  ;;  %v984_v25 = vsel %vm792_vm5, %v535_v61, %v888_v17  ;;  %v6359_v63 = vld [vmem:[#allocation8 + $0x6a4] sm:$0xf0]  ;;  %v6917_v54 = vpack.c.bf16 %v989_v34, %v983_v21 }
 0x11a   :  { %vm776_vm3 = vcmp.gt.f32.partialorder %v625_v29, 0.0  ;;  %v872_v15 = vmul.f32 0.2, %v625_v29  ;;  %v6893_v53 = vpack.c.bf16 %v967_v51, %v961_v52 }
 0x11b   :  { %7937 = vst [vmem:[#allocation34_spill] sm:$0xff] %v6917_v54 }
 0x11c   :  { %7935 = vst [vmem:[#allocation32_spill] sm:$0xff] %v6893_v53  ;;  %v968_v45 = vsel %vm776_vm3, %v625_v29, %v872_v15  ;;  %2900 = vmatmul.bf16.gmra.mxu3 %v6888_v14  ;;  %v578_v62 = vpop.f32.mrf.mxu2  ;;  %2944 = vmatmul.bf16.gmra.mxu0 %v6893_v53  ;;  %v5780_v29 = vld [vmem:[#allocation8 + $0x690] sm:$0xf]  ;;  %v990_v15 = vsel %vm798_vm7, %v537_v0, %v894_v41 }
 0x11d   :  { %v6898_v55 = vpack.c.bf16 %v968_v45, %v962_v37  ;;  %v579_v10 = vadd.f32 %v578_v62, %v6837_v40  ;;  %v5781_v45 = vor.u32 %v6359_v63, %v5780_v29  ;;  %v6921_v57 = vpack.c.bf16 %v990_v15, %v984_v25  ;;  %v6212_v29 = vld [vmem:[#allocation8 + $0x214] sm:$0xf]  ;;  %v5206_v15 = vld [vmem:[#allocation8 + $0x228] sm:$0xf0] }
 0x11f   :  { %7936 = vst [vmem:[#allocation33_spill] sm:$0xff] %v6898_v55  ;;  %v627_v1 = vpop.f32.mrf.mxu3  ;;  %2993 = vmatmul.bf16.gmra.mxu1 %v6898_v55  ;;  %v6908_v2 = vpop.f32.mrf.mxu0  ;;  %v877_v52 = vmul.f32 0.2, %v579_v10  ;;  %vm781_vm8 = vcmp.gt.f32.partialorder %v579_v10, 0.0  ;;  %3033 = vmatpush.bf16.msrb.mxu2 %v5781_v45  ;;  %v6353_v45 = vld [vmem:[#allocation8 + $0x674] sm:$0xf0] }
 0x120   :  { %v628_v33 = vadd.f32 %v627_v1, %v6840_v60  ;;  %7938 = vst [vmem:[#allocation35_spill] sm:$0xff] %v6921_v57 }
 0x121   :  { %v6910_v32 = vpop.f32.mrf.mxu1  ;;  %v973_v13 = vsel %vm781_vm8, %v579_v10, %v877_v52  ;;  %v5973_v10 = vor.u32 %v6407_v12, %v5972_v43 }
 0x122   :  { %v878_v59 = vmul.f32 0.2, %v628_v33  ;;  %vm782_vm9 = vcmp.gt.f32.partialorder %v628_v33, 0.0 }
 0x123   :  { %3082 = vmatpush.bf16.msrb.mxu3 %v5973_v10 }
 0x124   :  { %v580_v35 = vpop.f32.mrf.mxu2  ;;  %v974_v17 = vsel %vm782_vm9, %v628_v33, %v878_v59 }
 0x125   :  { %v581_v51 = vadd.f32 %v580_v35, %v6837_v40  ;;  %v6164_v35 = vld [vmem:[#allocation8 + $0x94] sm:$0xf] }
 0x126   :  { %v5017_v63 = vor.u32 %v6164_v35, %v5014_v36 }
 0x127   :  { %v629_v37 = vpop.f32.mrf.mxu3  ;;  %vm787_vm10 = vcmp.gt.f32.partialorder %v581_v51, 0.0  ;;  %v883_v61 = vmul.f32 0.2, %v581_v51  ;;  %v6919_v58 = vpop.f32.mrf.mxu0 }
 0x128   :  { %v630_v62 = vadd.f32 %v629_v37, %v6840_v60  ;;  %v5756_v37 = vld [vmem:[#allocation8 + $0x660] sm:$0xf]  ;;  %3131 = vmatpush.bf16.msrb.mxu0 %v5017_v63 }
 0x129   :  { %v6923_v1 = vpop.f32.mrf.mxu1  ;;  %v979_v4 = vsel %vm787_vm10, %v581_v51, %v883_v61  ;;  %2856 = vmatmul.bf16.gmra.mxu2 %v6917_v54  ;;  %v5209_v51 = vor.u32 %v6212_v29, %v5206_v15  ;;  %v5948_v29 = vld [vmem:[#allocation8 + $0x7e0] sm:$0xf] }
 0x12a   :  { %vm788_vm11 = vcmp.gt.f32.partialorder %v630_v62, 0.0  ;;  %v884_v0 = vmul.f32 0.2, %v630_v62  ;;  %v6926_v6 = vpack.c.bf16 %v979_v4, %v973_v13 }
 0x12b   :  { %3180 = vmatpush.bf16.msrb.mxu1 %v5209_v51 }
 0x12c   :  { %7939 = vst [vmem:[#allocation36_spill] sm:$0xff] %v6926_v6  ;;  %v980_v41 = vsel %vm788_vm11, %v630_v62, %v884_v0  ;;  %2905 = vmatmul.bf16.gmra.mxu3 %v6921_v57  ;;  %v583_v7 = vpop.f32.mrf.mxu2  ;;  %2949 = vmatmul.bf16.gmra.mxu0 %v6926_v6  ;;  %v5757_v0 = vor.u32 %v6353_v45, %v5756_v37  ;;  %v6158_v45 = vld [vmem:[#allocation8 + $0x64] sm:$0xf] }
 0x12d   :  { %v6929_v47 = vpack.c.bf16 %v980_v41, %v974_v17  ;;  %v584_v21 = vadd.f32 %v583_v7, %v6837_v40 }
 0x12e   :  { %3034 = vmatpush.bf16.msrb.mxu2 %v5757_v0  ;;  %v5182_v0 = vld [vmem:[#allocation8 + $0x1f8] sm:$0xf0] }
 0x12f   :  { %7940 = vst [vmem:[#allocation37_spill] sm:$0xff] %v6929_v47  ;;  %v632_v11 = vpop.f32.mrf.mxu3  ;;  %2998 = vmatmul.bf16.gmra.mxu1 %v6929_v47  ;;  %v6934_v33 = vpop.f32.mrf.mxu0  ;;  %v889_v59 = vmul.f32 0.2, %v584_v21  ;;  %vm793_vm12 = vcmp.gt.f32.partialorder %v584_v21, 0.0  ;;  %v6389_v47 = vld [vmem:[#allocation8 + $0x794] sm:$0xf0] }
 0x130   :  { %v633_v25 = vadd.f32 %v632_v11, %v6840_v60 }
 0x131   :  { %v6937_v34 = vpop.f32.mrf.mxu1  ;;  %v985_v43 = vsel %vm793_vm12, %v584_v21, %v889_v59  ;;  %v6401_v21 = vld [vmem:[#allocation8 + $0x7f4] sm:$0xf0]  ;;  %v4990_v59 = vld [vmem:[#allocation8 + $0x78] sm:$0xf0] }
 0x132   :  { %v890_v13 = vmul.f32 0.2, %v633_v25  ;;  %vm794_vm13 = vcmp.gt.f32.partialorder %v633_v25, 0.0 }
 0x134   :  { %v585_v52 = vpop.f32.mrf.mxu2  ;;  %v986_v12 = vsel %vm794_vm13, %v633_v25, %v890_v13  ;;  %v5949_v25 = vor.u32 %v6401_v21, %v5948_v29 }
 0x135   :  { %v586_v62 = vadd.f32 %v585_v52, %v6837_v40 }
 0x136   :  { %3083 = vmatpush.bf16.msrb.mxu3 %v5949_v25 }
 0x137   :  { %v634_v61 = vpop.f32.mrf.mxu3  ;;  %vm799_vm14 = vcmp.gt.f32.partialorder %v586_v62, 0.0  ;;  %v895_v17 = vmul.f32 0.2, %v586_v62  ;;  %v6947_v36 = vpop.f32.mrf.mxu0 }
 0x138   :  { %v635_v4 = vadd.f32 %v634_v61, %v6840_v60  ;;  %v4993_v61 = vor.u32 %v6158_v45, %v4990_v59 }
 0x139   :  { %v991_v7 = vsel %vm799_vm14, %v586_v62, %v895_v17  ;;  %2861 = vmatmul.bf16.gmra.mxu2 %v6752_v3  ;;  %v6950_v15 = vpop.f32.mrf.mxu1  ;;  %v6206_v62 = vld [vmem:[#allocation8 + $0x1e4] sm:$0xf]  ;;  %v5732_v17 = vld [vmem:[#allocation8 + $0x630] sm:$0xf] }
 0x13a   :  { %vm800_vm15 = vcmp.gt.f32.partialorder %v635_v4, 0.0  ;;  %v896_v41 = vmul.f32 0.2, %v635_v4  ;;  %v6942_v11 = vpack.c.bf16 %v991_v7, %v985_v43  ;;  %3132 = vmatpush.bf16.msrb.mxu0 %v4993_v61 }
 0x13c   :  { %7941 = vst [vmem:[#allocation38_spill] sm:$0xff] %v6942_v11  ;;  %v992_v10 = vsel %vm800_vm15, %v635_v4, %v896_v41  ;;  %2910 = vmatmul.bf16.gmra.mxu3 %v6755_v5  ;;  %v588_v63 = vpop.f32.mrf.mxu2  ;;  %2954 = vmatmul.bf16.gmra.mxu0 %v6942_v11  ;;  %v5185_v4 = vor.u32 %v6206_v62, %v5182_v0  ;;  %v6347_v41 = vld [vmem:[#allocation8 + $0x644] sm:$0xf0] }
 0x13d   :  { %v6945_v35 = vpack.c.bf16 %v992_v10, %v986_v12  ;;  %v589_v51 = vadd.f32 %v588_v63, %v6837_v40  ;;  %v5733_v29 = vor.u32 %v6347_v41, %v5732_v17  ;;  %v5924_v41 = vld [vmem:[#allocation8 + $0x7b0] sm:$0xf] }
 0x13e   :  { %3181 = vmatpush.bf16.msrb.mxu1 %v5185_v4 }
 0x13f   :  { %7942 = vst [vmem:[#allocation39_spill] sm:$0xff] %v6945_v35  ;;  %v637_v52 = vpop.f32.mrf.mxu3  ;;  %3003 = vmatmul.bf16.gmra.mxu1 %v6945_v35  ;;  %v901_v43 = vmul.f32 0.2, %v589_v51  ;;  %v6956_v10 = vpop.f32.mrf.mxu0  ;;  %vm805_vm0 = vcmp.gt.f32.partialorder %v589_v51, 0.0  ;;  %3035 = vmatpush.bf16.msrb.mxu2 %v5733_v29  ;;  %v6341_v35 = vld [vmem:[#allocation8 + $0x614] sm:$0xf0] }
 0x140   :  { %v638_v37 = vadd.f32 %v637_v52, %v6840_v60 }
 0x141   :  { %v6959_v52 = vpop.f32.mrf.mxu1  ;;  %v997_v59 = vsel %vm805_vm0, %v589_v51, %v901_v43 }
 0x142   :  { %v902_v63 = vmul.f32 0.2, %v638_v37  ;;  %vm806_vm1 = vcmp.gt.f32.partialorder %v638_v37, 0.0 }
 0x144   :  { %v590_v13 = vpop.f32.mrf.mxu2  ;;  %v998_v0 = vsel %vm806_vm1, %v638_v37, %v902_v63 }
 0x145   :  { %v591_v7 = vadd.f32 %v590_v13, %v6837_v40 }
 0x147   :  { %v639_v12 = vpop.f32.mrf.mxu3  ;;  %vm811_vm2 = vcmp.gt.f32.partialorder %v591_v7, 0.0  ;;  %v907_v25 = vmul.f32 0.2, %v591_v7  ;;  %v6969_v43 = vpop.f32.mrf.mxu0 }
 0x148   :  { %v640_v21 = vadd.f32 %v639_v12, %v6840_v60  ;;  %v6395_v12 = vld [vmem:[#allocation8 + $0x7c4] sm:$0xf0] }
 0x149   :  { %v1003_v62 = vsel %vm811_vm2, %v591_v7, %v907_v25  ;;  %2866 = vmatmul.bf16.gmra.mxu2 %v6772_v49  ;;  %v5925_v51 = vor.u32 %v6395_v12, %v5924_v41  ;;  %v6971_v37 = vpop.f32.mrf.mxu1  ;;  %v4966_v25 = vld [vmem:[#allocation8 + $0x48] sm:$0xf0] }
 0x14a   :  { %vm812_vm3 = vcmp.gt.f32.partialorder %v640_v21, 0.0  ;;  %v908_v45 = vmul.f32 0.2, %v640_v21  ;;  %v6962_v61 = vpack.c.bf16 %v1003_v62, %v997_v59  ;;  %v5158_v62 = vld [vmem:[#allocation8 + $0x1c8] sm:$0xf0] }
 0x14b   :  { %3084 = vmatpush.bf16.msrb.mxu3 %v5925_v51 }
 0x14c   :  { %7943 = vst [vmem:[#allocation40_spill] sm:$0xff] %v6962_v61  ;;  %v1004_v13 = vsel %vm812_vm3, %v640_v21, %v908_v45  ;;  %2915 = vmatmul.bf16.gmra.mxu3 %v6775_v50  ;;  %v593_v4 = vpop.f32.mrf.mxu2  ;;  %2959 = vmatmul.bf16.gmra.mxu0 %v6962_v61  ;;  %v6152_v21 = vld [vmem:[#allocation8 + $0x34] sm:$0xf]  ;;  %v5708_v61 = vld [vmem:[#allocation8 + $0x600] sm:$0xf] }
 0x14d   :  { %v6965_v17 = vpack.c.bf16 %v1004_v13, %v998_v0  ;;  %v594_v7 = vadd.f32 %v593_v4, %v6837_v40  ;;  %v6200_v45 = vld [vmem:[#allocation8 + $0x1b4] sm:$0xf]  ;;  %v4969_v59 = vor.u32 %v6152_v21, %v4966_v25  ;;  %v5709_v11 = vor.u32 %v6341_v35, %v5708_v61 }
 0x14e   :  { %v5161_v13 = vor.u32 %v6200_v45, %v5158_v62 }
 0x14f   :  { %7944 = vst [vmem:[#allocation41_spill] sm:$0xff] %v6965_v17  ;;  %v642_v29 = vpop.f32.mrf.mxu3  ;;  %3008 = vmatmul.bf16.gmra.mxu1 %v6965_v17  ;;  %v5900_v17 = vld [vmem:[#allocation8 + $0x780] sm:$0xf]  ;;  %v913_v41 = vmul.f32 0.2, %v594_v7  ;;  %3133 = vmatpush.bf16.msrb.mxu0 %v4969_v59  ;;  %vm817_vm4 = vcmp.gt.f32.partialorder %v594_v7, 0.0 }
 0x150   :  { %v643_v63 = vadd.f32 %v642_v29, %v6840_v60  ;;  %3182 = vmatpush.bf16.msrb.mxu1 %v5161_v13  ;;  %v5901_v6 = vor.u32 %v6389_v47, %v5900_v17  ;;  %3036 = vmatpush.bf16.msrb.mxu2 %v5709_v11  ;;  %v6146_v17 = vld [vmem:[#allocation8 + $0x4] sm:$0xf] }
 0x151   :  { %v1009_v45 = vsel %vm817_vm4, %v594_v7, %v913_v41  ;;  %v4942_v7 = vld [vmem:[#allocation8 + $0x18] sm:$0xf0] }
 0x152   :  { %v914_v4 = vmul.f32 0.2, %v643_v63  ;;  %vm818_vm5 = vcmp.gt.f32.partialorder %v643_v63, 0.0  ;;  %3085 = vmatpush.bf16.msrb.mxu3 %v5901_v6 }
 0x154   :  { %v595_v0 = vpop.f32.mrf.mxu2  ;;  %v1010_v35 = vsel %vm818_vm5, %v643_v63, %v914_v4  ;;  %v6194_v63 = vld [vmem:[#allocation8 + $0x184] sm:$0xf]  ;;  %v5134_v4 = vld [vmem:[#allocation8 + $0x198] sm:$0xf0] }
 0x155   :  { %v596_v12 = vadd.f32 %v595_v0, %v6837_v40  ;;  %v6977_v0 = vpop.f32.mrf.mxu0 }
 0x157   :  { %v644_v51 = vpop.f32.mrf.mxu3  ;;  %vm823_vm6 = vcmp.gt.f32.partialorder %v596_v12, 0.0  ;;  %v919_v21 = vmul.f32 0.2, %v596_v12 }
 0x158   :  { %v645_v29 = vadd.f32 %v644_v51, %v6840_v60  ;;  %v6982_v51 = vpop.f32.mrf.mxu1 }
 0x159   :  { %v1015_v62 = vsel %vm823_vm6, %v596_v12, %v919_v21  ;;  %2871 = vmatmul.bf16.gmra.mxu2 %v6792_v20  ;;  %v4945_v12 = vor.u32 %v6146_v17, %v4942_v7  ;;  %v5494_v21 = vld [vmem:[#allocation8 + $0x468] sm:$0xf0]  ;;  %v5470_v20 = vld [vmem:[#allocation8 + $0x438] sm:$0xf0] }
 0x15a   :  { %vm824_vm7 = vcmp.gt.f32.partialorder %v645_v29, 0.0  ;;  %v920_v25 = vmul.f32 0.2, %v645_v29  ;;  %v6980_v61 = vpack.c.bf16 %v1015_v62, %v1009_v45  ;;  %v5137_v45 = vor.u32 %v6194_v63, %v5134_v4  ;;  %v6332_v63 = vld [vmem:[#allocation8 + $0x5d4] sm:$0xf] }
 0x15b   :  { %3134 = vmatpush.bf16.msrb.mxu0 %v4945_v12 }
 0x15c   :  { %7945 = vst [vmem:[#allocation42_spill] sm:$0xff] %v6980_v61  ;;  %v1016_v59 = vsel %vm824_vm7, %v645_v29, %v920_v25  ;;  %2920 = vmatmul.bf16.gmra.mxu3 %v6797_v23  ;;  %v598_v11 = vpop.f32.mrf.mxu2  ;;  %2964 = vmatmul.bf16.gmra.mxu0 %v6980_v61  ;;  %v6284_v29 = vld [vmem:[#allocation8 + $0x454] sm:$0xf] }
 0x15d   :  { %v6985_v47 = vpack.c.bf16 %v1016_v59, %v1010_v35  ;;  %v599_v13 = vadd.f32 %v598_v11, %v6837_v40  ;;  %v6991_v25 = vpop.f32.mrf.mxu0  ;;  %v5497_v59 = vor.u32 %v6284_v29, %v5494_v21  ;;  %3183 = vmatpush.bf16.msrb.mxu1 %v5137_v45  ;;  %v6462_v11 = vld [vmem:[#allocation7] sm:$0x3f]  ;;  %v5686_v29 = vld [vmem:[#allocation8 + $0x5e8] sm:$0xf0] }
 0x15e   :  { %v6996_v53 = vperm.slane %v6462_v11, 4  ;;  %v6999_v4 = vperm.slane %v6462_v11, 5 }
 0x15f   :  { %7946 = vst [vmem:[#allocation43_spill] sm:$0xff] %v6985_v47  ;;  %v647_v6 = vpop.f32.mrf.mxu3  ;;  %3013 = vmatmul.bf16.gmra.mxu1 %v6985_v47  ;;  %v925_v47 = vmul.f32 0.2, %v599_v13  ;;  %vm829_vm8 = vcmp.gt.f32.partialorder %v599_v13, 0.0  ;;  %3225 = vmatpush.bf16.msra.mxu2 %v5497_v59 }
 0x160   :  { %v648_v41 = vadd.f32 %v647_v6, %v6840_v60  ;;  %v6993_v62 = vpop.f32.mrf.mxu1  ;;  %v667_v59 = vadd.f32 %v6814_v8, %v6996_v53  ;;  %v716_v11 = vadd.f32 %v6820_v18, %v6999_v4  ;;  %v6380_v18 = vld [vmem:[#allocation8 + $0x754] sm:$0xf] }
 0x161   :  { %v1021_v21 = vsel %vm829_vm8, %v599_v13, %v925_v47  ;;  %v718_v13 = vadd.f32 %v6844_v44, %v6999_v4 }
 0x162   :  { %v926_v6 = vmul.f32 0.2, %v648_v41  ;;  %vm830_vm9 = vcmp.gt.f32.partialorder %v648_v41, 0.0  ;;  %vm759_vm12 = vcmp.gt.f32.partialorder %v667_v59, 0.0  ;;  %vm760_vm13 = vcmp.gt.f32.partialorder %v716_v11, 0.0 }
 0x163   :  { %vm766_vm15 = vcmp.gt.f32.partialorder %v718_v13, 0.0 }
 0x164   :  { %v600_v35 = vpop.f32.mrf.mxu2  ;;  %v1022_v45 = vsel %vm830_vm9, %v648_v41, %v926_v6 }
 0x165   :  { %v601_v61 = vadd.f32 %v600_v35, %v6837_v40  ;;  %v7016_v41 = vpop.f32.mrf.mxu0 }
 0x167   :  { %v649_v55 = vpop.f32.mrf.mxu3  ;;  %vm835_vm10 = vcmp.gt.f32.partialorder %v601_v61, 0.0  ;;  %v931_v7 = vmul.f32 0.2, %v601_v61 }
 0x168   :  { %v650_v17 = vadd.f32 %v649_v55, %v6840_v60  ;;  %v5689_v55 = vor.u32 %v6332_v63, %v5686_v29  ;;  %v7019_v8 = vpop.f32.mrf.mxu1  ;;  %v862_v63 = vmul.f32 0.2, %v718_v13  ;;  %v6428_v29 = vld [vmem:[#allocation8 + $0x8d4] sm:$0xf] }
 0x169   :  { %v1027_v35 = vsel %vm835_vm10, %v601_v61, %v931_v7  ;;  %2876 = vmatmul.bf16.gmra.mxu2 %v6823_v22  ;;  %v669_v61 = vadd.f32 %v6842_v46, %v6996_v53  ;;  %7949 = vst [vmem:[#allocation46_spill] sm:$0xff] %v7019_v8  ;;  %v5878_v46 = vld [vmem:[#allocation8 + $0x768] sm:$0xf0]  ;;  %v6278_v22 = vld [vmem:[#allocation8 + $0x424] sm:$0xf] }
 0x16a   :  { %vm836_vm11 = vcmp.gt.f32.partialorder %v650_v17, 0.0  ;;  %v932_v12 = vmul.f32 0.2, %v650_v17  ;;  %v7002_v31 = vpack.c.bf16 %v1027_v35, %v1021_v21  ;;  %3274 = vmatpush.bf16.msra.mxu3 %v5689_v55  ;;  %v5881_v21 = vor.u32 %v6380_v18, %v5878_v46  ;;  %v6070_v35 = vld [vmem:[#allocation8 + $0x8e8] sm:$0xf0] }
 0x16b   :  { %v861_v7 = vmul.f32 0.2, %v669_v61  ;;  %vm765_vm14 = vcmp.gt.f32.partialorder %v669_v61, 0.0  ;;  %v958_v50 = vsel %vm766_vm15, %v718_v13, %v862_v63  ;;  %v5473_v8 = vor.u32 %v6278_v22, %v5470_v20  ;;  %v7026_v46 = vld [vmem:[#allocation10] sm:$0x3f] }
 0x16c   :  { %7947 = vst [vmem:[#allocation44_spill] sm:$0xff] %v7002_v31  ;;  %v1028_v39 = vsel %vm836_vm11, %v650_v17, %v932_v12  ;;  %2925 = vmatmul.bf16.gmra.mxu3 %v6828_v26  ;;  %v603_v47 = vpop.f32.mrf.mxu2  ;;  %2969 = vmatmul.bf16.gmra.mxu0 %v7002_v31  ;;  %v856_v17 = vmul.f32 0.2, %v716_v11  ;;  %v6326_v13 = vld [vmem:[#allocation8 + $0x5a4] sm:$0xf] }
 0x16d   :  { %v7007_v23 = vpack.c.bf16 %v1028_v39, %v1022_v45  ;;  %v855_v39 = vmul.f32 0.2, %v667_v59  ;;  %v604_v12 = vadd.f32 %v603_v47, %v6837_v40  ;;  %v6073_v45 = vor.u32 %v6428_v29, %v6070_v35  ;;  %3323 = vmatpush.bf16.msra.mxu0 %v5881_v21  ;;  %3226 = vmatpush.bf16.msra.mxu2 %v5473_v8  ;;  %v5662_v22 = vld [vmem:[#allocation8 + $0x5b8] sm:$0xf0]  ;;  %v6374_v35 = vld [vmem:[#allocation8 + $0x724] sm:$0xf] }
 0x16e   :  { %v957_v31 = vsel %vm765_vm14, %v669_v61, %v861_v7  ;;  %v672_v8 = vadd.f32 %v6851_v19, %v6996_v53  ;;  %v723_v19 = vadd.f32 %v6877_v56, %v6999_v4 }
 0x16f   :  { %7948 = vst [vmem:[#allocation45_spill] sm:$0xff] %v7007_v23  ;;  %v652_v6 = vpop.f32.mrf.mxu3  ;;  %3018 = vmatmul.bf16.gmra.mxu1 %v7007_v23  ;;  %v951_v55 = vsel %vm759_vm12, %v667_v59, %v855_v39  ;;  %v952_v23 = vsel %vm760_vm13, %v716_v11, %v856_v17  ;;  %v937_v49 = vmul.f32 0.2, %v604_v12  ;;  %vm841_vm0 = vcmp.gt.f32.partialorder %v604_v12, 0.0  ;;  %v7030_v11 = vpop.f32.mrf.mxu0 }
 0x170   :  { %v653_v44 = vadd.f32 %v652_v6, %v6840_v60  ;;  %3372 = vmatpush.bf16.msra.mxu1 %v6073_v45  ;;  %v7028_v59 = vpack.c.bf16 %v957_v31, %v951_v55  ;;  %v7032_v39 = vpack.c.bf16 %v958_v50, %v952_v23  ;;  %v7039_v31 = vperm.slane %v7026_v46, 0  ;;  %v5854_v45 = vld [vmem:[#allocation8 + $0x738] sm:$0xf0]  ;;  %v6422_v55 = vld [vmem:[#allocation8 + $0x8a4] sm:$0xf] }
 0x171   :  { %v5665_v17 = vor.u32 %v6326_v13, %v5662_v22  ;;  %vm771_vm4 = vcmp.gt.f32.partialorder %v672_v8, 0.0  ;;  %vm778_vm7 = vcmp.gt.f32.partialorder %v723_v19, 0.0 }
 0x172   :  { %v938_v6 = vmul.f32 0.2, %v653_v44  ;;  %vm842_vm1 = vcmp.gt.f32.partialorder %v653_v44, 0.0  ;;  %7950 = vst [vmem:[#allocation47_spill] sm:$0xff] %v7032_v39 }
 0x173   :  { %3275 = vmatpush.bf16.msra.mxu3 %v5665_v17  ;;  %v6272_v17 = vld [vmem:[#allocation8 + $0x3f4] sm:$0xf] }
 0x174   :  { %v605_v26 = vpop.f32.mrf.mxu2  ;;  %v1034_v50 = vsel %vm842_vm1, %v653_v44, %v938_v6  ;;  %v5857_v6 = vor.u32 %v6374_v35, %v5854_v45 }
 0x175   :  { %v606_v5 = vadd.f32 %v605_v26, %v6837_v40  ;;  %v7034_v26 = vpop.f32.mrf.mxu1  ;;  %v1033_v40 = vsel %vm841_vm0, %v604_v12, %v937_v49  ;;  %v721_v12 = vadd.f32 %v6857_v27, %v6999_v4  ;;  %v874_v27 = vmul.f32 0.2, %v723_v19 }
 0x176   :  { %3324 = vmatpush.bf16.msra.mxu0 %v5857_v6 }
 0x177   :  { %v654_v47 = vpop.f32.mrf.mxu3  ;;  %vm847_vm2 = vcmp.gt.f32.partialorder %v606_v5, 0.0  ;;  %v943_v61 = vmul.f32 0.2, %v606_v5  ;;  %v7058_v13 = vpop.f32.mrf.mxu0  ;;  %vm772_vm6 = vcmp.gt.f32.partialorder %v721_v12, 0.0 }
 0x178   :  { %v655_v18 = vadd.f32 %v654_v47, %v6840_v60 }
 0x179   :  { %v1039_v60 = vsel %vm847_vm2, %v606_v5, %v943_v61  ;;  %3037 = vmatmul.bf16.vlgmr.msrb.gmra.mxu2 %v7028_v59  ;;  %v674_v5 = vadd.f32 %v6875_v28, %v6996_v53  ;;  %v867_v28 = vmul.f32 0.2, %v672_v8  ;;  %v868_v61 = vmul.f32 0.2, %v721_v12 }
 0x17a   :  { %vm848_vm3 = vcmp.gt.f32.partialorder %v655_v18, 0.0  ;;  %v944_v20 = vmul.f32 0.2, %v655_v18  ;;  %v7044_v23 = vpack.c.bf16 %v1039_v60, %v1033_v40 }
 0x17b   :  { %v873_v47 = vmul.f32 0.2, %v674_v5  ;;  %vm777_vm5 = vcmp.gt.f32.partialorder %v674_v5, 0.0  ;;  %v963_v22 = vsel %vm771_vm4, %v672_v8, %v867_v28  ;;  %v679_v28 = vadd.f32 %v6908_v2, %v6996_v53  ;;  %v5830_v2 = vld [vmem:[#allocation8 + $0x708] sm:$0xf0] }
 0x17c   :  { %7951 = vst [vmem:[#allocation48_spill] sm:$0xff] %v7044_v23  ;;  %v1040_v7 = vsel %vm848_vm3, %v655_v18, %v944_v20  ;;  %3086 = vmatmul.bf16.vlgmr.msrb.gmra.mxu3 %v7032_v39  ;;  %v2842_v49 = vpop.f32.mrf.mxu2  ;;  %2974 = vmatmul.bf16.gmra.mxu0 %v7044_v23  ;;  %v6046_v18 = vld [vmem:[#allocation8 + $0x8b8] sm:$0xf0] }
 0x17d   :  { %v7047_v63 = vpack.c.bf16 %v1040_v7, %v1034_v50  ;;  %v2843_v29 = vadd.f32 %v2842_v49, %v7039_v31  ;;  %v6049_v56 = vor.u32 %v6422_v55, %v6046_v18  ;;  %v7060_v20 = vpop.f32.mrf.mxu1  ;;  %v969_v40 = vsel %vm777_vm5, %v674_v5, %v873_v47  ;;  %v5446_v50 = vld [vmem:[#allocation8 + $0x408] sm:$0xf0]  ;;  %v6320_v18 = vld [vmem:[#allocation8 + $0x574] sm:$0xf] }
 0x17e   :  { %v964_v7 = vsel %vm772_vm6, %v721_v12, %v868_v61  ;;  %v970_v49 = vsel %vm778_vm7, %v723_v19, %v874_v27  ;;  %v5449_v35 = vor.u32 %v6272_v17, %v5446_v50  ;;  %v7064_v45 = vpack.c.bf16 %v969_v40, %v963_v22  ;;  %v6368_v40 = vld [vmem:[#allocation8 + $0x6f4] sm:$0xf] }
 0x17f   :  { %7952 = vst [vmem:[#allocation49_spill] sm:$0xff] %v7047_v63  ;;  %v2891_v44 = vpop.f32.mrf.mxu3  ;;  %3023 = vmatmul.bf16.gmra.mxu1 %v7047_v63  ;;  %v5638_v63 = vld [vmem:[#allocation8 + $0x588] sm:$0xf0]  ;;  %v7066_v6 = vpack.c.bf16 %v970_v49, %v964_v7  ;;  %v677_v5 = vadd.f32 %v6884_v42, %v6996_v53  ;;  %v728_v27 = vadd.f32 %v6910_v32, %v6999_v4  ;;  %v885_v50 = vmul.f32 0.2, %v679_v28 }
 0x180   :  { %v2892_v21 = vadd.f32 %v2891_v44, %v2843_v29  ;;  %3373 = vmatpush.bf16.msra.mxu1 %v6049_v56  ;;  %7953 = vst [vmem:[#allocation50_spill] sm:$0xff] %v7064_v45  ;;  %3227 = vmatpush.bf16.msra.mxu2 %v5449_v35  ;;  %v5641_v56 = vor.u32 %v6320_v18, %v5638_v63  ;;  %v6022_v49 = vld [vmem:[#allocation8 + $0x888] sm:$0xf0]  ;;  %vm789_vm9 = vcmp.gt.f32.partialorder %v679_v28, 0.0 }
 0x181   :  { %7954 = vst [vmem:[#allocation51_spill] sm:$0xff] %v7066_v6  ;;  %v726_v63 = vadd.f32 %v6890_v48, %v6999_v4  ;;  %vm783_vm8 = vcmp.gt.f32.partialorder %v677_v5, 0.0  ;;  %v879_v17 = vmul.f32 0.2, %v677_v5  ;;  %v5833_v7 = vor.u32 %v6368_v40, %v5830_v2 }
 0x182   :  { %3276 = vmatpush.bf16.msra.mxu3 %v5641_v56  ;;  %v886_v48 = vmul.f32 0.2, %v728_v27  ;;  %vm790_vm11 = vcmp.gt.f32.partialorder %v728_v27, 0.0 }
 0x183   :  { %vm784_vm10 = vcmp.gt.f32.partialorder %v726_v63, 0.0  ;;  %3325 = vmatpush.bf16.msra.mxu0 %v5833_v7  ;;  %v975_v56 = vsel %vm783_vm8, %v677_v5, %v879_v17  ;;  %v6314_v7 = vld [vmem:[#allocation8 + $0x544] sm:$0xf] }
 0x184   :  { %v2844_v60 = vpop.f32.mrf.mxu2  ;;  %v982_v40 = vsel %vm790_vm11, %v728_v27, %v886_v48  ;;  %v731_v48 = vadd.f32 %v6923_v1, %v6999_v4 }
 0x185   :  { %v2845_v29 = vadd.f32 %v2844_v60, %v7039_v31  ;;  %v6416_v60 = vld [vmem:[#allocation8 + $0x874] sm:$0xf] }
 0x186   :  { %v6025_v35 = vor.u32 %v6416_v60, %v6022_v49  ;;  %vm796_vm14 = vcmp.gt.f32.partialorder %v731_v48, 0.0 }
 0x187   :  { %v2893_v44 = vpop.f32.mrf.mxu3 }
 0x188   :  { %v2894_v55 = vadd.f32 %v2893_v44, %v2845_v29  ;;  %v880_v29 = vmul.f32 0.2, %v726_v63  ;;  %3374 = vmatpush.bf16.msra.mxu1 %v6025_v35 }
 0x189   :  { %v2940_v8 = vpop.f32.mrf.mxu0  ;;  %3042 = vmatmul.bf16.gmra.mxu2 %v7064_v45 }
 0x18a   :  { %v2941_v12 = vadd.f32 %v2940_v8, %v2892_v21  ;;  %v981_v8 = vsel %vm789_vm9, %v679_v28, %v885_v50 }
 0x18b   :  { %v7087_v49 = vpack.c.bf16 %v981_v8, %v975_v56  ;;  %v6362_v56 = vld [vmem:[#allocation8 + $0x6c4] sm:$0xf] }
 0x18c   :  { %v2989_v19 = vpop.f32.mrf.mxu1  ;;  %3091 = vmatmul.bf16.gmra.mxu3 %v7066_v6  ;;  %v2847_v61 = vpop.f32.mrf.mxu2  ;;  %3135 = vmatmul.bf16.vlgmr.msrb.gmra.mxu0 %v6816_v9  ;;  %v6410_v8 = vld [vmem:[#allocation8 + $0x844] sm:$0xf] }
 0x18d   :  { %v7074_v47 = vadd.f32 %v2989_v19, %v2941_v12  ;;  %v2848_v42 = vadd.f32 %v2847_v61, %v7039_v31  ;;  %v6266_v61 = vld [vmem:[#allocation8 + $0x3c4] sm:$0xf]  ;;  %7955 = vst [vmem:[#allocation52_spill] sm:$0xff] %v7087_v49 }
 0x18f   :  { %v2896_v21 = vpop.f32.mrf.mxu3  ;;  %3184 = vmatmul.bf16.vlgmr.msrb.gmra.mxu1 %v6818_v16 }
 0x190   :  { %v2897_v22 = vadd.f32 %v2896_v21, %v2848_v42  ;;  %v5422_v42 = vld [vmem:[#allocation8 + $0x3d8] sm:$0xf0]  ;;  %v976_v21 = vsel %vm784_vm10, %v726_v63, %v880_v29  ;;  %v682_v63 = vadd.f32 %v6919_v58, %v6996_v53 }
 0x191   :  { %v2942_v44 = vpop.f32.mrf.mxu0  ;;  %v5425_v60 = vor.u32 %v6266_v61, %v5422_v42  ;;  %v7089_v35 = vpack.c.bf16 %v982_v40, %v976_v21  ;;  %v5998_v21 = vld [vmem:[#allocation8 + $0x858] sm:$0xf0]  ;;  %v892_v40 = vmul.f32 0.2, %v731_v48 }
 0x192   :  { %v2943_v32 = vadd.f32 %v2942_v44, %v2894_v55  ;;  %v5614_v44 = vld [vmem:[#allocation8 + $0x558] sm:$0xf0]  ;;  %vm795_vm12 = vcmp.gt.f32.partialorder %v682_v63, 0.0 }
 0x193   :  { %3228 = vmatpush.bf16.msra.mxu2 %v5425_v60  ;;  %7956 = vst [vmem:[#allocation53_spill] sm:$0xff] %v7089_v35  ;;  %v5617_v5 = vor.u32 %v6314_v7, %v5614_v44  ;;  %v6001_v60 = vor.u32 %v6410_v8, %v5998_v21 }
 0x194   :  { %v2991_v18 = vpop.f32.mrf.mxu1  ;;  %v2849_v19 = vpop.f32.mrf.mxu2 }
 0x195   :  { %v7084_v12 = vadd.f32 %v2991_v18, %v2943_v32  ;;  %v2850_v2 = vadd.f32 %v2849_v19, %v7039_v31  ;;  %3277 = vmatpush.bf16.msra.mxu3 %v5617_v5  ;;  %v733_v32 = vadd.f32 %v6937_v34, %v6999_v4  ;;  %v891_v19 = vmul.f32 0.2, %v682_v63  ;;  %3375 = vmatpush.bf16.msra.mxu1 %v6001_v60 }
 0x197   :  { %v2898_v16 = vpop.f32.mrf.mxu3  ;;  %v898_v1 = vmul.f32 0.2, %v733_v32  ;;  %vm802_vm15 = vcmp.gt.f32.partialorder %v733_v32, 0.0  ;;  %v987_v44 = vsel %vm795_vm12, %v682_v63, %v891_v19 }
 0x198   :  { %v2899_v55 = vadd.f32 %v2898_v16, %v2850_v2  ;;  %v684_v16 = vadd.f32 %v6934_v33, %v6996_v53  ;;  %v5806_v33 = vld [vmem:[#allocation8 + $0x6d8] sm:$0xf0] }
 0x199   :  { %v2945_v28 = vpop.f32.mrf.mxu0  ;;  %3047 = vmatmul.bf16.gmra.mxu2 %v7087_v49  ;;  %v5809_v42 = vor.u32 %v6362_v56, %v5806_v33 }
 0x19a   :  { %v2946_v27 = vadd.f32 %v2945_v28, %v2897_v22  ;;  %v897_v61 = vmul.f32 0.2, %v684_v16  ;;  %vm801_vm13 = vcmp.gt.f32.partialorder %v684_v16, 0.0 }
 0x19b   :  { %3326 = vmatpush.bf16.msra.mxu0 %v5809_v42  ;;  %v6308_v42 = vld [vmem:[#allocation8 + $0x514] sm:$0xf] }
 0x19c   :  { %v2994_v17 = vpop.f32.mrf.mxu1  ;;  %3096 = vmatmul.bf16.gmra.mxu3 %v7089_v35  ;;  %v2852_v29 = vpop.f32.mrf.mxu2  ;;  %3140 = vmatmul.bf16.gmra.mxu0 %v6853_v38  ;;  %v993_v5 = vsel %vm801_vm13, %v684_v16, %v897_v61  ;;  %v689_v61 = vadd.f32 %v6956_v10, %v6996_v53  ;;  %v5782_v10 = vld [vmem:[#allocation8 + $0x6a8] sm:$0xf0] }
 0x19d   :  { %v7097_v50 = vadd.f32 %v2994_v17, %v2946_v27  ;;  %v2853_v58 = vadd.f32 %v2852_v29, %v7039_v31  ;;  %v6260_v17 = vld [vmem:[#allocation8 + $0x394] sm:$0xf]  ;;  %v5398_v29 = vld [vmem:[#allocation8 + $0x3a8] sm:$0xf0]  ;;  %v7110_v21 = vpack.c.bf16 %v993_v5, %v987_v44 }
 0x19e   :  { %v5401_v8 = vor.u32 %v6260_v17, %v5398_v29  ;;  %v6356_v5 = vld [vmem:[#allocation8 + $0x694] sm:$0xf]  ;;  %v909_v29 = vmul.f32 0.2, %v689_v61  ;;  %vm813_vm1 = vcmp.gt.f32.partialorder %v689_v61, 0.0 }
 0x19f   :  { %v2901_v22 = vpop.f32.mrf.mxu3  ;;  %3189 = vmatmul.bf16.gmra.mxu1 %v6855_v24  ;;  %7957 = vst [vmem:[#allocation54_spill] sm:$0xff] %v7110_v21 }
 0x1a0   :  { %v2902_v18 = vadd.f32 %v2901_v22, %v2853_v58  ;;  %v988_v58 = vsel %vm796_vm14, %v731_v48, %v892_v40  ;;  %v994_v22 = vsel %vm802_vm15, %v733_v32, %v898_v1  ;;  %3229 = vmatpush.bf16.msra.mxu2 %v5401_v8  ;;  %v687_v48 = vadd.f32 %v6947_v36, %v6996_v53 }
 0x1a1   :  { %v2947_v2 = vpop.f32.mrf.mxu0  ;;  %v7112_v60 = vpack.c.bf16 %v994_v22, %v988_v58  ;;  %v5785_v58 = vor.u32 %v6356_v5, %v5782_v10  ;;  %v5974_v22 = vld [vmem:[#allocation8 + $0x828] sm:$0xf0] }
 0x1a2   :  { %v2948_v34 = vadd.f32 %v2947_v2, %v2899_v55  ;;  %v5590_v2 = vld [vmem:[#allocation8 + $0x528] sm:$0xf0]  ;;  %vm807_vm0 = vcmp.gt.f32.partialorder %v687_v48, 0.0  ;;  %v903_v17 = vmul.f32 0.2, %v687_v48 }
 0x1a3   :  { %7958 = vst [vmem:[#allocation55_spill] sm:$0xff] %v7112_v60  ;;  %v5593_v63 = vor.u32 %v6308_v42, %v5590_v2  ;;  %3327 = vmatpush.bf16.msra.mxu0 %v5785_v58  ;;  %v6302_v58 = vld [vmem:[#allocation8 + $0x4e4] sm:$0xf] }
 0x1a4   :  { %v2996_v7 = vpop.f32.mrf.mxu1  ;;  %v2854_v27 = vpop.f32.mrf.mxu2  ;;  %v999_v2 = vsel %vm807_vm0, %v687_v48, %v903_v17 }
 0x1a5   :  { %v7107_v28 = vadd.f32 %v2996_v7, %v2948_v34  ;;  %v2855_v56 = vadd.f32 %v2854_v27, %v7039_v31  ;;  %3278 = vmatpush.bf16.msra.mxu3 %v5593_v63  ;;  %v736_v34 = vadd.f32 %v6950_v15, %v6999_v4  ;;  %v738_v7 = vadd.f32 %v6959_v52, %v6999_v4  ;;  %v6404_v27 = vld [vmem:[#allocation8 + $0x814] sm:$0xf] }
 0x1a6   :  { %v5977_v8 = vor.u32 %v6404_v27, %v5974_v22  ;;  %v1005_v63 = vsel %vm813_vm1, %v689_v61, %v909_v29  ;;  %v694_v29 = vadd.f32 %v6977_v0, %v6996_v53  ;;  %v5758_v0 = vld [vmem:[#allocation8 + $0x678] sm:$0xf0] }
 0x1a7   :  { %v2903_v33 = vpop.f32.mrf.mxu3  ;;  %v910_v15 = vmul.f32 0.2, %v738_v7  ;;  %vm808_vm2 = vcmp.gt.f32.partialorder %v736_v34, 0.0  ;;  %vm814_vm3 = vcmp.gt.f32.partialorder %v738_v7, 0.0  ;;  %v7133_v22 = vpack.c.bf16 %v1005_v63, %v999_v2  ;;  %v6350_v63 = vld [vmem:[#allocation8 + $0x664] sm:$0xf] }
 0x1a8   :  { %v2904_v55 = vadd.f32 %v2903_v33, %v2855_v56  ;;  %v904_v56 = vmul.f32 0.2, %v736_v34  ;;  %3376 = vmatpush.bf16.msra.mxu1 %v5977_v8  ;;  %vm825_vm5 = vcmp.gt.f32.partialorder %v694_v29, 0.0 }
 0x1a9   :  { %v2950_v16 = vpop.f32.mrf.mxu0  ;;  %3052 = vmatmul.bf16.gmra.mxu2 %v7110_v21  ;;  %7959 = vst [vmem:[#allocation56_spill] sm:$0xff] %v7133_v22 }
 0x1aa   :  { %v2951_v32 = vadd.f32 %v2950_v16, %v2902_v18 }
 0x1ac   :  { %v2999_v19 = vpop.f32.mrf.mxu1  ;;  %3101 = vmatmul.bf16.gmra.mxu3 %v7112_v60  ;;  %v2857_v1 = vpop.f32.mrf.mxu2  ;;  %3145 = vmatmul.bf16.gmra.mxu0 %v6886_v30 }
 0x1ad   :  { %v7120_v40 = vadd.f32 %v2999_v19, %v2951_v32  ;;  %v2858_v36 = vadd.f32 %v2857_v1, %v7039_v31  ;;  %v6254_v19 = vld [vmem:[#allocation8 + $0x364] sm:$0xf]  ;;  %v5374_v1 = vld [vmem:[#allocation8 + $0x378] sm:$0xf0] }
 0x1ae   :  { %v5377_v27 = vor.u32 %v6254_v19, %v5374_v1  ;;  %v921_v1 = vmul.f32 0.2, %v694_v29 }
 0x1af   :  { %v2906_v18 = vpop.f32.mrf.mxu3  ;;  %3194 = vmatmul.bf16.gmra.mxu1 %v6888_v14 }
 0x1b0   :  { %v2907_v44 = vadd.f32 %v2906_v18, %v2858_v36  ;;  %v1000_v36 = vsel %vm808_vm2, %v736_v34, %v904_v56  ;;  %v1006_v18 = vsel %vm814_vm3, %v738_v7, %v910_v15  ;;  %3230 = vmatpush.bf16.msra.mxu2 %v5377_v27  ;;  %v692_v34 = vadd.f32 %v6969_v43, %v6996_v53 }
 0x1b1   :  { %v2952_v33 = vpop.f32.mrf.mxu0  ;;  %v7135_v8 = vpack.c.bf16 %v1006_v18, %v1000_v36  ;;  %v5761_v36 = vor.u32 %v6350_v63, %v5758_v0  ;;  %v5950_v18 = vld [vmem:[#allocation8 + $0x7f8] sm:$0xf0] }
 0x1b2   :  { %v2953_v52 = vadd.f32 %v2952_v33, %v2904_v55  ;;  %v5566_v33 = vld [vmem:[#allocation8 + $0x4f8] sm:$0xf0]  ;;  %vm819_vm4 = vcmp.gt.f32.partialorder %v692_v34, 0.0  ;;  %v915_v19 = vmul.f32 0.2, %v692_v34 }
 0x1b3   :  { %7960 = vst [vmem:[#allocation57_spill] sm:$0xff] %v7135_v8  ;;  %v5569_v48 = vor.u32 %v6302_v58, %v5566_v33  ;;  %3328 = vmatpush.bf16.msra.mxu0 %v5761_v36  ;;  %v6296_v36 = vld [vmem:[#allocation8 + $0x4b4] sm:$0xf] }
 0x1b4   :  { %v3001_v42 = vpop.f32.mrf.mxu1  ;;  %v2859_v32 = vpop.f32.mrf.mxu2  ;;  %v1011_v33 = vsel %vm819_vm4, %v692_v34, %v915_v19 }
 0x1b5   :  { %v7130_v16 = vadd.f32 %v3001_v42, %v2953_v52  ;;  %v2860_v5 = vadd.f32 %v2859_v32, %v7039_v31  ;;  %3279 = vmatpush.bf16.msra.mxu3 %v5569_v48  ;;  %v741_v52 = vadd.f32 %v6971_v37, %v6999_v4  ;;  %v743_v42 = vadd.f32 %v6982_v51, %v6999_v4  ;;  %v6398_v32 = vld [vmem:[#allocation8 + $0x7e4] sm:$0xf] }
 0x1b6   :  { %v5953_v27 = vor.u32 %v6398_v32, %v5950_v18  ;;  %v1017_v48 = vsel %vm825_vm5, %v694_v29, %v921_v1  ;;  %v699_v1 = vadd.f32 %v7016_v41, %v6996_v53  ;;  %v5734_v41 = vld [vmem:[#allocation8 + $0x648] sm:$0xf0] }
 0x1b7   :  { %v2908_v10 = vpop.f32.mrf.mxu3  ;;  %v922_v37 = vmul.f32 0.2, %v743_v42  ;;  %vm820_vm6 = vcmp.gt.f32.partialorder %v741_v52, 0.0  ;;  %vm826_vm7 = vcmp.gt.f32.partialorder %v743_v42, 0.0  ;;  %v7156_v18 = vpack.c.bf16 %v1017_v48, %v1011_v33  ;;  %v7964_v48 = vld [vmem:[#allocation17_spill] sm:$0xff] }
 0x1b8   :  { %v2909_v55 = vadd.f32 %v2908_v10, %v2860_v5  ;;  %v916_v5 = vmul.f32 0.2, %v741_v52  ;;  %3377 = vmatpush.bf16.msra.mxu1 %v5953_v27  ;;  %vm837_vm9 = vcmp.gt.f32.partialorder %v699_v1, 0.0 }
 0x1b9   :  { %v2955_v61 = vpop.f32.mrf.mxu0  ;;  %3057 = vmatmul.bf16.gmra.mxu2 %v7133_v22  ;;  %7961 = vst [vmem:[#allocation58_spill] sm:$0xff] %v7156_v18 }
 0x1ba   :  { %v2956_v7 = vadd.f32 %v2955_v61, %v2907_v44 }
 0x1bc   :  { %v3004_v17 = vpop.f32.mrf.mxu1  ;;  %3106 = vmatmul.bf16.gmra.mxu3 %v7135_v8  ;;  %v2862_v15 = vpop.f32.mrf.mxu2  ;;  %3150 = vmatmul.bf16.gmra.mxu0 %v6917_v54 }
 0x1bd   :  { %v7143_v56 = vadd.f32 %v3004_v17, %v2956_v7  ;;  %v2863_v43 = vadd.f32 %v2862_v15, %v7039_v31  ;;  %v6248_v17 = vld [vmem:[#allocation8 + $0x334] sm:$0xf]  ;;  %v5350_v15 = vld [vmem:[#allocation8 + $0x348] sm:$0xf0] }
 0x1be   :  { %v5353_v32 = vor.u32 %v6248_v17, %v5350_v15  ;;  %v6344_v17 = vld [vmem:[#allocation8 + $0x634] sm:$0xf] }
 0x1bf   :  { %v2911_v44 = vpop.f32.mrf.mxu3  ;;  %3199 = vmatmul.bf16.gmra.mxu1 %v6921_v57  ;;  %v6392_v15 = vld [vmem:[#allocation8 + $0x7b4] sm:$0xf]  ;;  %v5518_v57 = vld [vmem:[#allocation8 + $0x498] sm:$0xf0] }
 0x1c0   :  { %v2912_v2 = vadd.f32 %v2911_v44, %v2863_v43  ;;  %v1012_v43 = vsel %vm820_vm6, %v741_v52, %v916_v5  ;;  %v1018_v44 = vsel %vm826_vm7, %v743_v42, %v922_v37  ;;  %3231 = vmatpush.bf16.msra.mxu2 %v5353_v32  ;;  %v697_v52 = vadd.f32 %v6991_v25, %v6996_v53 }
 0x1c1   :  { %v2957_v10 = vpop.f32.mrf.mxu0  ;;  %v7158_v27 = vpack.c.bf16 %v1018_v44, %v1012_v43  ;;  %v933_v44 = vmul.f32 0.2, %v699_v1 }
 0x1c2   :  { %v2958_v51 = vadd.f32 %v2957_v10, %v2909_v55  ;;  %v5542_v10 = vld [vmem:[#allocation8 + $0x4c8] sm:$0xf0]  ;;  %vm831_vm8 = vcmp.gt.f32.partialorder %v697_v52, 0.0  ;;  %v927_v43 = vmul.f32 0.2, %v697_v52 }
 0x1c3   :  { %7962 = vst [vmem:[#allocation59_spill] sm:$0xff] %v7158_v27  ;;  %v5545_v34 = vor.u32 %v6296_v36, %v5542_v10 }
 0x1c4   :  { %v3006_v58 = vpop.f32.mrf.mxu1  ;;  %v2864_v7 = vpop.f32.mrf.mxu2 }
 0x1c5   :  { %v7153_v61 = vadd.f32 %v3006_v58, %v2958_v51  ;;  %v2865_v63 = vadd.f32 %v2864_v7, %v7039_v31  ;;  %3280 = vmatpush.bf16.msra.mxu3 %v5545_v34  ;;  %v746_v51 = vadd.f32 %v6993_v62, %v6999_v4  ;;  %v7963_v58 = vld [vmem:[#allocation46_spill] sm:$0xff] }
 0x1c6   :  { %v748_v33 = vadd.f32 %v7963_v58, %v6999_v4 }
 0x1c7   :  { %v2913_v0 = vpop.f32.mrf.mxu3  ;;  %v928_v32 = vmul.f32 0.2, %v746_v51  ;;  %vm832_vm10 = vcmp.gt.f32.partialorder %v746_v51, 0.0 }
 0x1c8   :  { %v2914_v55 = vadd.f32 %v2913_v0, %v2865_v63  ;;  %v5737_v63 = vor.u32 %v6344_v17, %v5734_v41  ;;  %v5926_v0 = vld [vmem:[#allocation8 + $0x7c8] sm:$0xf0]  ;;  %v934_v62 = vmul.f32 0.2, %v748_v33  ;;  %vm838_vm11 = vcmp.gt.f32.partialorder %v748_v33, 0.0 }
 0x1c9   :  { %v2960_v29 = vpop.f32.mrf.mxu0  ;;  %3062 = vmatmul.bf16.gmra.mxu2 %v7156_v18  ;;  %v5929_v10 = vor.u32 %v6392_v15, %v5926_v0  ;;  %v6290_v17 = vld [vmem:[#allocation8 + $0x484] sm:$0xf]  ;;  %v1024_v41 = vsel %vm832_vm10, %v746_v51, %v928_v32  ;;  %v702_v51 = vadd.f32 %v7030_v11, %v6996_v53 }
 0x1ca   :  { %v2961_v42 = vadd.f32 %v2960_v29, %v2912_v2  ;;  %3329 = vmatpush.bf16.msra.mxu0 %v5737_v63 }
 0x1cb   :  { %3378 = vmatpush.bf16.msra.mxu1 %v5929_v10  ;;  %v939_v11 = vmul.f32 0.2, %v702_v51  ;;  %vm843_vm12 = vcmp.gt.f32.partialorder %v702_v51, 0.0 }
 0x1cc   :  { %v3009_v19 = vpop.f32.mrf.mxu1  ;;  %3111 = vmatmul.bf16.gmra.mxu3 %v7158_v27  ;;  %v2867_v37 = vpop.f32.mrf.mxu2  ;;  %3155 = vmatmul.bf16.gmra.mxu0 %v6752_v3 }
 0x1cd   :  { %v7166_v5 = vadd.f32 %v3009_v19, %v2961_v42  ;;  %v2868_v25 = vadd.f32 %v2867_v37, %v7039_v31  ;;  %v1023_v42 = vsel %vm831_vm8, %v697_v52, %v927_v43  ;;  %v1029_v19 = vsel %vm837_vm9, %v699_v1, %v933_v44 }
 0x1cf   :  { %v2916_v2 = vpop.f32.mrf.mxu3  ;;  %3204 = vmatmul.bf16.gmra.mxu1 %v7964_v48  ;;  %v1030_v48 = vsel %vm838_vm11, %v748_v33, %v934_v62  ;;  %v753_v33 = vadd.f32 %v7060_v20, %v6999_v4  ;;  %v7967_v62 = vld [vmem:[#allocation18_spill] sm:$0xff]  ;;  %v6386_v20 = vld [vmem:[#allocation8 + $0x784] sm:$0xf] }
 0x1d0   :  { %v2917_v7 = vadd.f32 %v2916_v2, %v2868_v25  ;;  %v6242_v25 = vld [vmem:[#allocation8 + $0x304] sm:$0xf]  ;;  %v5326_v2 = vld [vmem:[#allocation8 + $0x318] sm:$0xf0]  ;;  %v7181_v52 = vpack.c.bf16 %v1030_v48, %v1024_v41 }
 0x1d1   :  { %v2962_v36 = vpop.f32.mrf.mxu0  ;;  %v5329_v0 = vor.u32 %v6242_v25, %v5326_v2  ;;  %vm850_vm15 = vcmp.gt.f32.partialorder %v753_v33, 0.0 }
 0x1d2   :  { %v2963_v34 = vadd.f32 %v2962_v36, %v2914_v55  ;;  %v5521_v55 = vor.u32 %v6290_v17, %v5518_v57  ;;  %v7179_v36 = vpack.c.bf16 %v1029_v19, %v1023_v42  ;;  %7966 = vst [vmem:[#allocation60_spill] sm:$0xff] %v7181_v52  ;;  %v751_v57 = vadd.f32 %v7034_v26, %v6999_v4  ;;  %v6338_v19 = vld [vmem:[#allocation8 + $0x604] sm:$0xf]  ;;  %v5710_v4 = vld [vmem:[#allocation8 + $0x618] sm:$0xf0] }
 0x1d3   :  { %3232 = vmatpush.bf16.msra.mxu2 %v5329_v0  ;;  %v5713_v2 = vor.u32 %v6338_v19, %v5710_v4  ;;  %v5902_v17 = vld [vmem:[#allocation8 + $0x798] sm:$0xf0] }
 0x1d4   :  { %v3011_v29 = vpop.f32.mrf.mxu1  ;;  %v2869_v58 = vpop.f32.mrf.mxu2  ;;  %7965 = vst [vmem:[#allocation46_spill] sm:$0xff] %v7179_v36  ;;  %3281 = vmatpush.bf16.msra.mxu3 %v5521_v55  ;;  %vm844_vm14 = vcmp.gt.f32.partialorder %v751_v57, 0.0  ;;  %v5905_v41 = vor.u32 %v6386_v20, %v5902_v17  ;;  %v7972_v20 = vld [vmem:[#allocation21_spill] sm:$0xff] }
 0x1d5   :  { %v7176_v37 = vadd.f32 %v3011_v29, %v2963_v34  ;;  %v2870_v3 = vadd.f32 %v2869_v58, %v7039_v31  ;;  %v7968_v34 = vld [vmem:[#allocation19_spill] sm:$0xff]  ;;  %v940_v29 = vmul.f32 0.2, %v751_v57  ;;  %3330 = vmatpush.bf16.msra.mxu0 %v5713_v2  ;;  %v5500_v2 = vld [vmem:[#allocation8 + $0x458] sm:$0xf] }
 0x1d6   :  { %3379 = vmatpush.bf16.msra.mxu1 %v5905_v41  ;;  %v6288_v17 = vld [vmem:[#allocation8 + $0x46c] sm:$0xf0] }
 0x1d7   :  { %v2918_v15 = vpop.f32.mrf.mxu3 }
 0x1d8   :  { %v2919_v63 = vadd.f32 %v2918_v15, %v2870_v3  ;;  %v704_v3 = vadd.f32 %v7058_v13, %v6996_v53  ;;  %v946_v53 = vmul.f32 0.2, %v753_v33  ;;  %v1035_v15 = vsel %vm843_vm12, %v702_v51, %v939_v11  ;;  %v6240_v11 = vld [vmem:[#allocation8 + $0x2ec] sm:$0xf0] }
 0x1d9   :  { %v2965_v1 = vpop.f32.mrf.mxu0  ;;  %3067 = vmatmul.bf16.gmra.mxu2 %v7179_v36 }
 0x1da   :  { %v2966_v43 = vadd.f32 %v2965_v1, %v2917_v7  ;;  %vm849_vm13 = vcmp.gt.f32.partialorder %v704_v3, 0.0  ;;  %v945_v26 = vmul.f32 0.2, %v704_v3 }
 0x1dc   :  { %v3014_v44 = vpop.f32.mrf.mxu1  ;;  %3116 = vmatmul.bf16.gmra.mxu3 %v7181_v52  ;;  %v2872_v32 = vpop.f32.mrf.mxu2  ;;  %3160 = vmatmul.bf16.gmra.mxu0 %v7967_v62  ;;  %v1041_v0 = vsel %vm849_vm13, %v704_v3, %v945_v26  ;;  %v5308_v3 = vld [vmem:[#allocation8 + $0x2d8] sm:$0xf] }
 0x1dd   :  { %v7193_v48 = vadd.f32 %v3014_v44, %v2966_v43  ;;  %v2873_v7 = vadd.f32 %v2872_v32, %v7039_v31  ;;  %v5116_v43 = vld [vmem:[#allocation8 + $0x158] sm:$0xf]  ;;  %v6192_v44 = vld [vmem:[#allocation8 + $0x16c] sm:$0xf0]  ;;  %v1036_v32 = vsel %vm844_vm14, %v751_v57, %v940_v29  ;;  %v5309_v57 = vor.u32 %v6240_v11, %v5308_v3 }
 0x1de   :  { %v5117_v62 = vor.u32 %v6192_v44, %v5116_v43 }
 0x1df   :  { %v2921_v10 = vpop.f32.mrf.mxu3  ;;  %3209 = vmatmul.bf16.gmra.mxu1 %v7968_v34  ;;  %3470 = vmatpush.bf16.msrb.mxu3 %v5309_v57  ;;  %v7973_v57 = vld [vmem:[#allocation28_spill] sm:$0xff] }
 0x1e0   :  { %v2922_v42 = vadd.f32 %v2921_v10, %v2873_v7  ;;  %v1042_v7 = vsel %vm850_vm15, %v753_v33, %v946_v53  ;;  %3421 = vmatpush.bf16.msrb.mxu2 %v5117_v62  ;;  %v7971_v53 = vld [vmem:[#allocation20_spill] sm:$0xff] }
 0x1e1   :  { %v2967_v13 = vpop.f32.mrf.mxu0  ;;  %v7203_v19 = vpack.c.bf16 %v1042_v7, %v1036_v32  ;;  %v5092_v7 = vld [vmem:[#allocation8 + $0x128] sm:$0xf] }
 0x1e2   :  { %v2968_v58 = vadd.f32 %v2967_v13, %v2919_v63  ;;  %v7201_v63 = vpack.c.bf16 %v1041_v0, %v1035_v15  ;;  %v5501_v0 = vor.u32 %v6288_v17, %v5500_v2 }
 0x1e3   :  { %7970 = vst [vmem:[#allocation62_spill] sm:$0xff] %v7203_v19 }
 0x1e4   :  { %v3016_v25 = vpop.f32.mrf.mxu1  ;;  %v2874_v1 = vpop.f32.mrf.mxu2  ;;  %7969 = vst [vmem:[#allocation61_spill] sm:$0xff] %v7201_v63  ;;  %3519 = vmatpush.bf16.msrb.mxu0 %v5501_v0  ;;  %v7976_v0 = vld [vmem:[#allocation25_spill] sm:$0xff] }
 0x1e5   :  { %v7198_v55 = vadd.f32 %v3016_v25, %v2968_v58  ;;  %v2875_v10 = vadd.f32 %v2874_v1, %v7039_v31  ;;  %v6336_v1 = vld [vmem:[#allocation8 + $0x5ec] sm:$0xf0] }
 0x1e7   :  { %v2923_v34 = vpop.f32.mrf.mxu3 }
 0x1e8   :  { %v2924_v13 = vadd.f32 %v2923_v34, %v2875_v10  ;;  %v6186_v10 = vld [vmem:[#allocation8 + $0x13c] sm:$0xf0] }
 0x1e9   :  { %v2970_v51 = vpop.f32.mrf.mxu0  ;;  %3072 = vmatmul.bf16.gmra.mxu2 %v7201_v63  ;;  %v5093_v11 = vor.u32 %v6186_v10, %v5092_v7 }
 0x1ea   :  { %v2971_v26 = vadd.f32 %v2970_v51, %v2922_v42  ;;  %v5692_v42 = vld [vmem:[#allocation8 + $0x5d8] sm:$0xf] }
 0x1eb   :  { %v5693_v43 = vor.u32 %v6336_v1, %v5692_v42  ;;  %3422 = vmatpush.bf16.msrb.mxu2 %v5093_v11  ;;  %v6330_v11 = vld [vmem:[#allocation8 + $0x5bc] sm:$0xf0] }
 0x1ec   :  { %v3019_v4 = vpop.f32.mrf.mxu1  ;;  %3121 = vmatmul.bf16.gmra.mxu3 %v7203_v19  ;;  %v2877_v29 = vpop.f32.mrf.mxu2  ;;  %3165 = vmatmul.bf16.gmra.mxu0 %v7971_v53 }
 0x1ed   :  { %v7207_v33 = vadd.f32 %v3019_v4, %v2971_v26  ;;  %v2878_v62 = vadd.f32 %v2877_v29, %v7039_v31  ;;  %3568 = vmatpush.bf16.msrb.mxu1 %v5693_v43  ;;  %v6234_v29 = vld [vmem:[#allocation8 + $0x2bc] sm:$0xf0] }
 0x1ef   :  { %v2926_v34 = vpop.f32.mrf.mxu3  ;;  %3214 = vmatmul.bf16.gmra.mxu1 %v7972_v20 }
 0x1f0   :  { %v2927_v58 = vadd.f32 %v2926_v34, %v2878_v62 }
 0x1f1   :  { %v2972_v25 = vpop.f32.mrf.mxu0 }
 0x1f2   :  { %v2973_v41 = vadd.f32 %v2972_v25, %v2924_v13  ;;  %v5284_v13 = vld [vmem:[#allocation8 + $0x2a8] sm:$0xf]  ;;  %v7974_v25 = vld [vmem:[#allocation29_spill] sm:$0xff] }
 0x1f3   :  { %v5285_v2 = vor.u32 %v6234_v29, %v5284_v13 }
 0x1f4   :  { %v3021_v15 = vpop.f32.mrf.mxu1  ;;  %v2879_v32 = vpop.f32.mrf.mxu2 }
 0x1f5   :  { %v7212_v44 = vadd.f32 %v3021_v15, %v2973_v41  ;;  %v2880_v51 = vadd.f32 %v2879_v32, %v7039_v31  ;;  %v7975_v41 = vld [vmem:[#allocation24_spill] sm:$0xff]  ;;  %3471 = vmatpush.bf16.msrb.mxu3 %v5285_v2 }
 0x1f6   :  { %v5476_v32 = vld [vmem:[#allocation8 + $0x428] sm:$0xf] }
 0x1f7   :  { %v2928_v3 = vpop.f32.mrf.mxu3 }
 0x1f8   :  { %v2929_v26 = vadd.f32 %v2928_v3, %v2880_v51  ;;  %v5668_v3 = vld [vmem:[#allocation8 + $0x5a8] sm:$0xf] }
 0x1f9   :  { %v2975_v4 = vpop.f32.mrf.mxu0  ;;  %3233 = vmatmul.bf16.vlgmr.msra.gmra.mxu2 %v7973_v57 }
 0x1fa   :  { %v2976_v62 = vadd.f32 %v2975_v4, %v2927_v58  ;;  %v6282_v58 = vld [vmem:[#allocation8 + $0x43c] sm:$0xf0]  ;;  %v5669_v4 = vor.u32 %v6330_v11, %v5668_v3 }
 0x1fb   :  { %v5477_v51 = vor.u32 %v6282_v58, %v5476_v32  ;;  %v6228_v32 = vld [vmem:[#allocation8 + $0x28c] sm:$0xf0] }
 0x1fc   :  { %v3024_v34 = vpop.f32.mrf.mxu1  ;;  %3282 = vmatmul.bf16.vlgmr.msra.gmra.mxu3 %v7974_v25  ;;  %v3038_v42 = vpop.f32.mrf.mxu2  ;;  %3170 = vmatmul.bf16.gmra.mxu0 %v7975_v41 }
 0x1fd   :  { %v7217_v17 = vadd.f32 %v3024_v34, %v2976_v62  ;;  %v3039_v31 = vadd.f32 %v3038_v42, %v7074_v47  ;;  %3520 = vmatpush.bf16.msrb.mxu0 %v5477_v51  ;;  %v5068_v62 = vld [vmem:[#allocation8 + $0xf8] sm:$0xf]  ;;  %v6180_v47 = vld [vmem:[#allocation8 + $0x10c] sm:$0xf0]  ;;  %3569 = vmatpush.bf16.msrb.mxu1 %v5669_v4 }
 0x1fe   :  { %v5069_v42 = vor.u32 %v6180_v47, %v5068_v62  ;;  %v5452_v62 = vld [vmem:[#allocation8 + $0x3f8] sm:$0xf]  ;;  %v6276_v47 = vld [vmem:[#allocation8 + $0x40c] sm:$0xf0] }
 0x1ff   :  { %v3087_v15 = vpop.f32.mrf.mxu3  ;;  %3219 = vmatmul.bf16.gmra.mxu1 %v7976_v0 }
 0x200   :  { %v3088_v1 = vadd.f32 %v3087_v15, %v3039_v31  ;;  %v7226_v31 = vperm.slane %v7026_v46, 1  ;;  %3423 = vmatpush.bf16.msrb.mxu2 %v5069_v42  ;;  %v5453_v42 = vor.u32 %v6276_v47, %v5452_v62  ;;  %v5236_v62 = vld [vmem:[#allocation8 + $0x248] sm:$0xf]  ;;  %v6222_v47 = vld [vmem:[#allocation8 + $0x25c] sm:$0xf0] }
 0x201   :  { %v2977_v43 = vpop.f32.mrf.mxu0 }
 0x202   :  { %4597 = vst [vmem:[#allocation11] sm:$0xff] %v3088_v1  ;;  %v2978_v7 = vadd.f32 %v2977_v43, %v2929_v26  ;;  %v7977_v1 = vld [vmem:[#allocation32_spill] sm:$0xff]  ;;  %v5260_v43 = vld [vmem:[#allocation8 + $0x278] sm:$0xf]  ;;  %3521 = vmatpush.bf16.msrb.mxu0 %v5453_v42  ;;  %v5237_v42 = vor.u32 %v6222_v47, %v5236_v62  ;;  %v6318_v47 = vld [vmem:[#allocation8 + $0x55c] sm:$0xf0] }
 0x203   :  { %v5620_v62 = vld [vmem:[#allocation8 + $0x548] sm:$0xf] }
 0x204   :  { %v3026_v10 = vpop.f32.mrf.mxu1  ;;  %v3040_v29 = vpop.f32.mrf.mxu2 }
 0x205   :  { %v7222_v13 = vadd.f32 %v3026_v10, %v2978_v7  ;;  %v3041_v34 = vadd.f32 %v3040_v29, %v7084_v12  ;;  %v7978_v10 = vld [vmem:[#allocation33_spill] sm:$0xff]  ;;  %v5261_v12 = vor.u32 %v6228_v32, %v5260_v43 }
 0x207   :  { %v3089_v2 = vpop.f32.mrf.mxu3  ;;  %3472 = vmatpush.bf16.msrb.mxu3 %v5261_v12 }
 0x208   :  { %v3090_v26 = vadd.f32 %v3089_v2, %v3041_v34 }
 0x209   :  { %v3136_v15 = vpop.f32.mrf.mxu0  ;;  %3238 = vmatmul.bf16.gmra.mxu2 %v7977_v1 }
 0x20a   :  { %4603 = vst [vmem:[#allocation11 + $0x30] sm:$0xff] %v3090_v26  ;;  %v3137_v58 = vadd.f32 %v3136_v15, %v7226_v31  ;;  %v5644_v26 = vld [vmem:[#allocation8 + $0x578] sm:$0xf]  ;;  %v6324_v15 = vld [vmem:[#allocation8 + $0x58c] sm:$0xf0] }
 0x20b   :  { %v5645_v43 = vor.u32 %v6324_v15, %v5644_v26  ;;  %v7980_v26 = vld [vmem:[#allocation37_spill] sm:$0xff]  ;;  %3473 = vmatpush.bf16.msrb.mxu3 %v5237_v42 }
 0x20c   :  { %v3185_v7 = vpop.f32.mrf.mxu1  ;;  %3287 = vmatmul.bf16.gmra.mxu3 %v7978_v10  ;;  %v3043_v3 = vpop.f32.mrf.mxu2  ;;  %3331 = vmatmul.bf16.vlgmr.msra.gmra.mxu0 %v7028_v59 }
 0x20d   :  { %v7231_v51 = vadd.f32 %v3185_v7, %v3137_v58  ;;  %v3044_v46 = vadd.f32 %v3043_v3, %v7097_v50  ;;  %v5044_v50 = vld [vmem:[#allocation8 + $0xc8] sm:$0xf]  ;;  %v6174_v7 = vld [vmem:[#allocation8 + $0xdc] sm:$0xf0]  ;;  %3570 = vmatpush.bf16.msrb.mxu1 %v5645_v43 }
 0x20f   :  { %v3092_v11 = vpop.f32.mrf.mxu3  ;;  %3380 = vmatmul.bf16.vlgmr.msra.gmra.mxu1 %v7032_v39 }
 0x210   :  { %v3093_v4 = vadd.f32 %v3092_v11, %v3044_v46  ;;  %v5045_v46 = vor.u32 %v6174_v7, %v5044_v50 }
 0x211   :  { %v3138_v29 = vpop.f32.mrf.mxu0 }
 0x212   :  { %4609 = vst [vmem:[#allocation11 + $0x60] sm:$0xff] %v3093_v4  ;;  %v3139_v34 = vadd.f32 %v3138_v29, %v7226_v31  ;;  %3424 = vmatpush.bf16.msrb.mxu2 %v5045_v46  ;;  %v7979_v29 = vld [vmem:[#allocation36_spill] sm:$0xff] }
 0x214   :  { %v3187_v2 = vpop.f32.mrf.mxu1  ;;  %v3045_v58 = vpop.f32.mrf.mxu2 }
 0x215   :  { %v7237_v32 = vadd.f32 %v3187_v2, %v3139_v34  ;;  %v3046_v12 = vadd.f32 %v3045_v58, %v7107_v28 }
 0x217   :  { %v3094_v3 = vpop.f32.mrf.mxu3 }
 0x218   :  { %v3095_v11 = vadd.f32 %v3094_v3, %v3046_v12  ;;  %v5428_v12 = vld [vmem:[#allocation8 + $0x3c8] sm:$0xf]  ;;  %v6270_v3 = vld [vmem:[#allocation8 + $0x3dc] sm:$0xf0] }
 0x219   :  { %v3141_v4 = vpop.f32.mrf.mxu0  ;;  %3243 = vmatmul.bf16.gmra.mxu2 %v7979_v29 }
 0x21a   :  { %4615 = vst [vmem:[#allocation11 + $0x90] sm:$0xff] %v3095_v11  ;;  %v3142_v34 = vadd.f32 %v3141_v4, %v7226_v31  ;;  %v5429_v4 = vor.u32 %v6270_v3, %v5428_v12  ;;  %v5212_v12 = vld [vmem:[#allocation8 + $0x218] sm:$0xf]  ;;  %v6216_v3 = vld [vmem:[#allocation8 + $0x22c] sm:$0xf0] }
 0x21c   :  { %v3190_v2 = vpop.f32.mrf.mxu1  ;;  %3292 = vmatmul.bf16.gmra.mxu3 %v7980_v26  ;;  %v3048_v28 = vpop.f32.mrf.mxu2  ;;  %3336 = vmatmul.bf16.gmra.mxu0 %v7064_v45  ;;  %v7981_v45 = vld [vmem:[#allocation38_spill] sm:$0xff] }
 0x21d   :  { %v7243_v15 = vadd.f32 %v3190_v2, %v3142_v34  ;;  %v3049_v43 = vadd.f32 %v3048_v28, %v7120_v40  ;;  %v5621_v34 = vor.u32 %v6318_v47, %v5620_v62  ;;  %3522 = vmatpush.bf16.msrb.mxu0 %v5429_v4  ;;  %v5020_v40 = vld [vmem:[#allocation8 + $0x98] sm:$0xf]  ;;  %v6168_v28 = vld [vmem:[#allocation8 + $0xac] sm:$0xf0]  ;;  %v7982_v62 = vld [vmem:[#allocation39_spill] sm:$0xff]  ;;  %v5213_v4 = vor.u32 %v6216_v3, %v5212_v12 }
 0x21e   :  { %v5596_v12 = vld [vmem:[#allocation8 + $0x518] sm:$0xf]  ;;  %v6312_v3 = vld [vmem:[#allocation8 + $0x52c] sm:$0xf0] }
 0x21f   :  { %v3097_v58 = vpop.f32.mrf.mxu3  ;;  %3385 = vmatmul.bf16.gmra.mxu1 %v7066_v6  ;;  %3474 = vmatpush.bf16.msrb.mxu3 %v5213_v4 }
 0x220   :  { %v3098_v50 = vadd.f32 %v3097_v58, %v3049_v43  ;;  %3571 = vmatpush.bf16.msrb.mxu1 %v5621_v34  ;;  %v5021_v58 = vor.u32 %v6168_v28, %v5020_v40  ;;  %v5404_v28 = vld [vmem:[#allocation8 + $0x398] sm:$0xf] }
 0x221   :  { %v3143_v7 = vpop.f32.mrf.mxu0 }
 0x222   :  { %4621 = vst [vmem:[#allocation11 + $0xc0] sm:$0xff] %v3098_v50  ;;  %v3144_v46 = vadd.f32 %v3143_v7, %v7226_v31  ;;  %3425 = vmatpush.bf16.msrb.mxu2 %v5021_v58 }
 0x224   :  { %v3192_v11 = vpop.f32.mrf.mxu1  ;;  %v3050_v42 = vpop.f32.mrf.mxu2 }
 0x225   :  { %v7249_v2 = vadd.f32 %v3192_v11, %v3144_v46  ;;  %v3051_v6 = vadd.f32 %v3050_v42, %v7130_v16 }
 0x227   :  { %v3099_v43 = vpop.f32.mrf.mxu3 }
 0x228   :  { %v3100_v50 = vadd.f32 %v3099_v43, %v3051_v6  ;;  %v6264_v43 = vld [vmem:[#allocation8 + $0x3ac] sm:$0xf0] }
 0x229   :  { %v3146_v7 = vpop.f32.mrf.mxu0  ;;  %3248 = vmatmul.bf16.gmra.mxu2 %v7981_v45 }
 0x22a   :  { %4627 = vst [vmem:[#allocation11 + $0xf0] sm:$0xff] %v3100_v50  ;;  %v3147_v46 = vadd.f32 %v3146_v7, %v7226_v31  ;;  %v5405_v7 = vor.u32 %v6264_v43, %v5404_v28  ;;  %v5188_v28 = vld [vmem:[#allocation8 + $0x1e8] sm:$0xf]  ;;  %v6210_v43 = vld [vmem:[#allocation8 + $0x1fc] sm:$0xf0] }
 0x22c   :  { %v3195_v11 = vpop.f32.mrf.mxu1  ;;  %3297 = vmatmul.bf16.gmra.mxu3 %v7982_v62  ;;  %v3053_v16 = vpop.f32.mrf.mxu2  ;;  %3341 = vmatmul.bf16.gmra.mxu0 %v7087_v49  ;;  %v7983_v49 = vld [vmem:[#allocation40_spill] sm:$0xff] }
 0x22d   :  { %v7255_v47 = vadd.f32 %v3195_v11, %v3147_v46  ;;  %v3054_v6 = vadd.f32 %v3053_v16, %v7143_v56  ;;  %v5597_v46 = vor.u32 %v6312_v3, %v5596_v12  ;;  %3523 = vmatpush.bf16.msrb.mxu0 %v5405_v7  ;;  %v4996_v56 = vld [vmem:[#allocation8 + $0x68] sm:$0xf]  ;;  %v6162_v16 = vld [vmem:[#allocation8 + $0x7c] sm:$0xf0]  ;;  %v7984_v12 = vld [vmem:[#allocation41_spill] sm:$0xff]  ;;  %v5189_v7 = vor.u32 %v6210_v43, %v5188_v28 }
 0x22e   :  { %v5572_v28 = vld [vmem:[#allocation8 + $0x4e8] sm:$0xf]  ;;  %v6306_v43 = vld [vmem:[#allocation8 + $0x4fc] sm:$0xf0] }
 0x22f   :  { %v3102_v34 = vpop.f32.mrf.mxu3  ;;  %3390 = vmatmul.bf16.gmra.mxu1 %v7089_v35  ;;  %3475 = vmatpush.bf16.msrb.mxu3 %v5189_v7 }
 0x230   :  { %v3103_v42 = vadd.f32 %v3102_v34, %v3054_v6  ;;  %3572 = vmatpush.bf16.msrb.mxu1 %v5597_v46  ;;  %v4997_v34 = vor.u32 %v6162_v16, %v4996_v56  ;;  %v5380_v16 = vld [vmem:[#allocation8 + $0x368] sm:$0xf] }
 0x231   :  { %v3148_v40 = vpop.f32.mrf.mxu0 }
 0x232   :  { %4633 = vst [vmem:[#allocation11 + $0x120] sm:$0xff] %v3103_v42  ;;  %v3149_v58 = vadd.f32 %v3148_v40, %v7226_v31  ;;  %3426 = vmatpush.bf16.msrb.mxu2 %v4997_v34 }
 0x234   :  { %v3197_v50 = vpop.f32.mrf.mxu1  ;;  %v3055_v4 = vpop.f32.mrf.mxu2 }
 0x235   :  { %v7261_v11 = vadd.f32 %v3197_v50, %v3149_v58  ;;  %v3056_v35 = vadd.f32 %v3055_v4, %v7153_v61 }
 0x237   :  { %v3104_v6 = vpop.f32.mrf.mxu3 }
 0x238   :  { %v3105_v42 = vadd.f32 %v3104_v6, %v3056_v35  ;;  %v6258_v6 = vld [vmem:[#allocation8 + $0x37c] sm:$0xf0] }
 0x239   :  { %v3151_v40 = vpop.f32.mrf.mxu0  ;;  %3253 = vmatmul.bf16.gmra.mxu2 %v7983_v49 }
 0x23a   :  { %4639 = vst [vmem:[#allocation11 + $0x150] sm:$0xff] %v3105_v42  ;;  %v3152_v58 = vadd.f32 %v3151_v40, %v7226_v31  ;;  %v5381_v40 = vor.u32 %v6258_v6, %v5380_v16  ;;  %v5164_v16 = vld [vmem:[#allocation8 + $0x1b8] sm:$0xf]  ;;  %v6204_v6 = vld [vmem:[#allocation8 + $0x1cc] sm:$0xf0] }
 0x23c   :  { %v3200_v50 = vpop.f32.mrf.mxu1  ;;  %3302 = vmatmul.bf16.gmra.mxu3 %v7984_v12  ;;  %v3058_v61 = vpop.f32.mrf.mxu2  ;;  %3346 = vmatmul.bf16.gmra.mxu0 %v7110_v21  ;;  %v7985_v21 = vld [vmem:[#allocation42_spill] sm:$0xff] }
 0x23d   :  { %v7267_v3 = vadd.f32 %v3200_v50, %v3152_v58  ;;  %v3059_v35 = vadd.f32 %v3058_v61, %v7166_v5  ;;  %v5573_v58 = vor.u32 %v6306_v43, %v5572_v28  ;;  %3524 = vmatpush.bf16.msrb.mxu0 %v5381_v40  ;;  %v4972_v5 = vld [vmem:[#allocation8 + $0x38] sm:$0xf]  ;;  %v6156_v61 = vld [vmem:[#allocation8 + $0x4c] sm:$0xf0]  ;;  %v7986_v28 = vld [vmem:[#allocation43_spill] sm:$0xff]  ;;  %v5165_v40 = vor.u32 %v6204_v6, %v5164_v16 }
 0x23e   :  { %v5548_v16 = vld [vmem:[#allocation8 + $0x4b8] sm:$0xf]  ;;  %v6300_v6 = vld [vmem:[#allocation8 + $0x4cc] sm:$0xf0] }
 0x23f   :  { %v3107_v46 = vpop.f32.mrf.mxu3  ;;  %3395 = vmatmul.bf16.gmra.mxu1 %v7112_v60  ;;  %3476 = vmatpush.bf16.msrb.mxu3 %v5165_v40 }
 0x240   :  { %v3108_v4 = vadd.f32 %v3107_v46, %v3059_v35  ;;  %3573 = vmatpush.bf16.msrb.mxu1 %v5573_v58  ;;  %v4973_v46 = vor.u32 %v6156_v61, %v4972_v5  ;;  %v5356_v61 = vld [vmem:[#allocation8 + $0x338] sm:$0xf] }
 0x241   :  { %v3153_v56 = vpop.f32.mrf.mxu0 }
 0x242   :  { %4645 = vst [vmem:[#allocation11 + $0x180] sm:$0xff] %v3108_v4  ;;  %v3154_v34 = vadd.f32 %v3153_v56, %v7226_v31  ;;  %3427 = vmatpush.bf16.msrb.mxu2 %v4973_v46 }
 0x244   :  { %v3202_v42 = vpop.f32.mrf.mxu1  ;;  %v3060_v7 = vpop.f32.mrf.mxu2 }
 0x245   :  { %v7273_v50 = vadd.f32 %v3202_v42, %v3154_v34  ;;  %v3061_v60 = vadd.f32 %v3060_v7, %v7176_v37 }
 0x247   :  { %v3109_v35 = vpop.f32.mrf.mxu3 }
 0x248   :  { %v3110_v4 = vadd.f32 %v3109_v35, %v3061_v60  ;;  %v6252_v35 = vld [vmem:[#allocation8 + $0x34c] sm:$0xf0] }
 0x249   :  { %v3156_v56 = vpop.f32.mrf.mxu0  ;;  %3258 = vmatmul.bf16.gmra.mxu2 %v7985_v21 }
 0x24a   :  { %4651 = vst [vmem:[#allocation11 + $0x1b0] sm:$0xff] %v3110_v4  ;;  %v3157_v34 = vadd.f32 %v3156_v56, %v7226_v31  ;;  %v5357_v56 = vor.u32 %v6252_v35, %v5356_v61  ;;  %v7987_v35 = vld [vmem:[#allocation44_spill] sm:$0xff] }
 0x24c   :  { %v3205_v42 = vpop.f32.mrf.mxu1  ;;  %3307 = vmatmul.bf16.gmra.mxu3 %v7986_v28  ;;  %v3063_v37 = vpop.f32.mrf.mxu2  ;;  %3351 = vmatmul.bf16.gmra.mxu0 %v7133_v22  ;;  %v5140_v22 = vld [vmem:[#allocation8 + $0x188] sm:$0xf] }
 0x24d   :  { %v7279_v43 = vadd.f32 %v3205_v42, %v3157_v34  ;;  %v3064_v60 = vadd.f32 %v3063_v37, %v7193_v48  ;;  %v5549_v34 = vor.u32 %v6300_v6, %v5548_v16  ;;  %3525 = vmatpush.bf16.msrb.mxu0 %v5357_v56  ;;  %v4948_v48 = vld [vmem:[#allocation8 + $0x8] sm:$0xf]  ;;  %v6150_v37 = vld [vmem:[#allocation8 + $0x1c] sm:$0xf0]  ;;  %v7988_v56 = vld [vmem:[#allocation45_spill] sm:$0xff] }
 0x24f   :  { %v3112_v58 = vpop.f32.mrf.mxu3  ;;  %3400 = vmatmul.bf16.gmra.mxu1 %v7135_v8  ;;  %v6198_v8 = vld [vmem:[#allocation8 + $0x19c] sm:$0xf0] }
 0x250   :  { %v3113_v7 = vadd.f32 %v3112_v58, %v3064_v60  ;;  %3574 = vmatpush.bf16.msrb.mxu1 %v5549_v34  ;;  %v5141_v39 = vor.u32 %v6198_v8, %v5140_v22  ;;  %v5332_v8 = vld [vmem:[#allocation8 + $0x308] sm:$0xf]  ;;  %v6246_v34 = vld [vmem:[#allocation8 + $0x31c] sm:$0xf0] }
 0x251   :  { %v3158_v5 = vpop.f32.mrf.mxu0 }
 0x252   :  { %4657 = vst [vmem:[#allocation11 + $0x1e0] sm:$0xff] %v3113_v7  ;;  %v3159_v46 = vadd.f32 %v3158_v5, %v7226_v31  ;;  %v4949_v7 = vor.u32 %v6150_v37, %v4948_v48  ;;  %3477 = vmatpush.bf16.msrb.mxu3 %v5141_v39  ;;  %v5333_v48 = vor.u32 %v6246_v34, %v5332_v8  ;;  %v6294_v37 = vld [vmem:[#allocation8 + $0x49c] sm:$0xf0]  ;;  %v6076_v8 = vld [vmem:[#allocation8 + $0x8d8] sm:$0xf] }
 0x254   :  { %v3207_v4 = vpop.f32.mrf.mxu1  ;;  %v3065_v40 = vpop.f32.mrf.mxu2  ;;  %3428 = vmatpush.bf16.msrb.mxu2 %v4949_v7  ;;  %3526 = vmatpush.bf16.msrb.mxu0 %v5333_v48 }
 0x255   :  { %v7285_v42 = vadd.f32 %v3207_v4, %v3159_v46  ;;  %v3066_v60 = vadd.f32 %v3065_v40, %v7198_v55  ;;  %v5524_v40 = vld [vmem:[#allocation8 + $0x488] sm:$0xf] }
 0x257   :  { %v3114_v58 = vpop.f32.mrf.mxu3 }
 0x258   :  { %v3115_v5 = vadd.f32 %v3114_v58, %v3066_v60  ;;  %v5525_v58 = vor.u32 %v6294_v37, %v5524_v40 }
 0x259   :  { %v3161_v61 = vpop.f32.mrf.mxu0  ;;  %3263 = vmatmul.bf16.gmra.mxu2 %v7987_v35 }
 0x25a   :  { %4663 = vst [vmem:[#allocation11 + $0x210] sm:$0xff] %v3115_v5  ;;  %v3162_v46 = vadd.f32 %v3161_v61, %v7226_v31  ;;  %3575 = vmatpush.bf16.msrb.mxu1 %v5525_v58 }
 0x25c   :  { %v3210_v4 = vpop.f32.mrf.mxu1  ;;  %3312 = vmatmul.bf16.gmra.mxu3 %v7988_v56  ;;  %v3068_v55 = vpop.f32.mrf.mxu2  ;;  %3356 = vmatmul.bf16.gmra.mxu0 %v7156_v18  ;;  %v6420_v18 = vld [vmem:[#allocation8 + $0x88c] sm:$0xf0] }
 0x25d   :  { %v7291_v16 = vadd.f32 %v3210_v4, %v3162_v46  ;;  %v3069_v6 = vadd.f32 %v3068_v55, %v7207_v33  ;;  %v5884_v46 = vld [vmem:[#allocation8 + $0x758] sm:$0xf]  ;;  %v6384_v4 = vld [vmem:[#allocation8 + $0x76c] sm:$0xf0] }
 0x25f   :  { %v3117_v22 = vpop.f32.mrf.mxu3  ;;  %3405 = vmatmul.bf16.gmra.mxu1 %v7158_v27 }
 0x260   :  { %v3118_v39 = vadd.f32 %v3117_v22, %v3069_v6  ;;  %v5885_v22 = vor.u32 %v6384_v4, %v5884_v46  ;;  %v5118_v46 = vld [vmem:[#allocation8 + $0x170] sm:$0xf0]  ;;  %v6237_v4 = vld [vmem:[#allocation8 + $0x2dc] sm:$0xf] }
 0x261   :  { %v3163_v60 = vpop.f32.mrf.mxu0 }
 0x262   :  { %4669 = vst [vmem:[#allocation11 + $0x240] sm:$0xff] %v3118_v39  ;;  %v3164_v7 = vadd.f32 %v3163_v60, %v7226_v31  ;;  %3617 = vmatpush.bf16.msra.mxu2 %v5885_v22  ;;  %v6432_v39 = vld [vmem:[#allocation8 + $0x8ec] sm:$0xf0] }
 0x263   :  { %v6077_v34 = vor.u32 %v6432_v39, %v6076_v8  ;;  %v7989_v60 = vld [vmem:[#allocation49_spill] sm:$0xff] }
 0x264   :  { %v3212_v5 = vpop.f32.mrf.mxu1  ;;  %v3070_v33 = vpop.f32.mrf.mxu2 }
 0x265   :  { %v7297_v61 = vadd.f32 %v3212_v5, %v3164_v7  ;;  %v3071_v55 = vadd.f32 %v3070_v33, %v7212_v44  ;;  %3666 = vmatpush.bf16.msra.mxu3 %v6077_v34  ;;  %v6189_v33 = vld [vmem:[#allocation8 + $0x15c] sm:$0xf] }
 0x267   :  { %v3119_v6 = vpop.f32.mrf.mxu3 }
 0x268   :  { %v3120_v27 = vadd.f32 %v3119_v6, %v3071_v55  ;;  %v5121_v55 = vor.u32 %v6189_v33, %v5118_v46  ;;  %v5310_v6 = vld [vmem:[#allocation8 + $0x2f0] sm:$0xf0]  ;;  %v6052_v33 = vld [vmem:[#allocation8 + $0x8a8] sm:$0xf]  ;;  %v6426_v46 = vld [vmem:[#allocation8 + $0x8bc] sm:$0xf0] }
 0x269   :  { %v3166_v40 = vpop.f32.mrf.mxu0  ;;  %3268 = vmatmul.bf16.gmra.mxu2 %v7044_v23  ;;  %v5313_v8 = vor.u32 %v6237_v4, %v5310_v6 }
 0x26a   :  { %4675 = vst [vmem:[#allocation11 + $0x270] sm:$0xff] %v3120_v27  ;;  %v3167_v48 = vadd.f32 %v3166_v40, %v7226_v31  ;;  %3715 = vmatpush.bf16.msra.mxu0 %v5121_v55 }
 0x26b   :  { %3764 = vmatpush.bf16.msra.mxu1 %v5313_v8 }
 0x26c   :  { %v3215_v37 = vpop.f32.mrf.mxu1  ;;  %3317 = vmatmul.bf16.gmra.mxu3 %v7989_v60  ;;  %v3073_v44 = vpop.f32.mrf.mxu2  ;;  %3361 = vmatmul.bf16.gmra.mxu0 %v7179_v36  ;;  %v6028_v36 = vld [vmem:[#allocation8 + $0x878] sm:$0xf] }
 0x26d   :  { %v7303_v58 = vadd.f32 %v3215_v37, %v3167_v48  ;;  %v3074_v7 = vadd.f32 %v3073_v44, %v7217_v17  ;;  %v5860_v44 = vld [vmem:[#allocation8 + $0x728] sm:$0xf] }
 0x26f   :  { %v3122_v5 = vpop.f32.mrf.mxu3  ;;  %3410 = vmatmul.bf16.gmra.mxu1 %v7181_v52 }
 0x270   :  { %v3123_v27 = vadd.f32 %v3122_v5, %v3074_v7  ;;  %v6378_v7 = vld [vmem:[#allocation8 + $0x73c] sm:$0xf0] }
 0x271   :  { %v3168_v22 = vpop.f32.mrf.mxu0  ;;  %v5861_v52 = vor.u32 %v6378_v7, %v5860_v44  ;;  %v5286_v44 = vld [vmem:[#allocation8 + $0x2c0] sm:$0xf0] }
 0x272   :  { %4681 = vst [vmem:[#allocation11 + $0x2a0] sm:$0xff] %v3123_v27  ;;  %v3169_v39 = vadd.f32 %v3168_v22, %v7226_v31  ;;  %v6053_v27 = vor.u32 %v6426_v46, %v6052_v33  ;;  %v7990_v22 = vld [vmem:[#allocation23_spill] sm:$0xff] }
 0x273   :  { %3618 = vmatpush.bf16.msra.mxu2 %v5861_v52 }
 0x274   :  { %v3217_v34 = vpop.f32.mrf.mxu1  ;;  %v3075_v17 = vpop.f32.mrf.mxu2  ;;  %3667 = vmatpush.bf16.msra.mxu3 %v6053_v27 }
 0x275   :  { %v7309_v40 = vadd.f32 %v3217_v34, %v3169_v39  ;;  %v3076_v48 = vadd.f32 %v3075_v17, %v7222_v13  ;;  %v6183_v34 = vld [vmem:[#allocation8 + $0x12c] sm:$0xf]  ;;  %v5094_v17 = vld [vmem:[#allocation8 + $0x140] sm:$0xf0] }
 0x277   :  { %v3124_v37 = vpop.f32.mrf.mxu3 }
 0x278   :  { %v3125_v5 = vadd.f32 %v3124_v37, %v3076_v48  ;;  %v6231_v48 = vld [vmem:[#allocation8 + $0x2ac] sm:$0xf]  ;;  %v5097_v37 = vor.u32 %v6183_v34, %v5094_v17  ;;  %v6029_v17 = vor.u32 %v6420_v18, %v6028_v36  ;;  %v6177_v18 = vld [vmem:[#allocation8 + $0xfc] sm:$0xf]  ;;  %v5070_v36 = vld [vmem:[#allocation8 + $0x110] sm:$0xf0] }
 0x279   :  { %v3171_v4 = vpop.f32.mrf.mxu0  ;;  %3429 = vmatmul.bf16.vlgmr.msrb.gmra.mxu2 %v6816_v9 }
 0x27a   :  { %4687 = vst [vmem:[#allocation11 + $0x2d0] sm:$0xff] %v3125_v5  ;;  %v3172_v55 = vadd.f32 %v3171_v4, %v7226_v31  ;;  %v5289_v5 = vor.u32 %v6231_v48, %v5286_v44  ;;  %3716 = vmatpush.bf16.msra.mxu0 %v5097_v37  ;;  %3668 = vmatpush.bf16.msra.mxu3 %v6029_v17  ;;  %v6366_v17 = vld [vmem:[#allocation8 + $0x6dc] sm:$0xf0] }
 0x27c   :  { %v3220_v6 = vpop.f32.mrf.mxu1  ;;  %3478 = vmatmul.bf16.vlgmr.msrb.gmra.mxu3 %v7990_v22  ;;  %v3234_v8 = vpop.f32.mrf.mxu2  ;;  %3366 = vmatmul.bf16.gmra.mxu0 %v7201_v63 }
 0x27d   :  { %v7315_v13 = vadd.f32 %v3220_v6, %v3172_v55  ;;  %3765 = vmatpush.bf16.msra.mxu1 %v5289_v5  ;;  %v3235_v52 = vadd.f32 %v3234_v8, %v7231_v51  ;;  %v5836_v6 = vld [vmem:[#allocation8 + $0x6f8] sm:$0xf] }
 0x27f   :  { %v3283_v39 = vpop.f32.mrf.mxu3  ;;  %3415 = vmatmul.bf16.gmra.mxu1 %v7203_v19  ;;  %v6372_v19 = vld [vmem:[#allocation8 + $0x70c] sm:$0xf0] }
 0x280   :  { %v5837_v63 = vor.u32 %v6372_v19, %v5836_v6  ;;  %v3284_v34 = vadd.f32 %v3283_v39, %v3235_v52  ;;  %v6225_v39 = vld [vmem:[#allocation8 + $0x27c] sm:$0xf] }
 0x281   :  { %v3173_v7 = vpop.f32.mrf.mxu0 }
 0x282   :  { %v3174_v33 = vadd.f32 %v3173_v7, %v7226_v31  ;;  %3619 = vmatpush.bf16.msra.mxu2 %v5837_v63  ;;  %v5262_v7 = vld [vmem:[#allocation8 + $0x290] sm:$0xf0] }
 0x284   :  { %v3222_v46 = vpop.f32.mrf.mxu1  ;;  %v3236_v4 = vpop.f32.mrf.mxu2 }
 0x285   :  { %v7321_v27 = vadd.f32 %v3222_v46, %v3174_v33  ;;  %v3237_v51 = vadd.f32 %v3236_v4, %v7237_v32  ;;  %v5265_v33 = vor.u32 %v6225_v39, %v5262_v7  ;;  %v5046_v7 = vld [vmem:[#allocation8 + $0xe0] sm:$0xf0] }
 0x287   :  { %v3285_v55 = vpop.f32.mrf.mxu3  ;;  %3766 = vmatpush.bf16.msra.mxu1 %v5265_v33 }
 0x288   :  { %v3286_v44 = vadd.f32 %v3285_v55, %v3237_v51 }
 0x289   :  { %v3332_v22 = vpop.f32.mrf.mxu0  ;;  %3434 = vmatmul.bf16.gmra.mxu2 %v6853_v38 }
 0x28a   :  { %v3333_v31 = vadd.f32 %v3332_v22, %v3284_v34  ;;  %v5073_v22 = vor.u32 %v6177_v18, %v5070_v36  ;;  %v5812_v34 = vld [vmem:[#allocation8 + $0x6c8] sm:$0xf] }
 0x28c   :  { %v3381_v48 = vpop.f32.mrf.mxu1  ;;  %3483 = vmatmul.bf16.gmra.mxu3 %v6855_v24  ;;  %v3239_v37 = vpop.f32.mrf.mxu2  ;;  %3527 = vmatmul.bf16.vlgmr.msrb.gmra.mxu0 %v7973_v57 }
 0x28d   :  { %v3382_v8 = vadd.f32 %v3381_v48, %v3333_v31  ;;  %3717 = vmatpush.bf16.msra.mxu0 %v5073_v22  ;;  %v3240_v32 = vadd.f32 %v3239_v37, %v7243_v15  ;;  %v5813_v31 = vor.u32 %v6366_v17, %v5812_v34  ;;  %v6004_v48 = vld [vmem:[#allocation8 + $0x848] sm:$0xf] }
 0x28f   :  { %v3288_v19 = vpop.f32.mrf.mxu3  ;;  %3576 = vmatmul.bf16.vlgmr.msrb.gmra.mxu1 %v7974_v25  ;;  %4598 = vst [vmem:[#allocation11 + $0x8] sm:$0xff] %v3382_v8  ;;  %v6414_v8 = vld [vmem:[#allocation8 + $0x85c] sm:$0xf0]  ;;  %3620 = vmatpush.bf16.msra.mxu2 %v5813_v31 }
 0x290   :  { %v3289_v55 = vadd.f32 %v3288_v19, %v3240_v32  ;;  %v6005_v51 = vor.u32 %v6414_v8, %v6004_v48  ;;  %v6171_v19 = vld [vmem:[#allocation8 + $0xcc] sm:$0xf]  ;;  %v5788_v8 = vld [vmem:[#allocation8 + $0x698] sm:$0xf] }
 0x291   :  { %v3334_v5 = vpop.f32.mrf.mxu0 }
 0x292   :  { %v3335_v63 = vadd.f32 %v3334_v5, %v3286_v44  ;;  %3669 = vmatpush.bf16.msra.mxu3 %v6005_v51  ;;  %v6219_v5 = vld [vmem:[#allocation8 + $0x24c] sm:$0xf] }
 0x294   :  { %v3383_v46 = vpop.f32.mrf.mxu1  ;;  %v3241_v4 = vpop.f32.mrf.mxu2 }
 0x295   :  { %v3384_v52 = vadd.f32 %v3383_v46, %v3335_v63  ;;  %v3242_v15 = vadd.f32 %v3241_v4, %v7249_v2  ;;  %v5049_v63 = vor.u32 %v6171_v19, %v5046_v7  ;;  %v5238_v46 = vld [vmem:[#allocation8 + $0x260] sm:$0xf0] }
 0x296   :  { %v7991_v7 = vld [vmem:[#allocation35_spill] sm:$0xff] }
 0x297   :  { %v3290_v6 = vpop.f32.mrf.mxu3  ;;  %4604 = vst [vmem:[#allocation11 + $0x38] sm:$0xff] %v3384_v52  ;;  %v5241_v52 = vor.u32 %v6219_v5, %v5238_v46  ;;  %3718 = vmatpush.bf16.msra.mxu0 %v5049_v63  ;;  %v5022_v63 = vld [vmem:[#allocation8 + $0xb0] sm:$0xf0]  ;;  %v6213_v46 = vld [vmem:[#allocation8 + $0x21c] sm:$0xf] }
 0x298   :  { %v3291_v33 = vadd.f32 %v3290_v6, %v3242_v15 }
 0x299   :  { %v3337_v18 = vpop.f32.mrf.mxu0  ;;  %3439 = vmatmul.bf16.gmra.mxu2 %v6886_v30  ;;  %3767 = vmatpush.bf16.msra.mxu1 %v5241_v52 }
 0x29a   :  { %v3338_v36 = vadd.f32 %v3337_v18, %v3289_v55  ;;  %v6360_v55 = vld [vmem:[#allocation8 + $0x6ac] sm:$0xf0]  ;;  %v5980_v18 = vld [vmem:[#allocation8 + $0x818] sm:$0xf] }
 0x29b   :  { %v5789_v51 = vor.u32 %v6360_v55, %v5788_v8 }
 0x29c   :  { %v3386_v39 = vpop.f32.mrf.mxu1  ;;  %3488 = vmatmul.bf16.gmra.mxu3 %v6888_v14  ;;  %v3244_v44 = vpop.f32.mrf.mxu2  ;;  %3532 = vmatmul.bf16.gmra.mxu0 %v7977_v1 }
 0x29d   :  { %v3387_v37 = vadd.f32 %v3386_v39, %v3338_v36  ;;  %v3245_v2 = vadd.f32 %v3244_v44, %v7255_v47  ;;  %v6408_v36 = vld [vmem:[#allocation8 + $0x82c] sm:$0xf0]  ;;  %3621 = vmatpush.bf16.msra.mxu2 %v5789_v51 }
 0x29e   :  { %v5981_v39 = vor.u32 %v6408_v36, %v5980_v18  ;;  %v5764_v18 = vld [vmem:[#allocation8 + $0x668] sm:$0xf]  ;;  %v6354_v36 = vld [vmem:[#allocation8 + $0x67c] sm:$0xf0] }
 0x29f   :  { %v3293_v22 = vpop.f32.mrf.mxu3  ;;  %3581 = vmatmul.bf16.gmra.mxu1 %v7978_v10  ;;  %4610 = vst [vmem:[#allocation11 + $0x68] sm:$0xff] %v3387_v37 }
 0x2a0   :  { %v3294_v6 = vadd.f32 %v3293_v22, %v3245_v2  ;;  %3670 = vmatpush.bf16.msra.mxu3 %v5981_v39  ;;  %v6165_v22 = vld [vmem:[#allocation8 + $0x9c] sm:$0xf]  ;;  %v5956_v39 = vld [vmem:[#allocation8 + $0x7e8] sm:$0xf] }
 0x2a1   :  { %v3339_v32 = vpop.f32.mrf.mxu0  ;;  %v5025_v52 = vor.u32 %v6165_v22, %v5022_v63  ;;  %v7993_v63 = vld [vmem:[#allocation17_spill] sm:$0xff] }
 0x2a2   :  { %v3340_v34 = vadd.f32 %v3339_v32, %v3291_v33 }
 0x2a3   :  { %3719 = vmatpush.bf16.msra.mxu0 %v5025_v52  ;;  %v4998_v52 = vld [vmem:[#allocation8 + $0x80] sm:$0xf0] }
 0x2a4   :  { %v3388_v17 = vpop.f32.mrf.mxu1  ;;  %v3246_v31 = vpop.f32.mrf.mxu2 }
 0x2a5   :  { %v3389_v4 = vadd.f32 %v3388_v17, %v3340_v34  ;;  %v3247_v47 = vadd.f32 %v3246_v31, %v7261_v11  ;;  %v5214_v34 = vld [vmem:[#allocation8 + $0x230] sm:$0xf0] }
 0x2a6   :  { %v5217_v2 = vor.u32 %v6213_v46, %v5214_v34  ;;  %v6207_v34 = vld [vmem:[#allocation8 + $0x1ec] sm:$0xf] }
 0x2a7   :  { %v3295_v48 = vpop.f32.mrf.mxu3  ;;  %4616 = vst [vmem:[#allocation11 + $0x98] sm:$0xff] %v3389_v4 }
 0x2a8   :  { %v3296_v32 = vadd.f32 %v3295_v48, %v3247_v47  ;;  %3768 = vmatpush.bf16.msra.mxu1 %v5217_v2  ;;  %v7992_v47 = vld [vmem:[#allocation16_spill] sm:$0xff] }
 0x2a9   :  { %v3342_v15 = vpop.f32.mrf.mxu0  ;;  %3444 = vmatmul.bf16.gmra.mxu2 %v6917_v54 }
 0x2aa   :  { %v3343_v37 = vadd.f32 %v3342_v15, %v3294_v6  ;;  %v5765_v6 = vor.u32 %v6354_v36, %v5764_v18  ;;  %v6402_v15 = vld [vmem:[#allocation8 + $0x7fc] sm:$0xf0] }
 0x2ac   :  { %v3391_v19 = vpop.f32.mrf.mxu1  ;;  %3493 = vmatmul.bf16.gmra.mxu3 %v7991_v7  ;;  %v3249_v5 = vpop.f32.mrf.mxu2  ;;  %3537 = vmatmul.bf16.gmra.mxu0 %v7979_v29 }
 0x2ad   :  { %v3392_v44 = vadd.f32 %v3391_v19, %v3343_v37  ;;  %v3250_v11 = vadd.f32 %v3249_v5, %v7267_v3  ;;  %v5957_v37 = vor.u32 %v6402_v15, %v5956_v39  ;;  %3622 = vmatpush.bf16.msra.mxu2 %v5765_v6  ;;  %v5740_v39 = vld [vmem:[#allocation8 + $0x638] sm:$0xf]  ;;  %v6348_v15 = vld [vmem:[#allocation8 + $0x64c] sm:$0xf0] }
 0x2af   :  { %v3298_v33 = vpop.f32.mrf.mxu3  ;;  %3586 = vmatmul.bf16.gmra.mxu1 %v7980_v26  ;;  %4622 = vst [vmem:[#allocation11 + $0xc8] sm:$0xff] %v3392_v44  ;;  %3671 = vmatpush.bf16.msra.mxu3 %v5957_v37  ;;  %v5932_v37 = vld [vmem:[#allocation8 + $0x7b8] sm:$0xf] }
 0x2b0   :  { %v3299_v48 = vadd.f32 %v3298_v33, %v3250_v11  ;;  %v6159_v33 = vld [vmem:[#allocation8 + $0x6c] sm:$0xf] }
 0x2b1   :  { %v3344_v17 = vpop.f32.mrf.mxu0  ;;  %v5001_v2 = vor.u32 %v6159_v33, %v4998_v52  ;;  %v7995_v52 = vld [vmem:[#allocation19_spill] sm:$0xff] }
 0x2b2   :  { %v3345_v4 = vadd.f32 %v3344_v17, %v3296_v32 }
 0x2b3   :  { %3720 = vmatpush.bf16.msra.mxu0 %v5001_v2  ;;  %v4974_v2 = vld [vmem:[#allocation8 + $0x50] sm:$0xf0] }
 0x2b4   :  { %v3393_v8 = vpop.f32.mrf.mxu1  ;;  %v3251_v55 = vpop.f32.mrf.mxu2 }
 0x2b5   :  { %v3394_v31 = vadd.f32 %v3393_v8, %v3345_v4  ;;  %v3252_v3 = vadd.f32 %v3251_v55, %v7273_v50  ;;  %v5190_v4 = vld [vmem:[#allocation8 + $0x200] sm:$0xf0] }
 0x2b6   :  { %v5193_v11 = vor.u32 %v6207_v34, %v5190_v4  ;;  %v6201_v4 = vld [vmem:[#allocation8 + $0x1bc] sm:$0xf] }
 0x2b7   :  { %v3300_v51 = vpop.f32.mrf.mxu3  ;;  %4628 = vst [vmem:[#allocation11 + $0xf8] sm:$0xff] %v3394_v31 }
 0x2b8   :  { %v3301_v17 = vadd.f32 %v3300_v51, %v3252_v3  ;;  %3769 = vmatpush.bf16.msra.mxu1 %v5193_v11  ;;  %v7994_v3 = vld [vmem:[#allocation18_spill] sm:$0xff] }
 0x2b9   :  { %v3347_v19 = vpop.f32.mrf.mxu0  ;;  %3449 = vmatmul.bf16.gmra.mxu2 %v7992_v47 }
 0x2ba   :  { %v3348_v44 = vadd.f32 %v3347_v19, %v3299_v48  ;;  %v5741_v48 = vor.u32 %v6348_v15, %v5740_v39  ;;  %v6396_v19 = vld [vmem:[#allocation8 + $0x7cc] sm:$0xf0] }
 0x2bc   :  { %v3396_v22 = vpop.f32.mrf.mxu1  ;;  %3498 = vmatmul.bf16.gmra.mxu3 %v7993_v63  ;;  %v3254_v46 = vpop.f32.mrf.mxu2  ;;  %3542 = vmatmul.bf16.gmra.mxu0 %v7981_v45 }
 0x2bd   :  { %v3397_v5 = vadd.f32 %v3396_v22, %v3348_v44  ;;  %v3255_v50 = vadd.f32 %v3254_v46, %v7279_v43  ;;  %v5933_v44 = vor.u32 %v6396_v19, %v5932_v37  ;;  %3623 = vmatpush.bf16.msra.mxu2 %v5741_v48  ;;  %v5716_v48 = vld [vmem:[#allocation8 + $0x608] sm:$0xf]  ;;  %v6342_v37 = vld [vmem:[#allocation8 + $0x61c] sm:$0xf0] }
 0x2be   :  { %v5908_v19 = vld [vmem:[#allocation8 + $0x788] sm:$0xf] }
 0x2bf   :  { %v3303_v32 = vpop.f32.mrf.mxu3  ;;  %3591 = vmatmul.bf16.gmra.mxu1 %v7982_v62  ;;  %4634 = vst [vmem:[#allocation11 + $0x128] sm:$0xff] %v3397_v5  ;;  %3672 = vmatpush.bf16.msra.mxu3 %v5933_v44  ;;  %v5717_v44 = vor.u32 %v6342_v37, %v5716_v48  ;;  %v6285_v37 = vld [vmem:[#allocation8 + $0x45c] sm:$0xf] }
 0x2c0   :  { %v3304_v51 = vadd.f32 %v3303_v32, %v3255_v50  ;;  %v6153_v32 = vld [vmem:[#allocation8 + $0x3c] sm:$0xf] }
 0x2c1   :  { %v3349_v8 = vpop.f32.mrf.mxu0  ;;  %v4977_v11 = vor.u32 %v6153_v32, %v4974_v2  ;;  %3624 = vmatpush.bf16.msra.mxu2 %v5717_v44 }
 0x2c2   :  { %v3350_v31 = vadd.f32 %v3349_v8, %v3301_v17 }
 0x2c3   :  { %3721 = vmatpush.bf16.msra.mxu0 %v4977_v11 }
 0x2c4   :  { %v3398_v18 = vpop.f32.mrf.mxu1  ;;  %v3256_v36 = vpop.f32.mrf.mxu2 }
 0x2c5   :  { %v3399_v55 = vadd.f32 %v3398_v18, %v3350_v31  ;;  %v3257_v43 = vadd.f32 %v3256_v36, %v7285_v42  ;;  %v5166_v31 = vld [vmem:[#allocation8 + $0x1d0] sm:$0xf0] }
 0x2c6   :  { %v5169_v50 = vor.u32 %v6201_v4, %v5166_v31  ;;  %v6147_v4 = vld [vmem:[#allocation8 + $0xc] sm:$0xf] }
 0x2c7   :  { %v3305_v6 = vpop.f32.mrf.mxu3  ;;  %4640 = vst [vmem:[#allocation11 + $0x158] sm:$0xff] %v3399_v55 }
 0x2c8   :  { %v3306_v8 = vadd.f32 %v3305_v6, %v3257_v43  ;;  %3770 = vmatpush.bf16.msra.mxu1 %v5169_v50 }
 0x2c9   :  { %v3352_v22 = vpop.f32.mrf.mxu0  ;;  %3454 = vmatmul.bf16.gmra.mxu2 %v7994_v3 }
 0x2ca   :  { %v3353_v5 = vadd.f32 %v3352_v22, %v3304_v51  ;;  %v6390_v22 = vld [vmem:[#allocation8 + $0x79c] sm:$0xf0] }
 0x2cb   :  { %v5909_v6 = vor.u32 %v6390_v22, %v5908_v19  ;;  %v5502_v19 = vld [vmem:[#allocation8 + $0x470] sm:$0xf0]  ;;  %v6333_v22 = vld [vmem:[#allocation8 + $0x5dc] sm:$0xf] }
 0x2cc   :  { %v3401_v33 = vpop.f32.mrf.mxu1  ;;  %3503 = vmatmul.bf16.gmra.mxu3 %v7995_v52  ;;  %v3259_v34 = vpop.f32.mrf.mxu2  ;;  %3547 = vmatmul.bf16.gmra.mxu0 %v7983_v49  ;;  %v5505_v44 = vor.u32 %v6285_v37, %v5502_v19 }
 0x2cd   :  { %v3402_v46 = vadd.f32 %v3401_v33, %v3353_v5  ;;  %v3260_v42 = vadd.f32 %v3259_v34, %v7291_v16  ;;  %3673 = vmatpush.bf16.msra.mxu3 %v5909_v6  ;;  %v5694_v6 = vld [vmem:[#allocation8 + $0x5f0] sm:$0xf0] }
 0x2ce   :  { %3813 = vmatpush.bf16.msrb.mxu2 %v5505_v44  ;;  %v6327_v44 = vld [vmem:[#allocation8 + $0x5ac] sm:$0xf] }
 0x2cf   :  { %v3308_v17 = vpop.f32.mrf.mxu3  ;;  %3596 = vmatmul.bf16.gmra.mxu1 %v7984_v12  ;;  %4646 = vst [vmem:[#allocation11 + $0x188] sm:$0xff] %v3402_v46 }
 0x2d0   :  { %v3309_v5 = vadd.f32 %v3308_v17, %v3260_v42  ;;  %v4950_v17 = vld [vmem:[#allocation8 + $0x20] sm:$0xf0] }
 0x2d1   :  { %v3354_v18 = vpop.f32.mrf.mxu0  ;;  %v4953_v31 = vor.u32 %v6147_v4, %v4950_v17  ;;  %v5886_v4 = vld [vmem:[#allocation8 + $0x770] sm:$0xf0]  ;;  %v6429_v17 = vld [vmem:[#allocation8 + $0x8dc] sm:$0xf] }
 0x2d2   :  { %v3355_v55 = vadd.f32 %v3354_v18, %v3306_v8  ;;  %v6195_v8 = vld [vmem:[#allocation8 + $0x18c] sm:$0xf]  ;;  %v5142_v18 = vld [vmem:[#allocation8 + $0x1a0] sm:$0xf0] }
 0x2d3   :  { %3722 = vmatpush.bf16.msra.mxu0 %v4953_v31  ;;  %v6078_v31 = vld [vmem:[#allocation8 + $0x8f0] sm:$0xf0] }
 0x2d4   :  { %v3403_v39 = vpop.f32.mrf.mxu1  ;;  %v3261_v15 = vpop.f32.mrf.mxu2 }
 0x2d5   :  { %v3404_v36 = vadd.f32 %v3403_v39, %v3355_v55  ;;  %v3262_v16 = vadd.f32 %v3261_v15, %v7297_v61  ;;  %v5145_v55 = vor.u32 %v6195_v8, %v5142_v18 }
 0x2d7   :  { %v3310_v51 = vpop.f32.mrf.mxu3  ;;  %4652 = vst [vmem:[#allocation11 + $0x1b8] sm:$0xff] %v3404_v36  ;;  %3771 = vmatpush.bf16.msra.mxu1 %v5145_v55 }
 0x2d8   :  { %v3311_v11 = vadd.f32 %v3310_v51, %v3262_v16 }
 0x2d9   :  { %v3357_v33 = vpop.f32.mrf.mxu0  ;;  %3459 = vmatmul.bf16.gmra.mxu2 %v7971_v53 }
 0x2da   :  { %v3358_v43 = vadd.f32 %v3357_v33, %v3309_v5  ;;  %v5697_v5 = vor.u32 %v6333_v22, %v5694_v6 }
 0x2dc   :  { %v3406_v46 = vpop.f32.mrf.mxu1  ;;  %3508 = vmatmul.bf16.gmra.mxu3 %v7972_v20  ;;  %v3264_v32 = vpop.f32.mrf.mxu2  ;;  %3552 = vmatmul.bf16.gmra.mxu0 %v7985_v21 }
 0x2dd   :  { %v3407_v34 = vadd.f32 %v3406_v46, %v3358_v43  ;;  %v3265_v61 = vadd.f32 %v3264_v32, %v7303_v58  ;;  %3862 = vmatpush.bf16.msrb.mxu3 %v5697_v5  ;;  %v7366_v5 = vld [vmem:[#allocation10] sm:$0x3f] }
 0x2df   :  { %v3313_v2 = vpop.f32.mrf.mxu3  ;;  %3601 = vmatmul.bf16.gmra.mxu1 %v7986_v28  ;;  %4658 = vst [vmem:[#allocation11 + $0x1e8] sm:$0xff] %v3407_v34 }
 0x2e0   :  { %v3314_v51 = vadd.f32 %v3313_v2, %v3265_v61  ;;  %v6381_v2 = vld [vmem:[#allocation8 + $0x75c] sm:$0xf] }
 0x2e1   :  { %v3359_v50 = vpop.f32.mrf.mxu0 }
 0x2e2   :  { %v3360_v39 = vadd.f32 %v3359_v50, %v3311_v11  ;;  %v5889_v11 = vor.u32 %v6381_v2, %v5886_v4  ;;  %v6081_v50 = vor.u32 %v6429_v17, %v6078_v31  ;;  %v6375_v17 = vld [vmem:[#allocation8 + $0x72c] sm:$0xf] }
 0x2e4   :  { %v3408_v42 = vpop.f32.mrf.mxu1  ;;  %v3266_v15 = vpop.f32.mrf.mxu2  ;;  %3911 = vmatpush.bf16.msrb.mxu0 %v5889_v11  ;;  %3960 = vmatpush.bf16.msrb.mxu1 %v6081_v50  ;;  %v6423_v11 = vld [vmem:[#allocation8 + $0x8ac] sm:$0xf]  ;;  %v6054_v50 = vld [vmem:[#allocation8 + $0x8c0] sm:$0xf0] }
 0x2e5   :  { %v3409_v36 = vadd.f32 %v3408_v42, %v3360_v39  ;;  %v3267_v58 = vadd.f32 %v3266_v15, %v7309_v40  ;;  %v5478_v15 = vld [vmem:[#allocation8 + $0x440] sm:$0xf0] }
 0x2e7   :  { %v3315_v48 = vpop.f32.mrf.mxu3  ;;  %4664 = vst [vmem:[#allocation11 + $0x218] sm:$0xff] %v3409_v36  ;;  %v6279_v36 = vld [vmem:[#allocation8 + $0x42c] sm:$0xf] }
 0x2e8   :  { %v3316_v8 = vadd.f32 %v3315_v48, %v3267_v58  ;;  %v5481_v19 = vor.u32 %v6279_v36, %v5478_v15  ;;  %v5670_v48 = vld [vmem:[#allocation8 + $0x5c0] sm:$0xf0]  ;;  %v6273_v36 = vld [vmem:[#allocation8 + $0x3fc] sm:$0xf]  ;;  %v5454_v15 = vld [vmem:[#allocation8 + $0x410] sm:$0xf0] }
 0x2e9   :  { %v3362_v33 = vpop.f32.mrf.mxu0  ;;  %3464 = vmatmul.bf16.gmra.mxu2 %v7975_v41  ;;  %v5673_v6 = vor.u32 %v6327_v44, %v5670_v48  ;;  %v5457_v48 = vor.u32 %v6273_v36, %v5454_v15 }
 0x2ea   :  { %v3363_v43 = vadd.f32 %v3362_v33, %v3314_v51  ;;  %3814 = vmatpush.bf16.msrb.mxu2 %v5481_v19  ;;  %v7369_v33 = vperm.slane %v7366_v5, 2 }
 0x2eb   :  { %3863 = vmatpush.bf16.msrb.mxu3 %v5673_v6  ;;  %v5646_v6 = vld [vmem:[#allocation8 + $0x590] sm:$0xf0] }
 0x2ec   :  { %v3411_v46 = vpop.f32.mrf.mxu1  ;;  %3513 = vmatmul.bf16.gmra.mxu3 %v7976_v0  ;;  %v3269_v34 = vpop.f32.mrf.mxu2  ;;  %3557 = vmatmul.bf16.gmra.mxu0 %v7987_v35 }
 0x2ed   :  { %v3412_v16 = vadd.f32 %v3411_v46, %v3363_v43  ;;  %v3270_v40 = vadd.f32 %v3269_v34, %v7315_v13  ;;  %v7996_v46 = vld [vmem:[#allocation47_spill] sm:$0xff] }
 0x2ee   :  { %3815 = vmatpush.bf16.msrb.mxu2 %v5457_v48 }
 0x2ef   :  { %v3318_v32 = vpop.f32.mrf.mxu3  ;;  %3606 = vmatmul.bf16.gmra.mxu1 %v7988_v56  ;;  %4670 = vst [vmem:[#allocation11 + $0x248] sm:$0xff] %v3412_v16 }
 0x2f0   :  { %v3319_v22 = vadd.f32 %v3318_v32, %v3270_v40 }
 0x2f1   :  { %v3364_v18 = vpop.f32.mrf.mxu0 }
 0x2f2   :  { %v3365_v55 = vadd.f32 %v3364_v18, %v3316_v8  ;;  %v5862_v8 = vld [vmem:[#allocation8 + $0x740] sm:$0xf0] }
 0x2f3   :  { %v5865_v18 = vor.u32 %v6375_v17, %v5862_v8 }
 0x2f4   :  { %v3413_v39 = vpop.f32.mrf.mxu1  ;;  %v3271_v61 = vpop.f32.mrf.mxu2 }
 0x2f5   :  { %v3414_v42 = vadd.f32 %v3413_v39, %v3365_v55  ;;  %v3272_v58 = vadd.f32 %v3271_v61, %v7321_v27  ;;  %v6057_v39 = vor.u32 %v6423_v11, %v6054_v50  ;;  %3912 = vmatpush.bf16.msrb.mxu0 %v5865_v18  ;;  %v7999_v11 = vld [vmem:[#allocation23_spill] sm:$0xff]  ;;  %v5838_v50 = vld [vmem:[#allocation8 + $0x710] sm:$0xf0] }
 0x2f6   :  { %v6369_v18 = vld [vmem:[#allocation8 + $0x6fc] sm:$0xf] }
 0x2f7   :  { %v3320_v37 = vpop.f32.mrf.mxu3  ;;  %4676 = vst [vmem:[#allocation11 + $0x278] sm:$0xff] %v3414_v42  ;;  %3961 = vmatpush.bf16.msrb.mxu1 %v6057_v39  ;;  %v5841_v39 = vor.u32 %v6369_v18, %v5838_v50  ;;  %v8001_v18 = vld [vmem:[#allocation53_spill] sm:$0xff] }
 0x2f8   :  { %v3321_v31 = vadd.f32 %v3320_v37, %v3272_v58  ;;  %v6321_v37 = vld [vmem:[#allocation8 + $0x57c] sm:$0xf] }
 0x2f9   :  { %v3367_v51 = vpop.f32.mrf.mxu0  ;;  %3625 = vmatmul.bf16.vlgmr.msra.gmra.mxu2 %v7028_v59  ;;  %3913 = vmatpush.bf16.msrb.mxu0 %v5841_v39 }
 0x2fa   :  { %v3368_v13 = vadd.f32 %v3367_v51, %v3319_v22  ;;  %v5649_v51 = vor.u32 %v6321_v37, %v5646_v6 }
 0x2fc   :  { %v3416_v43 = vpop.f32.mrf.mxu1  ;;  %3674 = vmatmul.bf16.vlgmr.msra.gmra.mxu3 %v7996_v46  ;;  %v3430_v34 = vpop.f32.mrf.mxu2  ;;  %3562 = vmatmul.bf16.gmra.mxu0 %v7044_v23 }
 0x2fd   :  { %v3417_v16 = vadd.f32 %v3416_v43, %v3368_v13  ;;  %v3431_v32 = vadd.f32 %v3430_v34, %v7369_v33  ;;  %v7997_v43 = vld [vmem:[#allocation50_spill] sm:$0xff]  ;;  %v7998_v34 = vld [vmem:[#allocation51_spill] sm:$0xff]  ;;  %3864 = vmatpush.bf16.msrb.mxu3 %v5649_v51 }
 0x2ff   :  { %v3479_v2 = vpop.f32.mrf.mxu3  ;;  %3611 = vmatmul.bf16.gmra.mxu1 %v7989_v60  ;;  %4682 = vst [vmem:[#allocation11 + $0x2a8] sm:$0xff] %v3417_v16  ;;  %v5526_v60 = vld [vmem:[#allocation8 + $0x4a0] sm:$0xf0] }
 0x300   :  { %v3480_v4 = vadd.f32 %v3479_v2, %v3431_v32 }
 0x301   :  { %v3369_v55 = vpop.f32.mrf.mxu0 }
 0x302   :  { %v3370_v27 = vadd.f32 %v3369_v55, %v3321_v31  ;;  %v6417_v55 = vld [vmem:[#allocation8 + $0x87c] sm:$0xf] }
 0x304   :  { %v3418_v40 = vpop.f32.mrf.mxu1  ;;  %v3432_v61 = vpop.f32.mrf.mxu2 }
 0x305   :  { %v3419_v42 = vadd.f32 %v3418_v40, %v3370_v27  ;;  %v3433_v19 = vadd.f32 %v3432_v61, %v7369_v33 }
 0x307   :  { %v3481_v44 = vpop.f32.mrf.mxu3  ;;  %4688 = vst [vmem:[#allocation11 + $0x2d8] sm:$0xff] %v3419_v42 }
 0x308   :  { %v3482_v22 = vadd.f32 %v3481_v44, %v3433_v19  ;;  %v6267_v19 = vld [vmem:[#allocation8 + $0x3cc] sm:$0xf]  ;;  %v5430_v44 = vld [vmem:[#allocation8 + $0x3e0] sm:$0xf0] }
 0x309   :  { %v3528_v13 = vpop.f32.mrf.mxu0  ;;  %3630 = vmatmul.bf16.gmra.mxu2 %v7997_v43  ;;  %v5433_v6 = vor.u32 %v6267_v19, %v5430_v44 }
 0x30a   :  { %v3529_v58 = vadd.f32 %v3528_v13, %v3480_v4  ;;  %v6030_v4 = vld [vmem:[#allocation8 + $0x890] sm:$0xf0]  ;;  %v6315_v13 = vld [vmem:[#allocation8 + $0x54c] sm:$0xf] }
 0x30b   :  { %v6033_v40 = vor.u32 %v6417_v55, %v6030_v4  ;;  %3816 = vmatpush.bf16.msrb.mxu2 %v5433_v6 }
 0x30c   :  { %v3577_v16 = vpop.f32.mrf.mxu1  ;;  %3679 = vmatmul.bf16.gmra.mxu3 %v7998_v34  ;;  %v3435_v2 = vpop.f32.mrf.mxu2  ;;  %3723 = vmatmul.bf16.vlgmr.msra.gmra.mxu0 %v6816_v9 }
 0x30d   :  { %v7379_v32 = vadd.f32 %v3577_v16, %v3529_v58  ;;  %v3436_v17 = vadd.f32 %v3435_v2, %v7369_v33  ;;  %3962 = vmatpush.bf16.msrb.mxu1 %v6033_v40  ;;  %v5622_v58 = vld [vmem:[#allocation8 + $0x560] sm:$0xf0]  ;;  %v6363_v40 = vld [vmem:[#allocation8 + $0x6cc] sm:$0xf] }
 0x30e   :  { %v5625_v16 = vor.u32 %v6315_v13, %v5622_v58  ;;  %v6261_v58 = vld [vmem:[#allocation8 + $0x39c] sm:$0xf] }
 0x30f   :  { %v3484_v8 = vpop.f32.mrf.mxu3  ;;  %3772 = vmatmul.bf16.vlgmr.msra.gmra.mxu1 %v7999_v11  ;;  %v6297_v11 = vld [vmem:[#allocation8 + $0x4bc] sm:$0xf] }
 0x310   :  { %v3485_v31 = vadd.f32 %v3484_v8, %v3436_v17  ;;  %v8000_v17 = vld [vmem:[#allocation52_spill] sm:$0xff]  ;;  %3865 = vmatpush.bf16.msrb.mxu3 %v5625_v16  ;;  %v5406_v16 = vld [vmem:[#allocation8 + $0x3b0] sm:$0xf0] }
 0x311   :  { %v3530_v27 = vpop.f32.mrf.mxu0 }
 0x312   :  { %v3531_v42 = vadd.f32 %v3530_v27, %v3482_v22 }
 0x314   :  { %v3579_v61 = vpop.f32.mrf.mxu1  ;;  %v3437_v15 = vpop.f32.mrf.mxu2 }
 0x315   :  { %v7384_v36 = vadd.f32 %v3579_v61, %v3531_v42  ;;  %v3438_v48 = vadd.f32 %v3437_v15, %v7369_v33  ;;  %v5814_v42 = vld [vmem:[#allocation8 + $0x6e0] sm:$0xf0]  ;;  %v6411_v61 = vld [vmem:[#allocation8 + $0x84c] sm:$0xf] }
 0x316   :  { %v5817_v15 = vor.u32 %v6363_v40, %v5814_v42 }
 0x317   :  { %v3486_v37 = vpop.f32.mrf.mxu3 }
 0x318   :  { %v3487_v51 = vadd.f32 %v3486_v37, %v3438_v48  ;;  %3914 = vmatpush.bf16.msrb.mxu0 %v5817_v15 }
 0x319   :  { %v3533_v2 = vpop.f32.mrf.mxu0  ;;  %3635 = vmatmul.bf16.gmra.mxu2 %v8000_v17 }
 0x31a   :  { %v3534_v22 = vadd.f32 %v3533_v2, %v3485_v31  ;;  %v6006_v31 = vld [vmem:[#allocation8 + $0x860] sm:$0xf0] }
 0x31b   :  { %v6009_v44 = vor.u32 %v6411_v61, %v6006_v31  ;;  %v8002_v61 = vld [vmem:[#allocation54_spill] sm:$0xff]  ;;  %v8003_v31 = vld [vmem:[#allocation55_spill] sm:$0xff] }
 0x31c   :  { %v3582_v8 = vpop.f32.mrf.mxu1  ;;  %3684 = vmatmul.bf16.gmra.mxu3 %v8001_v18  ;;  %v3440_v55 = vpop.f32.mrf.mxu2  ;;  %3728 = vmatmul.bf16.gmra.mxu0 %v6853_v38 }
 0x31d   :  { %v7389_v50 = vadd.f32 %v3582_v8, %v3534_v22  ;;  %v3441_v39 = vadd.f32 %v3440_v55, %v7369_v33  ;;  %3963 = vmatpush.bf16.msrb.mxu1 %v6009_v44  ;;  %v5409_v8 = vor.u32 %v6261_v58, %v5406_v16  ;;  %v6357_v58 = vld [vmem:[#allocation8 + $0x69c] sm:$0xf]  ;;  %v5790_v16 = vld [vmem:[#allocation8 + $0x6b0] sm:$0xf0] }
 0x31f   :  { %v3489_v4 = vpop.f32.mrf.mxu3  ;;  %3777 = vmatmul.bf16.gmra.mxu1 %v6855_v24  ;;  %3817 = vmatpush.bf16.msrb.mxu2 %v5409_v8  ;;  %v6303_v24 = vld [vmem:[#allocation8 + $0x4ec] sm:$0xf] }
 0x320   :  { %v3490_v27 = vadd.f32 %v3489_v4, %v3441_v39  ;;  %v6309_v39 = vld [vmem:[#allocation8 + $0x51c] sm:$0xf]  ;;  %v5598_v4 = vld [vmem:[#allocation8 + $0x530] sm:$0xf0] }
 0x321   :  { %v3535_v19 = vpop.f32.mrf.mxu0  ;;  %v5601_v40 = vor.u32 %v6309_v39, %v5598_v4 }
 0x322   :  { %v3536_v48 = vadd.f32 %v3535_v19, %v3487_v51 }
 0x323   :  { %3866 = vmatpush.bf16.msrb.mxu3 %v5601_v40 }
 0x324   :  { %v3584_v37 = vpop.f32.mrf.mxu1  ;;  %v3442_v13 = vpop.f32.mrf.mxu2 }
 0x325   :  { %v7394_v6 = vadd.f32 %v3584_v37, %v3536_v48  ;;  %v3443_v2 = vadd.f32 %v3442_v13, %v7369_v33 }
 0x327   :  { %v3491_v22 = vpop.f32.mrf.mxu3 }
 0x328   :  { %v3492_v55 = vadd.f32 %v3491_v22, %v3443_v2  ;;  %v6405_v2 = vld [vmem:[#allocation8 + $0x81c] sm:$0xf]  ;;  %v5793_v22 = vor.u32 %v6357_v58, %v5790_v16  ;;  %v5574_v58 = vld [vmem:[#allocation8 + $0x500] sm:$0xf0] }
 0x329   :  { %v3538_v42 = vpop.f32.mrf.mxu0  ;;  %3640 = vmatmul.bf16.gmra.mxu2 %v8002_v61  ;;  %v5577_v16 = vor.u32 %v6303_v24, %v5574_v58  ;;  %v6351_v24 = vld [vmem:[#allocation8 + $0x66c] sm:$0xf] }
 0x32a   :  { %v3539_v51 = vadd.f32 %v3538_v42, %v3490_v27  ;;  %v5982_v27 = vld [vmem:[#allocation8 + $0x830] sm:$0xf0]  ;;  %3915 = vmatpush.bf16.msrb.mxu0 %v5793_v22 }
 0x32b   :  { %v5985_v39 = vor.u32 %v6405_v2, %v5982_v27  ;;  %v8004_v2 = vld [vmem:[#allocation56_spill] sm:$0xff]  ;;  %v8005_v27 = vld [vmem:[#allocation57_spill] sm:$0xff]  ;;  %3867 = vmatpush.bf16.msrb.mxu3 %v5577_v16 }
 0x32c   :  { %v3587_v15 = vpop.f32.mrf.mxu1  ;;  %3689 = vmatmul.bf16.gmra.mxu3 %v8003_v31  ;;  %v3445_v44 = vpop.f32.mrf.mxu2  ;;  %3733 = vmatmul.bf16.gmra.mxu0 %v6886_v30 }
 0x32d   :  { %v7399_v19 = vadd.f32 %v3587_v15, %v3539_v51  ;;  %v3446_v48 = vadd.f32 %v3445_v44, %v7369_v33  ;;  %3964 = vmatpush.bf16.msrb.mxu1 %v5985_v39  ;;  %v6255_v15 = vld [vmem:[#allocation8 + $0x36c] sm:$0xf]  ;;  %v5382_v44 = vld [vmem:[#allocation8 + $0x380] sm:$0xf0] }
 0x32f   :  { %v3494_v37 = vpop.f32.mrf.mxu3  ;;  %3782 = vmatmul.bf16.gmra.mxu1 %v6888_v14 }
 0x330   :  { %v3495_v13 = vadd.f32 %v3494_v37, %v3446_v48  ;;  %v5385_v48 = vor.u32 %v6255_v15, %v5382_v44 }
 0x331   :  { %v3540_v8 = vpop.f32.mrf.mxu0 }
 0x332   :  { %v3541_v4 = vadd.f32 %v3540_v8, %v3492_v55  ;;  %3818 = vmatpush.bf16.msrb.mxu2 %v5385_v48 }
 0x334   :  { %v3589_v40 = vpop.f32.mrf.mxu1  ;;  %v3447_v51 = vpop.f32.mrf.mxu2 }
 0x335   :  { %v7404_v42 = vadd.f32 %v3589_v40, %v3541_v4  ;;  %v3448_v30 = vadd.f32 %v3447_v51, %v7369_v33  ;;  %v5766_v40 = vld [vmem:[#allocation8 + $0x680] sm:$0xf0]  ;;  %v6399_v51 = vld [vmem:[#allocation8 + $0x7ec] sm:$0xf] }
 0x336   :  { %v5769_v15 = vor.u32 %v6351_v24, %v5766_v40  ;;  %v5550_v24 = vld [vmem:[#allocation8 + $0x4d0] sm:$0xf0] }
 0x337   :  { %v3496_v14 = vpop.f32.mrf.mxu3  ;;  %v5553_v40 = vor.u32 %v6297_v11, %v5550_v24  ;;  %v6345_v11 = vld [vmem:[#allocation8 + $0x63c] sm:$0xf] }
 0x338   :  { %v3497_v37 = vadd.f32 %v3496_v14, %v3448_v30  ;;  %3916 = vmatpush.bf16.msrb.mxu0 %v5769_v15 }
 0x339   :  { %v3543_v38 = vpop.f32.mrf.mxu0  ;;  %3645 = vmatmul.bf16.gmra.mxu2 %v8004_v2  ;;  %3868 = vmatpush.bf16.msrb.mxu3 %v5553_v40 }
 0x33a   :  { %v3544_v55 = vadd.f32 %v3543_v38, %v3495_v13  ;;  %v5958_v38 = vld [vmem:[#allocation8 + $0x800] sm:$0xf0] }
 0x33b   :  { %v5961_v44 = vor.u32 %v6399_v51, %v5958_v38  ;;  %v8006_v51 = vld [vmem:[#allocation58_spill] sm:$0xff]  ;;  %v8007_v38 = vld [vmem:[#allocation59_spill] sm:$0xff] }
 0x33c   :  { %v3592_v22 = vpop.f32.mrf.mxu1  ;;  %3694 = vmatmul.bf16.gmra.mxu3 %v8005_v27  ;;  %v3450_v39 = vpop.f32.mrf.mxu2  ;;  %3738 = vmatmul.bf16.gmra.mxu0 %v6917_v54 }
 0x33d   :  { %v7409_v8 = vadd.f32 %v3592_v22, %v3544_v55  ;;  %v3451_v4 = vadd.f32 %v3450_v39, %v7369_v33  ;;  %3965 = vmatpush.bf16.msrb.mxu1 %v5961_v44  ;;  %v6249_v22 = vld [vmem:[#allocation8 + $0x33c] sm:$0xf]  ;;  %v5358_v39 = vld [vmem:[#allocation8 + $0x350] sm:$0xf0] }
 0x33f   :  { %v3499_v30 = vpop.f32.mrf.mxu3  ;;  %3787 = vmatmul.bf16.gmra.mxu1 %v7991_v7 }
 0x340   :  { %v3500_v14 = vadd.f32 %v3499_v30, %v3451_v4  ;;  %v5361_v4 = vor.u32 %v6249_v22, %v5358_v39 }
 0x341   :  { %v3545_v13 = vpop.f32.mrf.mxu0 }
 0x342   :  { %v3546_v48 = vadd.f32 %v3545_v13, %v3497_v37  ;;  %3819 = vmatpush.bf16.msrb.mxu2 %v5361_v4 }
 0x344   :  { %v3594_v58 = vpop.f32.mrf.mxu1  ;;  %v3452_v55 = vpop.f32.mrf.mxu2 }
 0x345   :  { %v7414_v16 = vadd.f32 %v3594_v58, %v3546_v48  ;;  %v3453_v54 = vadd.f32 %v3452_v55, %v7369_v33  ;;  %v5742_v58 = vld [vmem:[#allocation8 + $0x650] sm:$0xf0]  ;;  %v6393_v55 = vld [vmem:[#allocation8 + $0x7bc] sm:$0xf] }
 0x346   :  { %v5745_v22 = vor.u32 %v6345_v11, %v5742_v58 }
 0x347   :  { %v3501_v7 = vpop.f32.mrf.mxu3 }
 0x348   :  { %v3502_v30 = vadd.f32 %v3501_v7, %v3453_v54  ;;  %3917 = vmatpush.bf16.msrb.mxu0 %v5745_v22 }
 0x349   :  { %v3548_v9 = vpop.f32.mrf.mxu0  ;;  %3650 = vmatmul.bf16.gmra.mxu2 %v8006_v51 }
 0x34a   :  { %v3549_v37 = vadd.f32 %v3548_v9, %v3500_v14  ;;  %v5934_v9 = vld [vmem:[#allocation8 + $0x7d0] sm:$0xf0] }
 0x34b   :  { %v5937_v39 = vor.u32 %v6393_v55, %v5934_v9  ;;  %v8009_v9 = vld [vmem:[#allocation60_spill] sm:$0xff] }
 0x34c   :  { %v3597_v15 = vpop.f32.mrf.mxu1  ;;  %3699 = vmatmul.bf16.gmra.mxu3 %v8007_v38  ;;  %v3455_v44 = vpop.f32.mrf.mxu2  ;;  %3743 = vmatmul.bf16.gmra.mxu0 %v7992_v47  ;;  %v6291_v47 = vld [vmem:[#allocation8 + $0x48c] sm:$0xf] }
 0x34d   :  { %v7419_v13 = vadd.f32 %v3597_v15, %v3549_v37  ;;  %v3456_v48 = vadd.f32 %v3455_v44, %v7369_v33  ;;  %3966 = vmatpush.bf16.msrb.mxu1 %v5937_v39  ;;  %v6243_v15 = vld [vmem:[#allocation8 + $0x30c] sm:$0xf]  ;;  %v5334_v44 = vld [vmem:[#allocation8 + $0x320] sm:$0xf0]  ;;  %v5529_v23 = vor.u32 %v6291_v47, %v5526_v60 }
 0x34f   :  { %v3504_v54 = vpop.f32.mrf.mxu3  ;;  %3792 = vmatmul.bf16.gmra.mxu1 %v7993_v63  ;;  %3869 = vmatpush.bf16.msrb.mxu3 %v5529_v23  ;;  %v6339_v23 = vld [vmem:[#allocation8 + $0x60c] sm:$0xf] }
 0x350   :  { %v3505_v7 = vadd.f32 %v3504_v54, %v3456_v48  ;;  %v5337_v54 = vor.u32 %v6243_v15, %v5334_v44 }
 0x351   :  { %v3550_v14 = vpop.f32.mrf.mxu0 }
 0x352   :  { %v3551_v4 = vadd.f32 %v3550_v14, %v3502_v30  ;;  %3820 = vmatpush.bf16.msrb.mxu2 %v5337_v54  ;;  %v8008_v30 = vld [vmem:[#allocation46_spill] sm:$0xff] }
 0x354   :  { %v3599_v24 = vpop.f32.mrf.mxu1  ;;  %v3457_v37 = vpop.f32.mrf.mxu2 }
 0x355   :  { %v7424_v40 = vadd.f32 %v3599_v24, %v3551_v4  ;;  %v3458_v63 = vadd.f32 %v3457_v37, %v7369_v33  ;;  %v6387_v37 = vld [vmem:[#allocation8 + $0x78c] sm:$0xf] }
 0x357   :  { %v3506_v48 = vpop.f32.mrf.mxu3 }
 0x358   :  { %v3507_v11 = vadd.f32 %v3506_v48, %v3458_v63  ;;  %v5718_v63 = vld [vmem:[#allocation8 + $0x620] sm:$0xf0] }
 0x359   :  { %v3553_v58 = vpop.f32.mrf.mxu0  ;;  %3655 = vmatmul.bf16.gmra.mxu2 %v8008_v30  ;;  %v5721_v44 = vor.u32 %v6339_v23, %v5718_v63  ;;  %v5910_v48 = vld [vmem:[#allocation8 + $0x7a0] sm:$0xf0]  ;;  %v8010_v30 = vld [vmem:[#allocation61_spill] sm:$0xff] }
 0x35a   :  { %v3554_v55 = vadd.f32 %v3553_v58, %v3505_v7  ;;  %v5913_v54 = vor.u32 %v6387_v37, %v5910_v48  ;;  %v8011_v37 = vld [vmem:[#allocation62_spill] sm:$0xff] }
 0x35b   :  { %3918 = vmatpush.bf16.msrb.mxu0 %v5721_v44 }
 0x35c   :  { %v3602_v22 = vpop.f32.mrf.mxu1  ;;  %3704 = vmatmul.bf16.gmra.mxu3 %v8009_v9  ;;  %v3460_v39 = vpop.f32.mrf.mxu2  ;;  %3748 = vmatmul.bf16.gmra.mxu0 %v7994_v3  ;;  %v6193_v3 = vld [vmem:[#allocation8 + $0x174] sm:$0xf0] }
 0x35d   :  { %v7429_v14 = vadd.f32 %v3602_v22, %v3554_v55  ;;  %v3461_v4 = vadd.f32 %v3460_v39, %v7369_v33  ;;  %v5124_v22 = vld [vmem:[#allocation8 + $0x160] sm:$0xf]  ;;  %3967 = vmatpush.bf16.msrb.mxu1 %v5913_v54 }
 0x35f   :  { %v3509_v24 = vpop.f32.mrf.mxu3  ;;  %3797 = vmatmul.bf16.gmra.mxu1 %v7995_v52 }
 0x360   :  { %v3510_v60 = vadd.f32 %v3509_v24, %v3461_v4  ;;  %v5125_v4 = vor.u32 %v6193_v3, %v5124_v22  ;;  %v6289_v22 = vld [vmem:[#allocation8 + $0x474] sm:$0xf0] }
 0x361   :  { %v3555_v47 = vpop.f32.mrf.mxu0 }
 0x362   :  { %v3556_v15 = vadd.f32 %v3555_v47, %v3507_v11  ;;  %4009 = vmatpush.bf16.msra.mxu2 %v5125_v4  ;;  %v5316_v11 = vld [vmem:[#allocation8 + $0x2e0] sm:$0xf]  ;;  %v6241_v47 = vld [vmem:[#allocation8 + $0x2f4] sm:$0xf0] }
 0x364   :  { %v3604_v7 = vpop.f32.mrf.mxu1  ;;  %v3462_v55 = vpop.f32.mrf.mxu2 }
 0x365   :  { %v7434_v58 = vadd.f32 %v3604_v7, %v3556_v15  ;;  %v3463_v39 = vadd.f32 %v3462_v55, %v7369_v33  ;;  %v5317_v15 = vor.u32 %v6241_v47, %v5316_v11  ;;  %v5508_v55 = vld [vmem:[#allocation8 + $0x460] sm:$0xf]  ;;  %v6337_v11 = vld [vmem:[#allocation8 + $0x5f4] sm:$0xf0] }
 0x366   :  { %v5509_v4 = vor.u32 %v6289_v22, %v5508_v55 }
 0x367   :  { %v3511_v9 = vpop.f32.mrf.mxu3  ;;  %4058 = vmatpush.bf16.msra.mxu3 %v5317_v15  ;;  %v5100_v15 = vld [vmem:[#allocation8 + $0x130] sm:$0xf] }
 0x368   :  { %v3512_v24 = vadd.f32 %v3511_v9, %v3463_v39  ;;  %4107 = vmatpush.bf16.msra.mxu0 %v5509_v4 }
 0x369   :  { %v3558_v52 = vpop.f32.mrf.mxu0  ;;  %3660 = vmatmul.bf16.gmra.mxu2 %v8010_v30 }
 0x36a   :  { %v3559_v23 = vadd.f32 %v3558_v52, %v3510_v60  ;;  %v5700_v52 = vld [vmem:[#allocation8 + $0x5e0] sm:$0xf] }
 0x36b   :  { %v5701_v47 = vor.u32 %v6337_v11, %v5700_v52  ;;  %v5484_v11 = vld [vmem:[#allocation8 + $0x430] sm:$0xf] }
 0x36c   :  { %v3607_v63 = vpop.f32.mrf.mxu1  ;;  %3709 = vmatmul.bf16.gmra.mxu3 %v8011_v37  ;;  %v3465_v44 = vpop.f32.mrf.mxu2  ;;  %3753 = vmatmul.bf16.gmra.mxu0 %v7971_v53  ;;  %v6187_v53 = vld [vmem:[#allocation8 + $0x144] sm:$0xf0] }
 0x36d   :  { %v7439_v7 = vadd.f32 %v3607_v63, %v3559_v23  ;;  %v3466_v3 = vadd.f32 %v3465_v44, %v7369_v33  ;;  %4156 = vmatpush.bf16.msra.mxu1 %v5701_v47 }
 0x36f   :  { %v3514_v9 = vpop.f32.mrf.mxu3  ;;  %3802 = vmatmul.bf16.gmra.mxu1 %v7972_v20 }
 0x370   :  { %v3515_v48 = vadd.f32 %v3514_v9, %v3466_v3  ;;  %v5101_v3 = vor.u32 %v6187_v53, %v5100_v15  ;;  %v5676_v15 = vld [vmem:[#allocation8 + $0x5b0] sm:$0xf] }
 0x371   :  { %v3560_v54 = vpop.f32.mrf.mxu0 }
 0x372   :  { %v3561_v60 = vadd.f32 %v3560_v54, %v3512_v24  ;;  %4010 = vmatpush.bf16.msra.mxu2 %v5101_v3  ;;  %v5292_v24 = vld [vmem:[#allocation8 + $0x2b0] sm:$0xf]  ;;  %v6235_v54 = vld [vmem:[#allocation8 + $0x2c4] sm:$0xf0] }
 0x373   :  { %v5293_v52 = vor.u32 %v6235_v54, %v5292_v24 }
 0x374   :  { %v3609_v39 = vpop.f32.mrf.mxu1  ;;  %v3467_v63 = vpop.f32.mrf.mxu2 }
 0x375   :  { %v7444_v23 = vadd.f32 %v3609_v39, %v3561_v60  ;;  %v3468_v44 = vadd.f32 %v3467_v63, %v7369_v33  ;;  %4059 = vmatpush.bf16.msra.mxu3 %v5293_v52 }
 0x377   :  { %v3516_v37 = vpop.f32.mrf.mxu3 }
 0x378   :  { %v3517_v9 = vadd.f32 %v3516_v37, %v3468_v44  ;;  %v6331_v44 = vld [vmem:[#allocation8 + $0x5c4] sm:$0xf0] }
 0x379   :  { %v3563_v20 = vpop.f32.mrf.mxu0  ;;  %3821 = vmatmul.bf16.vlgmr.msrb.gmra.mxu2 %v7973_v57  ;;  %v5677_v3 = vor.u32 %v6331_v44, %v5676_v15 }
 0x37a   :  { %v3564_v55 = vadd.f32 %v3563_v20, %v3515_v48  ;;  %v6283_v20 = vld [vmem:[#allocation8 + $0x444] sm:$0xf0] }
 0x37b   :  { %v5485_v63 = vor.u32 %v6283_v20, %v5484_v11  ;;  %4157 = vmatpush.bf16.msra.mxu1 %v5677_v3  ;;  %v5460_v3 = vld [vmem:[#allocation8 + $0x400] sm:$0xf] }
 0x37c   :  { %v3612_v22 = vpop.f32.mrf.mxu1  ;;  %3870 = vmatmul.bf16.vlgmr.msrb.gmra.mxu3 %v7974_v25  ;;  %v3626_v39 = vpop.f32.mrf.mxu2  ;;  %3758 = vmatmul.bf16.gmra.mxu0 %v7975_v41 }
 0x37d   :  { %v7449_v60 = vadd.f32 %v3612_v22, %v3564_v55  ;;  %v3627_v53 = vadd.f32 %v3626_v39, %v7379_v32  ;;  %4108 = vmatpush.bf16.msra.mxu0 %v5485_v63  ;;  %v5076_v55 = vld [vmem:[#allocation8 + $0x100] sm:$0xf]  ;;  %v6181_v32 = vld [vmem:[#allocation8 + $0x114] sm:$0xf0] }
 0x37e   :  { %v5077_v39 = vor.u32 %v6181_v32, %v5076_v55 }
 0x37f   :  { %v3675_v33 = vpop.f32.mrf.mxu3  ;;  %3807 = vmatmul.bf16.gmra.mxu1 %v7976_v0 }
 0x380   :  { %v3676_v37 = vadd.f32 %v3675_v33, %v3627_v53  ;;  %v7458_v53 = vperm.slane %v7366_v5, 3  ;;  %4011 = vmatpush.bf16.msra.mxu2 %v5077_v39  ;;  %v6325_v39 = vld [vmem:[#allocation8 + $0x594] sm:$0xf0] }
 0x381   :  { %v3565_v4 = vpop.f32.mrf.mxu0 }
 0x382   :  { %4599 = vst [vmem:[#allocation11 + $0x10] sm:$0xff] %v3676_v37  ;;  %v3566_v48 = vadd.f32 %v3565_v4, %v3517_v9  ;;  %v5268_v37 = vld [vmem:[#allocation8 + $0x280] sm:$0xf]  ;;  %v6229_v4 = vld [vmem:[#allocation8 + $0x294] sm:$0xf0] }
 0x384   :  { %v3614_v47 = vpop.f32.mrf.mxu1  ;;  %v3628_v54 = vpop.f32.mrf.mxu2 }
 0x385   :  { %v7454_v24 = vadd.f32 %v3614_v47, %v3566_v48  ;;  %v3629_v22 = vadd.f32 %v3628_v54, %v7384_v36  ;;  %v5269_v36 = vor.u32 %v6229_v4, %v5268_v37  ;;  %v6277_v54 = vld [vmem:[#allocation8 + $0x414] sm:$0xf0]  ;;  %v6175_v4 = vld [vmem:[#allocation8 + $0xe4] sm:$0xf0] }
 0x387   :  { %v3677_v52 = vpop.f32.mrf.mxu3  ;;  %4060 = vmatpush.bf16.msra.mxu3 %v5269_v36 }
 0x388   :  { %v3678_v9 = vadd.f32 %v3677_v52, %v3629_v22  ;;  %v5461_v22 = vor.u32 %v6277_v54, %v5460_v3  ;;  %v5652_v52 = vld [vmem:[#allocation8 + $0x580] sm:$0xf] }
 0x389   :  { %v3724_v33 = vpop.f32.mrf.mxu0  ;;  %3826 = vmatmul.bf16.gmra.mxu2 %v7977_v1 }
 0x38a   :  { %4605 = vst [vmem:[#allocation11 + $0x40] sm:$0xff] %v3678_v9  ;;  %v3725_v11 = vadd.f32 %v3724_v33, %v7458_v53  ;;  %v5653_v9 = vor.u32 %v6325_v39, %v5652_v52  ;;  %4109 = vmatpush.bf16.msra.mxu0 %v5461_v22 }
 0x38c   :  { %v3773_v20 = vpop.f32.mrf.mxu1  ;;  %3875 = vmatmul.bf16.gmra.mxu3 %v7978_v10  ;;  %v3631_v47 = vpop.f32.mrf.mxu2  ;;  %3919 = vmatmul.bf16.vlgmr.msrb.gmra.mxu0 %v7028_v59 }
 0x38d   :  { %v7463_v48 = vadd.f32 %v3773_v20, %v3725_v11  ;;  %v3632_v5 = vadd.f32 %v3631_v47, %v7389_v50  ;;  %v5052_v50 = vld [vmem:[#allocation8 + $0xd0] sm:$0xf]  ;;  %4158 = vmatpush.bf16.msra.mxu1 %v5653_v9 }
 0x38e   :  { %v5053_v36 = vor.u32 %v6175_v4, %v5052_v50  ;;  %v5436_v9 = vld [vmem:[#allocation8 + $0x3d0] sm:$0xf] }
 0x38f   :  { %v3680_v63 = vpop.f32.mrf.mxu3  ;;  %3968 = vmatmul.bf16.vlgmr.msrb.gmra.mxu1 %v7996_v46 }
 0x390   :  { %v3681_v15 = vadd.f32 %v3680_v63, %v3632_v5  ;;  %4012 = vmatpush.bf16.msra.mxu2 %v5053_v36  ;;  %v5244_v63 = vld [vmem:[#allocation8 + $0x250] sm:$0xf]  ;;  %v6319_v36 = vld [vmem:[#allocation8 + $0x564] sm:$0xf0] }
 0x391   :  { %v3726_v44 = vpop.f32.mrf.mxu0 }
 0x392   :  { %4611 = vst [vmem:[#allocation11 + $0x70] sm:$0xff] %v3681_v15  ;;  %v3727_v55 = vadd.f32 %v3726_v44, %v7458_v53  ;;  %v6223_v15 = vld [vmem:[#allocation8 + $0x264] sm:$0xf0] }
 0x393   :  { %v5245_v54 = vor.u32 %v6223_v15, %v5244_v63  ;;  %v6169_v15 = vld [vmem:[#allocation8 + $0xb4] sm:$0xf0] }
 0x394   :  { %v3775_v32 = vpop.f32.mrf.mxu1  ;;  %v3633_v37 = vpop.f32.mrf.mxu2 }
 0x395   :  { %v7469_v33 = vadd.f32 %v3775_v32, %v3727_v55  ;;  %v3634_v11 = vadd.f32 %v3633_v37, %v7394_v6  ;;  %4061 = vmatpush.bf16.msra.mxu3 %v5245_v54  ;;  %v6271_v37 = vld [vmem:[#allocation8 + $0x3e4] sm:$0xf0] }
 0x397   :  { %v3682_v20 = vpop.f32.mrf.mxu3 }
 0x398   :  { %v3683_v47 = vadd.f32 %v3682_v20, %v3634_v11  ;;  %v5437_v11 = vor.u32 %v6271_v37, %v5436_v9  ;;  %v5628_v20 = vld [vmem:[#allocation8 + $0x550] sm:$0xf] }
 0x399   :  { %v3729_v5 = vpop.f32.mrf.mxu0  ;;  %3831 = vmatmul.bf16.gmra.mxu2 %v7979_v29 }
 0x39a   :  { %4617 = vst [vmem:[#allocation11 + $0xa0] sm:$0xff] %v3683_v47  ;;  %v3730_v44 = vadd.f32 %v3729_v5, %v7458_v53  ;;  %v5629_v47 = vor.u32 %v6319_v36, %v5628_v20  ;;  %4110 = vmatpush.bf16.msra.mxu0 %v5437_v11 }
 0x39c   :  { %v3778_v3 = vpop.f32.mrf.mxu1  ;;  %3880 = vmatmul.bf16.gmra.mxu3 %v7980_v26  ;;  %v3636_v6 = vpop.f32.mrf.mxu2  ;;  %3924 = vmatmul.bf16.gmra.mxu0 %v7997_v43 }
 0x39d   :  { %v7475_v55 = vadd.f32 %v3778_v3, %v3730_v44  ;;  %v3637_v32 = vadd.f32 %v3636_v6, %v7399_v19  ;;  %v5028_v19 = vld [vmem:[#allocation8 + $0xa0] sm:$0xf]  ;;  %4159 = vmatpush.bf16.msra.mxu1 %v5629_v47 }
 0x39e   :  { %v5029_v54 = vor.u32 %v6169_v15, %v5028_v19  ;;  %v5412_v47 = vld [vmem:[#allocation8 + $0x3a0] sm:$0xf] }
 0x39f   :  { %v3685_v22 = vpop.f32.mrf.mxu3  ;;  %3973 = vmatmul.bf16.gmra.mxu1 %v7998_v34 }
 0x3a0   :  { %v3686_v52 = vadd.f32 %v3685_v22, %v3637_v32  ;;  %4013 = vmatpush.bf16.msra.mxu2 %v5029_v54  ;;  %v5220_v22 = vld [vmem:[#allocation8 + $0x220] sm:$0xf]  ;;  %v6313_v54 = vld [vmem:[#allocation8 + $0x534] sm:$0xf0] }
 0x3a1   :  { %v3731_v39 = vpop.f32.mrf.mxu0 }
 0x3a2   :  { %4623 = vst [vmem:[#allocation11 + $0xd0] sm:$0xff] %v3686_v52  ;;  %v3732_v50 = vadd.f32 %v3731_v39, %v7458_v53  ;;  %v6217_v52 = vld [vmem:[#allocation8 + $0x234] sm:$0xf0] }
 0x3a3   :  { %v5221_v37 = vor.u32 %v6217_v52, %v5220_v22  ;;  %v6163_v52 = vld [vmem:[#allocation8 + $0x84] sm:$0xf0] }
 0x3a4   :  { %v3780_v4 = vpop.f32.mrf.mxu1  ;;  %v3638_v63 = vpop.f32.mrf.mxu2 }
 0x3a5   :  { %v7481_v5 = vadd.f32 %v3780_v4, %v3732_v50  ;;  %v3639_v44 = vadd.f32 %v3638_v63, %v7404_v42  ;;  %4062 = vmatpush.bf16.msra.mxu3 %v5221_v37  ;;  %v6265_v63 = vld [vmem:[#allocation8 + $0x3b4] sm:$0xf0] }
 0x3a7   :  { %v3687_v3 = vpop.f32.mrf.mxu3 }
 0x3a8   :  { %v3688_v6 = vadd.f32 %v3687_v3, %v3639_v44  ;;  %v5413_v44 = vor.u32 %v6265_v63, %v5412_v47  ;;  %v5604_v3 = vld [vmem:[#allocation8 + $0x520] sm:$0xf] }
 0x3a9   :  { %v3734_v32 = vpop.f32.mrf.mxu0  ;;  %3836 = vmatmul.bf16.gmra.mxu2 %v7981_v45 }
 0x3aa   :  { %4629 = vst [vmem:[#allocation11 + $0x100] sm:$0xff] %v3688_v6  ;;  %v3735_v39 = vadd.f32 %v3734_v32, %v7458_v53  ;;  %v5605_v6 = vor.u32 %v6313_v54, %v5604_v3  ;;  %4111 = vmatpush.bf16.msra.mxu0 %v5413_v44 }
 0x3ac   :  { %v3783_v9 = vpop.f32.mrf.mxu1  ;;  %3885 = vmatmul.bf16.gmra.mxu3 %v7982_v62  ;;  %v3641_v42 = vpop.f32.mrf.mxu2  ;;  %3929 = vmatmul.bf16.gmra.mxu0 %v8000_v17 }
 0x3ad   :  { %v7487_v50 = vadd.f32 %v3783_v9, %v3735_v39  ;;  %v3642_v4 = vadd.f32 %v3641_v42, %v7409_v8  ;;  %v5004_v8 = vld [vmem:[#allocation8 + $0x70] sm:$0xf]  ;;  %4160 = vmatpush.bf16.msra.mxu1 %v5605_v6 }
 0x3ae   :  { %v5005_v37 = vor.u32 %v6163_v52, %v5004_v8  ;;  %v5388_v6 = vld [vmem:[#allocation8 + $0x370] sm:$0xf] }
 0x3af   :  { %v3690_v11 = vpop.f32.mrf.mxu3  ;;  %3978 = vmatmul.bf16.gmra.mxu1 %v8001_v18 }
 0x3b0   :  { %v3691_v20 = vadd.f32 %v3690_v11, %v3642_v4  ;;  %4014 = vmatpush.bf16.msra.mxu2 %v5005_v37  ;;  %v5196_v11 = vld [vmem:[#allocation8 + $0x1f0] sm:$0xf]  ;;  %v6307_v37 = vld [vmem:[#allocation8 + $0x504] sm:$0xf0] }
 0x3b1   :  { %v3736_v36 = vpop.f32.mrf.mxu0 }
 0x3b2   :  { %4635 = vst [vmem:[#allocation11 + $0x130] sm:$0xff] %v3691_v20  ;;  %v3737_v19 = vadd.f32 %v3736_v36, %v7458_v53  ;;  %v6211_v20 = vld [vmem:[#allocation8 + $0x204] sm:$0xf0] }
 0x3b3   :  { %v5197_v63 = vor.u32 %v6211_v20, %v5196_v11  ;;  %v6157_v20 = vld [vmem:[#allocation8 + $0x54] sm:$0xf0] }
 0x3b4   :  { %v3785_v15 = vpop.f32.mrf.mxu1  ;;  %v3643_v22 = vpop.f32.mrf.mxu2 }
 0x3b5   :  { %v7493_v32 = vadd.f32 %v3785_v15, %v3737_v19  ;;  %v3644_v39 = vadd.f32 %v3643_v22, %v7414_v16  ;;  %4063 = vmatpush.bf16.msra.mxu3 %v5197_v63  ;;  %v6259_v22 = vld [vmem:[#allocation8 + $0x384] sm:$0xf0] }
 0x3b7   :  { %v3692_v9 = vpop.f32.mrf.mxu3 }
 0x3b8   :  { %v3693_v42 = vadd.f32 %v3692_v9, %v3644_v39  ;;  %v5389_v39 = vor.u32 %v6259_v22, %v5388_v6  ;;  %v5580_v9 = vld [vmem:[#allocation8 + $0x4f0] sm:$0xf] }
 0x3b9   :  { %v3739_v4 = vpop.f32.mrf.mxu0  ;;  %3841 = vmatmul.bf16.gmra.mxu2 %v7983_v49 }
 0x3ba   :  { %4641 = vst [vmem:[#allocation11 + $0x160] sm:$0xff] %v3693_v42  ;;  %v3740_v36 = vadd.f32 %v3739_v4, %v7458_v53  ;;  %v5581_v42 = vor.u32 %v6307_v37, %v5580_v9  ;;  %4112 = vmatpush.bf16.msra.mxu0 %v5389_v39 }
 0x3bc   :  { %v3788_v47 = vpop.f32.mrf.mxu1  ;;  %3890 = vmatmul.bf16.gmra.mxu3 %v7984_v12  ;;  %v3646_v16 = vpop.f32.mrf.mxu2  ;;  %3934 = vmatmul.bf16.gmra.mxu0 %v8002_v61 }
 0x3bd   :  { %v7499_v19 = vadd.f32 %v3788_v47, %v3740_v36  ;;  %v3647_v15 = vadd.f32 %v3646_v16, %v7419_v13  ;;  %v4980_v13 = vld [vmem:[#allocation8 + $0x40] sm:$0xf]  ;;  %4161 = vmatpush.bf16.msra.mxu1 %v5581_v42 }
 0x3be   :  { %v4981_v63 = vor.u32 %v6157_v20, %v4980_v13  ;;  %v5364_v42 = vld [vmem:[#allocation8 + $0x340] sm:$0xf] }
 0x3bf   :  { %v3695_v44 = vpop.f32.mrf.mxu3  ;;  %3983 = vmatmul.bf16.gmra.mxu1 %v8003_v31 }
 0x3c0   :  { %v3696_v3 = vadd.f32 %v3695_v44, %v3647_v15  ;;  %4015 = vmatpush.bf16.msra.mxu2 %v4981_v63  ;;  %v5172_v44 = vld [vmem:[#allocation8 + $0x1c0] sm:$0xf]  ;;  %v6301_v63 = vld [vmem:[#allocation8 + $0x4d4] sm:$0xf0] }
 0x3c1   :  { %v3741_v54 = vpop.f32.mrf.mxu0 }
 0x3c2   :  { %4647 = vst [vmem:[#allocation11 + $0x190] sm:$0xff] %v3696_v3  ;;  %v3742_v8 = vadd.f32 %v3741_v54, %v7458_v53  ;;  %v6205_v3 = vld [vmem:[#allocation8 + $0x1d4] sm:$0xf0] }
 0x3c3   :  { %v5173_v22 = vor.u32 %v6205_v3, %v5172_v44  ;;  %v6151_v3 = vld [vmem:[#allocation8 + $0x24] sm:$0xf0] }
 0x3c4   :  { %v3790_v52 = vpop.f32.mrf.mxu1  ;;  %v3648_v11 = vpop.f32.mrf.mxu2 }
 0x3c5   :  { %v7505_v4 = vadd.f32 %v3790_v52, %v3742_v8  ;;  %v3649_v36 = vadd.f32 %v3648_v11, %v7424_v40  ;;  %4064 = vmatpush.bf16.msra.mxu3 %v5173_v22  ;;  %v6253_v11 = vld [vmem:[#allocation8 + $0x354] sm:$0xf0] }
 0x3c7   :  { %v3697_v47 = vpop.f32.mrf.mxu3 }
 0x3c8   :  { %v3698_v16 = vadd.f32 %v3697_v47, %v3649_v36  ;;  %v5365_v36 = vor.u32 %v6253_v11, %v5364_v42  ;;  %v5556_v47 = vld [vmem:[#allocation8 + $0x4c0] sm:$0xf] }
 0x3c9   :  { %v3744_v15 = vpop.f32.mrf.mxu0  ;;  %3846 = vmatmul.bf16.gmra.mxu2 %v7985_v21 }
 0x3ca   :  { %4653 = vst [vmem:[#allocation11 + $0x1c0] sm:$0xff] %v3698_v16  ;;  %v3745_v54 = vadd.f32 %v3744_v15, %v7458_v53  ;;  %v5557_v16 = vor.u32 %v6301_v63, %v5556_v47  ;;  %4113 = vmatpush.bf16.msra.mxu0 %v5365_v36  ;;  %v5340_v63 = vld [vmem:[#allocation8 + $0x310] sm:$0xf] }
 0x3cc   :  { %v3793_v6 = vpop.f32.mrf.mxu1  ;;  %3895 = vmatmul.bf16.gmra.mxu3 %v7986_v28  ;;  %v3651_v40 = vpop.f32.mrf.mxu2  ;;  %3939 = vmatmul.bf16.gmra.mxu0 %v8004_v2  ;;  %v6421_v2 = vld [vmem:[#allocation8 + $0x894] sm:$0xf0] }
 0x3cd   :  { %v7511_v8 = vadd.f32 %v3793_v6, %v3745_v54  ;;  %v3652_v52 = vadd.f32 %v3651_v40, %v7429_v14  ;;  %v4956_v14 = vld [vmem:[#allocation8 + $0x10] sm:$0xf]  ;;  %4162 = vmatpush.bf16.msra.mxu1 %v5557_v16  ;;  %v6247_v16 = vld [vmem:[#allocation8 + $0x324] sm:$0xf0] }
 0x3ce   :  { %v5148_v54 = vld [vmem:[#allocation8 + $0x190] sm:$0xf]  ;;  %v4957_v40 = vor.u32 %v6151_v3, %v4956_v14  ;;  %v5341_v14 = vor.u32 %v6247_v16, %v5340_v63  ;;  %v6295_v3 = vld [vmem:[#allocation8 + $0x4a4] sm:$0xf0] }
 0x3cf   :  { %v3700_v39 = vpop.f32.mrf.mxu3  ;;  %3988 = vmatmul.bf16.gmra.mxu1 %v8005_v27  ;;  %v8012_v16 = vld [vmem:[#allocation48_spill] sm:$0xff]  ;;  %v6036_v27 = vld [vmem:[#allocation8 + $0x880] sm:$0xf] }
 0x3d0   :  { %v3701_v9 = vadd.f32 %v3700_v39, %v3652_v52  ;;  %v6199_v52 = vld [vmem:[#allocation8 + $0x1a4] sm:$0xf0]  ;;  %4016 = vmatpush.bf16.msra.mxu2 %v4957_v40  ;;  %4114 = vmatpush.bf16.msra.mxu0 %v5341_v14 }
 0x3d1   :  { %v3746_v37 = vpop.f32.mrf.mxu0  ;;  %v5149_v39 = vor.u32 %v6199_v52, %v5148_v54 }
 0x3d2   :  { %4659 = vst [vmem:[#allocation11 + $0x1f0] sm:$0xff] %v3701_v9  ;;  %v3747_v13 = vadd.f32 %v3746_v37, %v7458_v53 }
 0x3d3   :  { %4065 = vmatpush.bf16.msra.mxu3 %v5149_v39  ;;  %v5892_v39 = vld [vmem:[#allocation8 + $0x760] sm:$0xf] }
 0x3d4   :  { %v3795_v20 = vpop.f32.mrf.mxu1  ;;  %v3653_v44 = vpop.f32.mrf.mxu2 }
 0x3d5   :  { %v7517_v15 = vadd.f32 %v3795_v20, %v3747_v13  ;;  %v3654_v6 = vadd.f32 %v3653_v44, %v7434_v58  ;;  %v5532_v44 = vld [vmem:[#allocation8 + $0x490] sm:$0xf] }
 0x3d7   :  { %v3702_v22 = vpop.f32.mrf.mxu3 }
 0x3d8   :  { %v3703_v9 = vadd.f32 %v3702_v22, %v3654_v6  ;;  %v5533_v6 = vor.u32 %v6295_v3, %v5532_v44  ;;  %v8013_v3 = vld [vmem:[#allocation49_spill] sm:$0xff] }
 0x3d9   :  { %v3749_v37 = vpop.f32.mrf.mxu0  ;;  %3851 = vmatmul.bf16.gmra.mxu2 %v7987_v35 }
 0x3da   :  { %4665 = vst [vmem:[#allocation11 + $0x220] sm:$0xff] %v3703_v9  ;;  %v3750_v42 = vadd.f32 %v3749_v37, %v7458_v53  ;;  %4163 = vmatpush.bf16.msra.mxu1 %v5533_v6  ;;  %v6385_v9 = vld [vmem:[#allocation8 + $0x774] sm:$0xf0] }
 0x3db   :  { %v8014_v6 = vld [vmem:[#allocation46_spill] sm:$0xff] }
 0x3dc   :  { %v3798_v11 = vpop.f32.mrf.mxu1  ;;  %3900 = vmatmul.bf16.gmra.mxu3 %v7988_v56  ;;  %v3656_v58 = vpop.f32.mrf.mxu2  ;;  %3944 = vmatmul.bf16.gmra.mxu0 %v8006_v51 }
 0x3dd   :  { %v7523_v13 = vadd.f32 %v3798_v11, %v3750_v42  ;;  %v3657_v20 = vadd.f32 %v3656_v58, %v7439_v7  ;;  %v5893_v11 = vor.u32 %v6385_v9, %v5892_v39  ;;  %v6190_v9 = vld [vmem:[#allocation8 + $0x164] sm:$0xf] }
 0x3df   :  { %v3705_v36 = vpop.f32.mrf.mxu3  ;;  %3993 = vmatmul.bf16.gmra.mxu1 %v8007_v38  ;;  %4205 = vmatpush.bf16.msrb.mxu2 %v5893_v11 }
 0x3e0   :  { %v3706_v47 = vadd.f32 %v3705_v36, %v3657_v20  ;;  %v6084_v20 = vld [vmem:[#allocation8 + $0x8e0] sm:$0xf]  ;;  %v6433_v36 = vld [vmem:[#allocation8 + $0x8f4] sm:$0xf0] }
 0x3e1   :  { %v3751_v54 = vpop.f32.mrf.mxu0 }
 0x3e2   :  { %4671 = vst [vmem:[#allocation11 + $0x250] sm:$0xff] %v3706_v47  ;;  %v3752_v22 = vadd.f32 %v3751_v54, %v7458_v53  ;;  %v6085_v47 = vor.u32 %v6433_v36, %v6084_v20 }
 0x3e4   :  { %v3800_v40 = vpop.f32.mrf.mxu1  ;;  %v3658_v7 = vpop.f32.mrf.mxu2  ;;  %4254 = vmatpush.bf16.msrb.mxu3 %v6085_v47 }
 0x3e5   :  { %v7529_v52 = vadd.f32 %v3800_v40, %v3752_v22  ;;  %v3659_v37 = vadd.f32 %v3658_v7, %v7444_v23  ;;  %v8015_v7 = vld [vmem:[#allocation60_spill] sm:$0xff] }
 0x3e7   :  { %v3707_v42 = vpop.f32.mrf.mxu3 }
 0x3e8   :  { %v3708_v58 = vadd.f32 %v3707_v42, %v3659_v37  ;;  %v5126_v37 = vld [vmem:[#allocation8 + $0x178] sm:$0xf0]  ;;  %v6238_v42 = vld [vmem:[#allocation8 + $0x2e4] sm:$0xf] }
 0x3e9   :  { %v3754_v63 = vpop.f32.mrf.mxu0  ;;  %3856 = vmatmul.bf16.gmra.mxu2 %v8012_v16  ;;  %v5129_v11 = vor.u32 %v6190_v9, %v5126_v37  ;;  %v6060_v9 = vld [vmem:[#allocation8 + $0x8b0] sm:$0xf]  ;;  %v6427_v37 = vld [vmem:[#allocation8 + $0x8c4] sm:$0xf0] }
 0x3ea   :  { %4677 = vst [vmem:[#allocation11 + $0x280] sm:$0xff] %v3708_v58  ;;  %v3755_v44 = vadd.f32 %v3754_v63, %v7458_v53  ;;  %v5318_v58 = vld [vmem:[#allocation8 + $0x2f8] sm:$0xf0] }
 0x3eb   :  { %v5321_v36 = vor.u32 %v6238_v42, %v5318_v58  ;;  %4303 = vmatpush.bf16.msrb.mxu0 %v5129_v11  ;;  %v8016_v58 = vld [vmem:[#allocation22_spill] sm:$0xff] }
 0x3ec   :  { %v3803_v14 = vpop.f32.mrf.mxu1  ;;  %3905 = vmatmul.bf16.gmra.mxu3 %v8013_v3  ;;  %v3661_v23 = vpop.f32.mrf.mxu2  ;;  %3949 = vmatmul.bf16.gmra.mxu0 %v8014_v6 }
 0x3ed   :  { %v7535_v54 = vadd.f32 %v3803_v14, %v3755_v44  ;;  %v3662_v22 = vadd.f32 %v3661_v23, %v7449_v60  ;;  %4352 = vmatpush.bf16.msrb.mxu1 %v5321_v36  ;;  %v8017_v36 = vld [vmem:[#allocation23_spill] sm:$0xff] }
 0x3ef   :  { %v3710_v40 = vpop.f32.mrf.mxu3  ;;  %3998 = vmatmul.bf16.gmra.mxu1 %v8015_v7 }
 0x3f0   :  { %v3711_v39 = vadd.f32 %v3710_v40, %v3662_v22  ;;  %v5868_v22 = vld [vmem:[#allocation8 + $0x730] sm:$0xf]  ;;  %v6379_v40 = vld [vmem:[#allocation8 + $0x744] sm:$0xf0] }
 0x3f1   :  { %v3756_v20 = vpop.f32.mrf.mxu0  ;;  %v5869_v6 = vor.u32 %v6379_v40, %v5868_v22  ;;  %v5294_v40 = vld [vmem:[#allocation8 + $0x2c8] sm:$0xf0] }
 0x3f2   :  { %4683 = vst [vmem:[#allocation11 + $0x2b0] sm:$0xff] %v3711_v39  ;;  %v3757_v47 = vadd.f32 %v3756_v20, %v7458_v53  ;;  %v6061_v39 = vor.u32 %v6427_v37, %v6060_v9 }
 0x3f3   :  { %4206 = vmatpush.bf16.msrb.mxu2 %v5869_v6 }
 0x3f4   :  { %v3805_v63 = vpop.f32.mrf.mxu1  ;;  %v3663_v60 = vpop.f32.mrf.mxu2  ;;  %4255 = vmatpush.bf16.msrb.mxu3 %v6061_v39 }
 0x3f5   :  { %v7541_v44 = vadd.f32 %v3805_v63, %v3757_v47  ;;  %v3664_v14 = vadd.f32 %v3663_v60, %v7454_v24  ;;  %v8018_v60 = vld [vmem:[#allocation62_spill] sm:$0xff] }
 0x3f7   :  { %v3712_v23 = vpop.f32.mrf.mxu3 }
 0x3f8   :  { %v3713_v7 = vadd.f32 %v3712_v23, %v3664_v14  ;;  %v6184_v14 = vld [vmem:[#allocation8 + $0x134] sm:$0xf] }
 0x3f9   :  { %v3759_v42 = vpop.f32.mrf.mxu0  ;;  %4017 = vmatmul.bf16.vlgmr.msra.gmra.mxu2 %v8016_v58  ;;  %v6232_v23 = vld [vmem:[#allocation8 + $0x2b4] sm:$0xf] }
 0x3fa   :  { %4689 = vst [vmem:[#allocation11 + $0x2e0] sm:$0xff] %v3713_v7  ;;  %v3760_v11 = vadd.f32 %v3759_v42, %v7458_v53  ;;  %v5102_v7 = vld [vmem:[#allocation8 + $0x148] sm:$0xf0]  ;;  %v5297_v37 = vor.u32 %v6232_v23, %v5294_v40  ;;  %v8019_v23 = vld [vmem:[#allocation26_spill] sm:$0xff] }
 0x3fb   :  { %v5105_v22 = vor.u32 %v6184_v14, %v5102_v7  ;;  %v6037_v7 = vor.u32 %v6421_v2, %v6036_v27  ;;  %v6178_v2 = vld [vmem:[#allocation8 + $0x104] sm:$0xf]  ;;  %v5078_v27 = vld [vmem:[#allocation8 + $0x118] sm:$0xf0] }
 0x3fc   :  { %v3808_v20 = vpop.f32.mrf.mxu1  ;;  %4066 = vmatmul.bf16.vlgmr.msra.gmra.mxu3 %v8017_v36  ;;  %v3822_v47 = vpop.f32.mrf.mxu2  ;;  %3954 = vmatmul.bf16.gmra.mxu0 %v8010_v30  ;;  %v5844_v30 = vld [vmem:[#allocation8 + $0x700] sm:$0xf] }
 0x3fd   :  { %v7547_v24 = vadd.f32 %v3808_v20, %v3760_v11  ;;  %4304 = vmatpush.bf16.msrb.mxu0 %v5105_v22  ;;  %4353 = vmatpush.bf16.msrb.mxu1 %v5297_v37  ;;  %v3823_v6 = vadd.f32 %v3822_v47, %v7463_v48  ;;  %v8020_v22 = vld [vmem:[#allocation27_spill] sm:$0xff] }
 0x3fe   :  { %4256 = vmatpush.bf16.msrb.mxu3 %v6037_v7 }
 0x3ff   :  { %v3871_v63 = vpop.f32.mrf.mxu3  ;;  %4003 = vmatmul.bf16.gmra.mxu1 %v8018_v60  ;;  %v6373_v60 = vld [vmem:[#allocation8 + $0x714] sm:$0xf0] }
 0x400   :  { %v5845_v51 = vor.u32 %v6373_v60, %v5844_v30  ;;  %v3872_v14 = vadd.f32 %v3871_v63, %v3823_v6  ;;  %v6226_v63 = vld [vmem:[#allocation8 + $0x284] sm:$0xf] }
 0x401   :  { %v3761_v9 = vpop.f32.mrf.mxu0 }
 0x402   :  { %v3762_v42 = vadd.f32 %v3761_v9, %v7458_v53  ;;  %4207 = vmatpush.bf16.msrb.mxu2 %v5845_v51  ;;  %v5270_v9 = vld [vmem:[#allocation8 + $0x298] sm:$0xf0] }
 0x404   :  { %v3810_v38 = vpop.f32.mrf.mxu1  ;;  %v3824_v11 = vpop.f32.mrf.mxu2 }
 0x405   :  { %v7553_v39 = vadd.f32 %v3810_v38, %v3762_v42  ;;  %v3825_v38 = vadd.f32 %v3824_v11, %v7469_v33  ;;  %v5273_v42 = vor.u32 %v6226_v63, %v5270_v9 }
 0x407   :  { %v3873_v20 = vpop.f32.mrf.mxu3  ;;  %4354 = vmatpush.bf16.msrb.mxu1 %v5273_v42 }
 0x408   :  { %v3874_v60 = vadd.f32 %v3873_v20, %v3825_v38 }
 0x409   :  { %v3920_v31 = vpop.f32.mrf.mxu0  ;;  %4022 = vmatmul.bf16.gmra.mxu2 %v8019_v23 }
 0x40a   :  { %v3921_v53 = vadd.f32 %v3920_v31, %v3872_v14  ;;  %v5081_v31 = vor.u32 %v6178_v2, %v5078_v27  ;;  %v8021_v27 = vld [vmem:[#allocation30_spill] sm:$0xff] }
 0x40c   :  { %v3969_v40 = vpop.f32.mrf.mxu1  ;;  %4071 = vmatmul.bf16.gmra.mxu3 %v8020_v22  ;;  %v3827_v47 = vpop.f32.mrf.mxu2  ;;  %4115 = vmatmul.bf16.vlgmr.msra.gmra.mxu0 %v7973_v57  ;;  %v6415_v57 = vld [vmem:[#allocation8 + $0x864] sm:$0xf0] }
 0x40d   :  { %v3970_v48 = vadd.f32 %v3969_v40, %v3921_v53  ;;  %4305 = vmatpush.bf16.msrb.mxu0 %v5081_v31  ;;  %v3828_v33 = vadd.f32 %v3827_v47, %v7475_v55  ;;  %v5820_v53 = vld [vmem:[#allocation8 + $0x6d0] sm:$0xf]  ;;  %v6367_v40 = vld [vmem:[#allocation8 + $0x6e4] sm:$0xf0]  ;;  %v8022_v31 = vld [vmem:[#allocation31_spill] sm:$0xff] }
 0x40f   :  { %v3876_v30 = vpop.f32.mrf.mxu3  ;;  %4164 = vmatmul.bf16.vlgmr.msra.gmra.mxu1 %v7974_v25  ;;  %4600 = vst [vmem:[#allocation11 + $0x18] sm:$0xff] %v3970_v48  ;;  %v5821_v48 = vor.u32 %v6367_v40, %v5820_v53  ;;  %v6012_v25 = vld [vmem:[#allocation8 + $0x850] sm:$0xf] }
 0x410   :  { %v3877_v20 = vadd.f32 %v3876_v30, %v3828_v33  ;;  %v6013_v38 = vor.u32 %v6415_v57, %v6012_v25  ;;  %v6172_v57 = vld [vmem:[#allocation8 + $0xd4] sm:$0xf]  ;;  %v5054_v25 = vld [vmem:[#allocation8 + $0xe8] sm:$0xf0] }
 0x411   :  { %v3922_v37 = vpop.f32.mrf.mxu0  ;;  %4208 = vmatpush.bf16.msrb.mxu2 %v5821_v48  ;;  %v6220_v30 = vld [vmem:[#allocation8 + $0x254] sm:$0xf] }
 0x412   :  { %v3923_v51 = vadd.f32 %v3922_v37, %v3874_v60  ;;  %4257 = vmatpush.bf16.msrb.mxu3 %v6013_v38  ;;  %v5796_v38 = vld [vmem:[#allocation8 + $0x6a0] sm:$0xf] }
 0x414   :  { %v3971_v6 = vpop.f32.mrf.mxu1  ;;  %v3829_v14 = vpop.f32.mrf.mxu2 }
 0x415   :  { %v3972_v11 = vadd.f32 %v3971_v6, %v3923_v51  ;;  %v3830_v55 = vadd.f32 %v3829_v14, %v7481_v5  ;;  %v5057_v51 = vor.u32 %v6172_v57, %v5054_v25  ;;  %v5246_v6 = vld [vmem:[#allocation8 + $0x268] sm:$0xf0]  ;;  %v8023_v25 = vld [vmem:[#allocation34_spill] sm:$0xff] }
 0x417   :  { %v3878_v7 = vpop.f32.mrf.mxu3  ;;  %4606 = vst [vmem:[#allocation11 + $0x48] sm:$0xff] %v3972_v11  ;;  %v5249_v11 = vor.u32 %v6220_v30, %v5246_v6  ;;  %4306 = vmatpush.bf16.msrb.mxu0 %v5057_v51  ;;  %v8024_v51 = vld [vmem:[#allocation35_spill] sm:$0xff] }
 0x418   :  { %v3879_v42 = vadd.f32 %v3878_v7, %v3830_v55 }
 0x419   :  { %v3925_v2 = vpop.f32.mrf.mxu0  ;;  %4027 = vmatmul.bf16.gmra.mxu2 %v8021_v27  ;;  %4355 = vmatpush.bf16.msrb.mxu1 %v5249_v11  ;;  %v5030_v11 = vld [vmem:[#allocation8 + $0xb8] sm:$0xf0] }
 0x41a   :  { %v3926_v63 = vadd.f32 %v3925_v2, %v3877_v20  ;;  %v6361_v2 = vld [vmem:[#allocation8 + $0x6b4] sm:$0xf0] }
 0x41c   :  { %v3974_v60 = vpop.f32.mrf.mxu1  ;;  %4076 = vmatmul.bf16.gmra.mxu3 %v8022_v31  ;;  %v3832_v9 = vpop.f32.mrf.mxu2  ;;  %4120 = vmatmul.bf16.gmra.mxu0 %v7977_v1 }
 0x41d   :  { %v3975_v47 = vadd.f32 %v3974_v60, %v3926_v63  ;;  %v3833_v5 = vadd.f32 %v3832_v9, %v7487_v50  ;;  %v5797_v63 = vor.u32 %v6361_v2, %v5796_v38  ;;  %v5988_v60 = vld [vmem:[#allocation8 + $0x820] sm:$0xf] }
 0x41f   :  { %v3881_v37 = vpop.f32.mrf.mxu3  ;;  %4169 = vmatmul.bf16.gmra.mxu1 %v7978_v10  ;;  %4612 = vst [vmem:[#allocation11 + $0x78] sm:$0xff] %v3975_v47  ;;  %v6409_v47 = vld [vmem:[#allocation8 + $0x834] sm:$0xf0]  ;;  %4209 = vmatpush.bf16.msrb.mxu2 %v5797_v63 }
 0x420   :  { %v3882_v7 = vadd.f32 %v3881_v37, %v3833_v5  ;;  %v5989_v55 = vor.u32 %v6409_v47, %v5988_v60  ;;  %v6166_v37 = vld [vmem:[#allocation8 + $0xa4] sm:$0xf] }
 0x421   :  { %v3927_v33 = vpop.f32.mrf.mxu0  ;;  %v5033_v5 = vor.u32 %v6166_v37, %v5030_v11  ;;  %v8025_v11 = vld [vmem:[#allocation16_spill] sm:$0xff] }
 0x422   :  { %v3928_v53 = vadd.f32 %v3927_v33, %v3879_v42  ;;  %4258 = vmatpush.bf16.msrb.mxu3 %v5989_v55  ;;  %v5772_v55 = vld [vmem:[#allocation8 + $0x670] sm:$0xf] }
 0x423   :  { %4307 = vmatpush.bf16.msrb.mxu0 %v5033_v5  ;;  %v8026_v5 = vld [vmem:[#allocation17_spill] sm:$0xff] }
 0x424   :  { %v3976_v40 = vpop.f32.mrf.mxu1  ;;  %v3834_v48 = vpop.f32.mrf.mxu2 }
 0x425   :  { %v3977_v14 = vadd.f32 %v3976_v40, %v3928_v53  ;;  %v3835_v50 = vadd.f32 %v3834_v48, %v7493_v32  ;;  %v6214_v53 = vld [vmem:[#allocation8 + $0x224] sm:$0xf] }
 0x427   :  { %v3883_v20 = vpop.f32.mrf.mxu3  ;;  %4618 = vst [vmem:[#allocation11 + $0xa8] sm:$0xff] %v3977_v14  ;;  %v5222_v14 = vld [vmem:[#allocation8 + $0x238] sm:$0xf0] }
 0x428   :  { %v3884_v40 = vadd.f32 %v3883_v20, %v3835_v50  ;;  %v5225_v2 = vor.u32 %v6214_v53, %v5222_v14 }
 0x429   :  { %v3930_v57 = vpop.f32.mrf.mxu0  ;;  %4032 = vmatmul.bf16.gmra.mxu2 %v8023_v25 }
 0x42a   :  { %v3931_v30 = vadd.f32 %v3930_v57, %v3882_v7  ;;  %4356 = vmatpush.bf16.msrb.mxu1 %v5225_v2  ;;  %v6355_v57 = vld [vmem:[#allocation8 + $0x684] sm:$0xf0]  ;;  %v5006_v2 = vld [vmem:[#allocation8 + $0x88] sm:$0xf0] }
 0x42c   :  { %v3979_v42 = vpop.f32.mrf.mxu1  ;;  %4081 = vmatmul.bf16.gmra.mxu3 %v8024_v51  ;;  %v3837_v6 = vpop.f32.mrf.mxu2  ;;  %4125 = vmatmul.bf16.gmra.mxu0 %v7979_v29 }
 0x42d   :  { %v3980_v9 = vadd.f32 %v3979_v42, %v3931_v30  ;;  %v3838_v32 = vadd.f32 %v3837_v6, %v7499_v19  ;;  %v5773_v30 = vor.u32 %v6355_v57, %v5772_v55  ;;  %v5964_v42 = vld [vmem:[#allocation8 + $0x7f0] sm:$0xf] }
 0x42f   :  { %v3886_v33 = vpop.f32.mrf.mxu3  ;;  %4174 = vmatmul.bf16.gmra.mxu1 %v7980_v26  ;;  %4624 = vst [vmem:[#allocation11 + $0xd8] sm:$0xff] %v3980_v9  ;;  %v6403_v9 = vld [vmem:[#allocation8 + $0x804] sm:$0xf0]  ;;  %4210 = vmatpush.bf16.msrb.mxu2 %v5773_v30 }
 0x430   :  { %v3887_v20 = vadd.f32 %v3886_v33, %v3838_v32  ;;  %v5965_v50 = vor.u32 %v6403_v9, %v5964_v42  ;;  %v6160_v33 = vld [vmem:[#allocation8 + $0x74] sm:$0xf] }
 0x431   :  { %v3932_v38 = vpop.f32.mrf.mxu0  ;;  %v5009_v32 = vor.u32 %v6160_v33, %v5006_v2  ;;  %v8027_v2 = vld [vmem:[#allocation18_spill] sm:$0xff] }
 0x432   :  { %v3933_v63 = vadd.f32 %v3932_v38, %v3884_v40  ;;  %4259 = vmatpush.bf16.msrb.mxu3 %v5965_v50  ;;  %v5748_v50 = vld [vmem:[#allocation8 + $0x640] sm:$0xf] }
 0x433   :  { %4308 = vmatpush.bf16.msrb.mxu0 %v5009_v32  ;;  %v8028_v32 = vld [vmem:[#allocation19_spill] sm:$0xff] }
 0x434   :  { %v3981_v60 = vpop.f32.mrf.mxu1  ;;  %v3839_v47 = vpop.f32.mrf.mxu2 }
 0x435   :  { %v3982_v48 = vadd.f32 %v3981_v60, %v3933_v63  ;;  %v3840_v19 = vadd.f32 %v3839_v47, %v7505_v4  ;;  %v6208_v63 = vld [vmem:[#allocation8 + $0x1f4] sm:$0xf] }
 0x437   :  { %v3888_v7 = vpop.f32.mrf.mxu3  ;;  %4630 = vst [vmem:[#allocation11 + $0x108] sm:$0xff] %v3982_v48  ;;  %v5198_v48 = vld [vmem:[#allocation8 + $0x208] sm:$0xf0] }
 0x438   :  { %v3889_v60 = vadd.f32 %v3888_v7, %v3840_v19  ;;  %v5201_v57 = vor.u32 %v6208_v63, %v5198_v48 }
 0x439   :  { %v3935_v37 = vpop.f32.mrf.mxu0  ;;  %4037 = vmatmul.bf16.gmra.mxu2 %v8025_v11 }
 0x43a   :  { %v3936_v53 = vadd.f32 %v3935_v37, %v3887_v20  ;;  %4357 = vmatpush.bf16.msrb.mxu1 %v5201_v57  ;;  %v6349_v37 = vld [vmem:[#allocation8 + $0x654] sm:$0xf0]  ;;  %v4982_v57 = vld [vmem:[#allocation8 + $0x58] sm:$0xf0] }
 0x43c   :  { %v3984_v40 = vpop.f32.mrf.mxu1  ;;  %4086 = vmatmul.bf16.gmra.mxu3 %v8026_v5  ;;  %v3842_v14 = vpop.f32.mrf.mxu2  ;;  %4130 = vmatmul.bf16.gmra.mxu0 %v7981_v45 }
 0x43d   :  { %v3985_v6 = vadd.f32 %v3984_v40, %v3936_v53  ;;  %v3843_v4 = vadd.f32 %v3842_v14, %v7511_v8  ;;  %v5749_v53 = vor.u32 %v6349_v37, %v5748_v50  ;;  %v5940_v40 = vld [vmem:[#allocation8 + $0x7c0] sm:$0xf] }
 0x43f   :  { %v3891_v38 = vpop.f32.mrf.mxu3  ;;  %4179 = vmatmul.bf16.gmra.mxu1 %v7982_v62  ;;  %4636 = vst [vmem:[#allocation11 + $0x138] sm:$0xff] %v3985_v6  ;;  %v6397_v6 = vld [vmem:[#allocation8 + $0x7d4] sm:$0xf0]  ;;  %4211 = vmatpush.bf16.msrb.mxu2 %v5749_v53 }
 0x440   :  { %v3892_v7 = vadd.f32 %v3891_v38, %v3843_v4  ;;  %v5941_v19 = vor.u32 %v6397_v6, %v5940_v40  ;;  %v6154_v38 = vld [vmem:[#allocation8 + $0x44] sm:$0xf] }
 0x441   :  { %v3937_v55 = vpop.f32.mrf.mxu0  ;;  %v4985_v4 = vor.u32 %v6154_v38, %v4982_v57  ;;  %v8029_v57 = vld [vmem:[#allocation20_spill] sm:$0xff] }
 0x442   :  { %v3938_v30 = vadd.f32 %v3937_v55, %v3889_v60  ;;  %4260 = vmatpush.bf16.msrb.mxu3 %v5941_v19  ;;  %v6343_v19 = vld [vmem:[#allocation8 + $0x624] sm:$0xf0] }
 0x443   :  { %4309 = vmatpush.bf16.msrb.mxu0 %v4985_v4  ;;  %v8030_v4 = vld [vmem:[#allocation21_spill] sm:$0xff] }
 0x444   :  { %v3986_v42 = vpop.f32.mrf.mxu1  ;;  %v3844_v9 = vpop.f32.mrf.mxu2 }
 0x445   :  { %v3987_v47 = vadd.f32 %v3986_v42, %v3938_v30  ;;  %v3845_v8 = vadd.f32 %v3844_v9, %v7517_v15  ;;  %v6202_v30 = vld [vmem:[#allocation8 + $0x1c4] sm:$0xf] }
 0x447   :  { %v3893_v20 = vpop.f32.mrf.mxu3  ;;  %4642 = vst [vmem:[#allocation11 + $0x168] sm:$0xff] %v3987_v47  ;;  %v5174_v47 = vld [vmem:[#allocation8 + $0x1d8] sm:$0xf0] }
 0x448   :  { %v3894_v42 = vadd.f32 %v3893_v20, %v3845_v8  ;;  %v5177_v37 = vor.u32 %v6202_v30, %v5174_v47 }
 0x449   :  { %v3940_v33 = vpop.f32.mrf.mxu0  ;;  %4042 = vmatmul.bf16.gmra.mxu2 %v8027_v2 }
 0x44a   :  { %v3941_v63 = vadd.f32 %v3940_v33, %v3892_v7  ;;  %4358 = vmatpush.bf16.msrb.mxu1 %v5177_v37  ;;  %v5724_v7 = vld [vmem:[#allocation8 + $0x610] sm:$0xf]  ;;  %v6148_v37 = vld [vmem:[#allocation8 + $0x14] sm:$0xf] }
 0x44b   :  { %v5916_v33 = vld [vmem:[#allocation8 + $0x790] sm:$0xf] }
 0x44c   :  { %v3989_v60 = vpop.f32.mrf.mxu1  ;;  %4091 = vmatmul.bf16.gmra.mxu3 %v8028_v32  ;;  %v3847_v48 = vpop.f32.mrf.mxu2  ;;  %4135 = vmatmul.bf16.gmra.mxu0 %v7983_v49 }
 0x44d   :  { %v3990_v14 = vadd.f32 %v3989_v60, %v3941_v63  ;;  %v3848_v15 = vadd.f32 %v3847_v48, %v7523_v13  ;;  %v5725_v60 = vor.u32 %v6343_v19, %v5724_v7 }
 0x44f   :  { %v3896_v55 = vpop.f32.mrf.mxu3  ;;  %4184 = vmatmul.bf16.gmra.mxu1 %v7984_v12  ;;  %4648 = vst [vmem:[#allocation11 + $0x198] sm:$0xff] %v3990_v14  ;;  %v6391_v14 = vld [vmem:[#allocation8 + $0x7a4] sm:$0xf0]  ;;  %4212 = vmatpush.bf16.msrb.mxu2 %v5725_v60 }
 0x450   :  { %v5917_v20 = vor.u32 %v6391_v14, %v5916_v33  ;;  %v3897_v8 = vadd.f32 %v3896_v55, %v3848_v15  ;;  %v4958_v55 = vld [vmem:[#allocation8 + $0x28] sm:$0xf0] }
 0x451   :  { %v3942_v50 = vpop.f32.mrf.mxu0  ;;  %v4961_v15 = vor.u32 %v6148_v37, %v4958_v55 }
 0x452   :  { %v3943_v53 = vadd.f32 %v3942_v50, %v3894_v42  ;;  %4261 = vmatpush.bf16.msrb.mxu3 %v5917_v20 }
 0x453   :  { %4310 = vmatpush.bf16.msrb.mxu0 %v4961_v15 }
 0x454   :  { %v3991_v40 = vpop.f32.mrf.mxu1  ;;  %v3849_v6 = vpop.f32.mrf.mxu2 }
 0x455   :  { %v3992_v9 = vadd.f32 %v3991_v40, %v3943_v53  ;;  %v3850_v13 = vadd.f32 %v3849_v6, %v7529_v52  ;;  %v6196_v53 = vld [vmem:[#allocation8 + $0x194] sm:$0xf] }
 0x457   :  { %v3898_v63 = vpop.f32.mrf.mxu3  ;;  %4654 = vst [vmem:[#allocation11 + $0x1c8] sm:$0xff] %v3992_v9  ;;  %v5150_v9 = vld [vmem:[#allocation8 + $0x1a8] sm:$0xf0] }
 0x458   :  { %v3899_v40 = vadd.f32 %v3898_v63, %v3850_v13  ;;  %v5153_v19 = vor.u32 %v6196_v53, %v5150_v9  ;;  %v5894_v9 = vld [vmem:[#allocation8 + $0x778] sm:$0xf0] }
 0x459   :  { %v3945_v38 = vpop.f32.mrf.mxu0  ;;  %4047 = vmatmul.bf16.gmra.mxu2 %v8029_v57 }
 0x45a   :  { %v3946_v30 = vadd.f32 %v3945_v38, %v3897_v8  ;;  %4359 = vmatpush.bf16.msrb.mxu1 %v5153_v19  ;;  %v6286_v8 = vld [vmem:[#allocation8 + $0x464] sm:$0xf]  ;;  %v5510_v38 = vld [vmem:[#allocation8 + $0x478] sm:$0xf0] }
 0x45c   :  { %v3994_v42 = vpop.f32.mrf.mxu1  ;;  %4096 = vmatmul.bf16.gmra.mxu3 %v8030_v4  ;;  %v3852_v47 = vpop.f32.mrf.mxu2  ;;  %4140 = vmatmul.bf16.gmra.mxu0 %v7985_v21 }
 0x45d   :  { %v3995_v48 = vadd.f32 %v3994_v42, %v3946_v30  ;;  %v3853_v52 = vadd.f32 %v3852_v47, %v7535_v54  ;;  %v5513_v30 = vor.u32 %v6286_v8, %v5510_v38  ;;  %v6334_v42 = vld [vmem:[#allocation8 + $0x5e4] sm:$0xf] }
 0x45f   :  { %v3901_v50 = vpop.f32.mrf.mxu3  ;;  %4189 = vmatmul.bf16.gmra.mxu1 %v7986_v28  ;;  %4660 = vst [vmem:[#allocation11 + $0x1f8] sm:$0xff] %v3995_v48  ;;  %v5702_v48 = vld [vmem:[#allocation8 + $0x5f8] sm:$0xf0]  ;;  %4401 = vmatpush.bf16.msra.mxu2 %v5513_v30 }
 0x460   :  { %v3902_v63 = vadd.f32 %v3901_v50, %v3853_v52  ;;  %v5705_v13 = vor.u32 %v6334_v42, %v5702_v48  ;;  %v6382_v50 = vld [vmem:[#allocation8 + $0x764] sm:$0xf]  ;;  %v6280_v42 = vld [vmem:[#allocation8 + $0x434] sm:$0xf]  ;;  %v5486_v48 = vld [vmem:[#allocation8 + $0x448] sm:$0xf0] }
 0x461   :  { %v3947_v7 = vpop.f32.mrf.mxu0 }
 0x462   :  { %v3948_v33 = vadd.f32 %v3947_v7, %v3899_v40  ;;  %4450 = vmatpush.bf16.msra.mxu3 %v5705_v13  ;;  %v6430_v7 = vld [vmem:[#allocation8 + $0x8e4] sm:$0xf]  ;;  %v5489_v13 = vor.u32 %v6280_v42, %v5486_v48 }
 0x464   :  { %v3996_v60 = vpop.f32.mrf.mxu1  ;;  %v3854_v14 = vpop.f32.mrf.mxu2  ;;  %4402 = vmatpush.bf16.msra.mxu2 %v5489_v13 }
 0x465   :  { %v3997_v6 = vadd.f32 %v3996_v60, %v3948_v33  ;;  %v3855_v54 = vadd.f32 %v3854_v14, %v7541_v44  ;;  %v5897_v33 = vor.u32 %v6382_v50, %v5894_v9  ;;  %v6086_v60 = vld [vmem:[#allocation8 + $0x8f8] sm:$0xf0] }
 0x467   :  { %v3903_v20 = vpop.f32.mrf.mxu3  ;;  %4666 = vst [vmem:[#allocation11 + $0x228] sm:$0xff] %v3997_v6  ;;  %v6089_v6 = vor.u32 %v6430_v7, %v6086_v60  ;;  %4499 = vmatpush.bf16.msra.mxu0 %v5897_v33 }
 0x468   :  { %v3904_v19 = vadd.f32 %v3903_v20, %v3855_v54  ;;  %v5678_v20 = vld [vmem:[#allocation8 + $0x5c8] sm:$0xf0] }
 0x469   :  { %v3950_v37 = vpop.f32.mrf.mxu0  ;;  %4052 = vmatmul.bf16.gmra.mxu2 %v7975_v41  ;;  %4548 = vmatpush.bf16.msra.mxu1 %v6089_v6  ;;  %v5870_v6 = vld [vmem:[#allocation8 + $0x748] sm:$0xf0] }
 0x46a   :  { %v3951_v55 = vadd.f32 %v3950_v37, %v3902_v63  ;;  %v6328_v37 = vld [vmem:[#allocation8 + $0x5b4] sm:$0xf] }
 0x46c   :  { %v3999_v53 = vpop.f32.mrf.mxu1  ;;  %4101 = vmatmul.bf16.gmra.mxu3 %v7976_v0  ;;  %v3857_v40 = vpop.f32.mrf.mxu2  ;;  %4145 = vmatmul.bf16.gmra.mxu0 %v7987_v35 }
 0x46d   :  { %v4000_v47 = vadd.f32 %v3999_v53, %v3951_v55  ;;  %v3858_v44 = vadd.f32 %v3857_v40, %v7547_v24  ;;  %v5681_v53 = vor.u32 %v6328_v37, %v5678_v20  ;;  %v6274_v20 = vld [vmem:[#allocation8 + $0x404] sm:$0xf] }
 0x46f   :  { %v3906_v15 = vpop.f32.mrf.mxu3  ;;  %4194 = vmatmul.bf16.gmra.mxu1 %v7988_v56  ;;  %4672 = vst [vmem:[#allocation11 + $0x258] sm:$0xff] %v4000_v47  ;;  %v7598_v47 = vld [vmem:[#allocation10] sm:$0x3f]  ;;  %4451 = vmatpush.bf16.msra.mxu3 %v5681_v53 }
 0x470   :  { %v3907_v55 = vadd.f32 %v3906_v15, %v3858_v44  ;;  %v7601_v50 = vperm.slane %v7598_v47, 4 }
 0x471   :  { %v3952_v52 = vpop.f32.mrf.mxu0 }
 0x472   :  { %v3953_v8 = vadd.f32 %v3952_v52, %v3904_v19  ;;  %v6376_v52 = vld [vmem:[#allocation8 + $0x734] sm:$0xf] }
 0x473   :  { %v5873_v44 = vor.u32 %v6376_v52, %v5870_v6 }
 0x474   :  { %v4001_v38 = vpop.f32.mrf.mxu1  ;;  %v3859_v30 = vpop.f32.mrf.mxu2 }
 0x475   :  { %v4002_v14 = vadd.f32 %v4001_v38, %v3953_v8  ;;  %v3860_v9 = vadd.f32 %v3859_v30, %v7553_v39  ;;  %v6424_v8 = vld [vmem:[#allocation8 + $0x8b4] sm:$0xf]  ;;  %4500 = vmatpush.bf16.msra.mxu0 %v5873_v44 }
 0x477   :  { %v3908_v63 = vpop.f32.mrf.mxu3  ;;  %4678 = vst [vmem:[#allocation11 + $0x288] sm:$0xff] %v4002_v14  ;;  %v6062_v14 = vld [vmem:[#allocation8 + $0x8c8] sm:$0xf0] }
 0x478   :  { %v3909_v38 = vadd.f32 %v3908_v63, %v3860_v9  ;;  %v6065_v48 = vor.u32 %v6424_v8, %v6062_v14  ;;  %v6322_v63 = vld [vmem:[#allocation8 + $0x584] sm:$0xf]  ;;  %v5654_v9 = vld [vmem:[#allocation8 + $0x598] sm:$0xf0] }
 0x479   :  { %v3955_v54 = vpop.f32.mrf.mxu0  ;;  %4213 = vmatmul.bf16.vlgmr.msrb.gmra.mxu2 %v7028_v59  ;;  %v6370_v14 = vld [vmem:[#allocation8 + $0x704] sm:$0xf] }
 0x47a   :  { %v3956_v24 = vadd.f32 %v3955_v54, %v3907_v55  ;;  %4549 = vmatpush.bf16.msra.mxu1 %v6065_v48  ;;  %v5462_v55 = vld [vmem:[#allocation8 + $0x418] sm:$0xf0]  ;;  %v6418_v48 = vld [vmem:[#allocation8 + $0x884] sm:$0xf] }
 0x47c   :  { %v4004_v40 = vpop.f32.mrf.mxu1  ;;  %4262 = vmatmul.bf16.vlgmr.msrb.gmra.mxu3 %v7996_v46  ;;  %v4018_v19 = vpop.f32.mrf.mxu2  ;;  %4150 = vmatmul.bf16.gmra.mxu0 %v8012_v16 }
 0x47d   :  { %v4005_v7 = vadd.f32 %v4004_v40, %v3956_v24  ;;  %v4019_v15 = vadd.f32 %v4018_v19, %v7601_v50  ;;  %v5465_v24 = vor.u32 %v6274_v20, %v5462_v55 }
 0x47f   :  { %v4067_v33 = vpop.f32.mrf.mxu3  ;;  %4199 = vmatmul.bf16.gmra.mxu1 %v8013_v3  ;;  %4684 = vst [vmem:[#allocation11 + $0x2b8] sm:$0xff] %v4005_v7  ;;  %4403 = vmatpush.bf16.msra.mxu2 %v5465_v24  ;;  %v5657_v7 = vor.u32 %v6322_v63, %v5654_v9 }
 0x480   :  { %v4068_v60 = vadd.f32 %v4067_v33, %v4019_v15 }
 0x481   :  { %v3957_v42 = vpop.f32.mrf.mxu0  ;;  %4452 = vmatpush.bf16.msra.mxu3 %v5657_v7  ;;  %v6316_v7 = vld [vmem:[#allocation8 + $0x554] sm:$0xf] }
 0x482   :  { %v3958_v39 = vadd.f32 %v3957_v42, %v3909_v38  ;;  %v5846_v42 = vld [vmem:[#allocation8 + $0x718] sm:$0xf0] }
 0x484   :  { %v4006_v30 = vpop.f32.mrf.mxu1  ;;  %v4020_v37 = vpop.f32.mrf.mxu2 }
 0x485   :  { %v4007_v13 = vadd.f32 %v4006_v30, %v3958_v39  ;;  %v4021_v53 = vadd.f32 %v4020_v37, %v7601_v50  ;;  %v5849_v39 = vor.u32 %v6370_v14, %v5846_v42 }
 0x487   :  { %v4069_v54 = vpop.f32.mrf.mxu3  ;;  %4690 = vst [vmem:[#allocation11 + $0x2e8] sm:$0xff] %v4007_v13  ;;  %4501 = vmatpush.bf16.msra.mxu0 %v5849_v39  ;;  %v6364_v39 = vld [vmem:[#allocation8 + $0x6d4] sm:$0xf] }
 0x488   :  { %v4070_v40 = vadd.f32 %v4069_v54, %v4021_v53  ;;  %v6268_v53 = vld [vmem:[#allocation8 + $0x3d4] sm:$0xf]  ;;  %v5438_v54 = vld [vmem:[#allocation8 + $0x3e8] sm:$0xf0] }
 0x489   :  { %v4116_v19 = vpop.f32.mrf.mxu0  ;;  %4218 = vmatmul.bf16.gmra.mxu2 %v7997_v43  ;;  %v5441_v63 = vor.u32 %v6268_v53, %v5438_v54 }
 0x48a   :  { %v4117_v15 = vadd.f32 %v4116_v19, %v4068_v60  ;;  %v6038_v60 = vld [vmem:[#allocation8 + $0x898] sm:$0xf0]  ;;  %v5630_v19 = vld [vmem:[#allocation8 + $0x568] sm:$0xf0] }
 0x48b   :  { %v6041_v13 = vor.u32 %v6418_v48, %v6038_v60  ;;  %4404 = vmatpush.bf16.msra.mxu2 %v5441_v63  ;;  %v5822_v60 = vld [vmem:[#allocation8 + $0x6e8] sm:$0xf0] }
 0x48c   :  { %v4165_v33 = vpop.f32.mrf.mxu1  ;;  %4267 = vmatmul.bf16.gmra.mxu3 %v7998_v34  ;;  %v4023_v6 = vpop.f32.mrf.mxu2  ;;  %4311 = vmatmul.bf16.vlgmr.msrb.gmra.mxu0 %v8016_v58 }
 0x48d   :  { %v7611_v52 = vadd.f32 %v4165_v33, %v4117_v15  ;;  %v4024_v8 = vadd.f32 %v4023_v6, %v7601_v50  ;;  %4550 = vmatpush.bf16.msra.mxu1 %v6041_v13  ;;  %v5633_v15 = vor.u32 %v6316_v7, %v5630_v19  ;;  %v5825_v13 = vor.u32 %v6364_v39, %v5822_v60 }
 0x48f   :  { %v4072_v38 = vpop.f32.mrf.mxu3  ;;  %4360 = vmatmul.bf16.vlgmr.msrb.gmra.mxu1 %v8017_v36  ;;  %4453 = vmatpush.bf16.msra.mxu3 %v5633_v15  ;;  %v6310_v15 = vld [vmem:[#allocation8 + $0x524] sm:$0xf] }
 0x490   :  { %v4073_v44 = vadd.f32 %v4072_v38, %v4024_v8  ;;  %4502 = vmatpush.bf16.msra.mxu0 %v5825_v13 }
 0x491   :  { %v4118_v30 = vpop.f32.mrf.mxu0 }
 0x492   :  { %v4119_v37 = vadd.f32 %v4118_v30, %v4070_v40  ;;  %v6412_v30 = vld [vmem:[#allocation8 + $0x854] sm:$0xf] }
 0x494   :  { %v4167_v20 = vpop.f32.mrf.mxu1  ;;  %v4025_v58 = vpop.f32.mrf.mxu2 }
 0x495   :  { %v7616_v55 = vadd.f32 %v4167_v20, %v4119_v37  ;;  %v4026_v24 = vadd.f32 %v4025_v58, %v7601_v50 }
 0x497   :  { %v4074_v36 = vpop.f32.mrf.mxu3 }
 0x498   :  { %v4075_v9 = vadd.f32 %v4074_v36, %v4026_v24  ;;  %v6262_v24 = vld [vmem:[#allocation8 + $0x3a4] sm:$0xf]  ;;  %v5414_v36 = vld [vmem:[#allocation8 + $0x3b8] sm:$0xf0] }
 0x499   :  { %v4121_v33 = vpop.f32.mrf.mxu0  ;;  %4223 = vmatmul.bf16.gmra.mxu2 %v8000_v17  ;;  %v5417_v7 = vor.u32 %v6262_v24, %v5414_v36 }
 0x49a   :  { %v4122_v40 = vadd.f32 %v4121_v33, %v4073_v44  ;;  %v6014_v44 = vld [vmem:[#allocation8 + $0x868] sm:$0xf0]  ;;  %v5606_v33 = vld [vmem:[#allocation8 + $0x538] sm:$0xf0] }
 0x49b   :  { %v6017_v20 = vor.u32 %v6412_v30, %v6014_v44  ;;  %4405 = vmatpush.bf16.msra.mxu2 %v5417_v7  ;;  %v6358_v44 = vld [vmem:[#allocation8 + $0x6a4] sm:$0xf]  ;;  %v5390_v7 = vld [vmem:[#allocation8 + $0x388] sm:$0xf0] }
 0x49c   :  { %v4170_v6 = vpop.f32.mrf.mxu1  ;;  %4272 = vmatmul.bf16.gmra.mxu3 %v8001_v18  ;;  %v4028_v38 = vpop.f32.mrf.mxu2  ;;  %4316 = vmatmul.bf16.gmra.mxu0 %v8019_v23 }
 0x49d   :  { %v7621_v8 = vadd.f32 %v4170_v6, %v4122_v40  ;;  %v4029_v14 = vadd.f32 %v4028_v38, %v7601_v50  ;;  %4551 = vmatpush.bf16.msra.mxu1 %v6017_v20  ;;  %v5609_v40 = vor.u32 %v6310_v15, %v5606_v33  ;;  %v6406_v20 = vld [vmem:[#allocation8 + $0x824] sm:$0xf] }
 0x49f   :  { %v4077_v42 = vpop.f32.mrf.mxu3  ;;  %4365 = vmatmul.bf16.gmra.mxu1 %v8020_v22  ;;  %4454 = vmatpush.bf16.msra.mxu3 %v5609_v40 }
 0x4a0   :  { %v4078_v48 = vadd.f32 %v4077_v42, %v4029_v14  ;;  %v8031_v14 = vld [vmem:[#allocation55_spill] sm:$0xff] }
 0x4a1   :  { %v4123_v37 = vpop.f32.mrf.mxu0 }
 0x4a2   :  { %v4124_v58 = vadd.f32 %v4123_v37, %v4075_v9  ;;  %v5798_v37 = vld [vmem:[#allocation8 + $0x6b8] sm:$0xf0] }
 0x4a4   :  { %v4172_v53 = vpop.f32.mrf.mxu1  ;;  %v4030_v23 = vpop.f32.mrf.mxu2 }
 0x4a5   :  { %v7626_v54 = vadd.f32 %v4172_v53, %v4124_v58  ;;  %v4031_v63 = vadd.f32 %v4030_v23, %v7601_v50  ;;  %v5801_v58 = vor.u32 %v6358_v44, %v5798_v37  ;;  %v8033_v44 = vld [vmem:[#allocation57_spill] sm:$0xff] }
 0x4a7   :  { %v4079_v22 = vpop.f32.mrf.mxu3  ;;  %4503 = vmatpush.bf16.msra.mxu0 %v5801_v58 }
 0x4a8   :  { %v4080_v19 = vadd.f32 %v4079_v22, %v4031_v63  ;;  %v6256_v22 = vld [vmem:[#allocation8 + $0x374] sm:$0xf] }
 0x4a9   :  { %v4126_v6 = vpop.f32.mrf.mxu0  ;;  %4228 = vmatmul.bf16.gmra.mxu2 %v8002_v61  ;;  %v5393_v33 = vor.u32 %v6256_v22, %v5390_v7 }
 0x4aa   :  { %v4127_v9 = vadd.f32 %v4126_v6, %v4078_v48  ;;  %v5990_v48 = vld [vmem:[#allocation8 + $0x838] sm:$0xf0]  ;;  %v6304_v6 = vld [vmem:[#allocation8 + $0x4f4] sm:$0xf] }
 0x4ab   :  { %v5993_v23 = vor.u32 %v6406_v20, %v5990_v48  ;;  %4406 = vmatpush.bf16.msra.mxu2 %v5393_v33 }
 0x4ac   :  { %v4175_v38 = vpop.f32.mrf.mxu1  ;;  %4277 = vmatmul.bf16.gmra.mxu3 %v8031_v14  ;;  %v4033_v39 = vpop.f32.mrf.mxu2  ;;  %4321 = vmatmul.bf16.gmra.mxu0 %v8021_v27 }
 0x4ad   :  { %v7631_v42 = vadd.f32 %v4175_v38, %v4127_v9  ;;  %v4034_v60 = vadd.f32 %v4033_v39, %v7601_v50  ;;  %4552 = vmatpush.bf16.msra.mxu1 %v5993_v23  ;;  %v5582_v9 = vld [vmem:[#allocation8 + $0x508] sm:$0xf0]  ;;  %v6352_v23 = vld [vmem:[#allocation8 + $0x674] sm:$0xf] }
 0x4ae   :  { %v5585_v38 = vor.u32 %v6304_v6, %v5582_v9  ;;  %v6250_v6 = vld [vmem:[#allocation8 + $0x344] sm:$0xf]  ;;  %v5366_v9 = vld [vmem:[#allocation8 + $0x358] sm:$0xf0] }
 0x4af   :  { %v4082_v30 = vpop.f32.mrf.mxu3  ;;  %4370 = vmatmul.bf16.gmra.mxu1 %v8022_v31 }
 0x4b0   :  { %v4083_v13 = vadd.f32 %v4082_v30, %v4034_v60  ;;  %v8032_v60 = vld [vmem:[#allocation56_spill] sm:$0xff]  ;;  %4455 = vmatpush.bf16.msra.mxu3 %v5585_v38 }
 0x4b1   :  { %v4128_v53 = vpop.f32.mrf.mxu0 }
 0x4b2   :  { %v4129_v24 = vadd.f32 %v4128_v53, %v4080_v19 }
 0x4b4   :  { %v4177_v36 = vpop.f32.mrf.mxu1  ;;  %v4035_v27 = vpop.f32.mrf.mxu2 }
 0x4b5   :  { %v7636_v63 = vadd.f32 %v4177_v36, %v4129_v24  ;;  %v4036_v15 = vadd.f32 %v4035_v27, %v7601_v50  ;;  %v5774_v24 = vld [vmem:[#allocation8 + $0x688] sm:$0xf0]  ;;  %v6400_v36 = vld [vmem:[#allocation8 + $0x7f4] sm:$0xf] }
 0x4b6   :  { %v5777_v27 = vor.u32 %v6352_v23, %v5774_v24  ;;  %v8034_v23 = vld [vmem:[#allocation58_spill] sm:$0xff] }
 0x4b7   :  { %v4084_v31 = vpop.f32.mrf.mxu3 }
 0x4b8   :  { %v4085_v40 = vadd.f32 %v4084_v31, %v4036_v15  ;;  %4504 = vmatpush.bf16.msra.mxu0 %v5777_v27 }
 0x4b9   :  { %v4131_v39 = vpop.f32.mrf.mxu0  ;;  %4233 = vmatmul.bf16.gmra.mxu2 %v8032_v60 }
 0x4ba   :  { %v4132_v19 = vadd.f32 %v4131_v39, %v4083_v13  ;;  %v5966_v13 = vld [vmem:[#allocation8 + $0x808] sm:$0xf0]  ;;  %v5369_v39 = vor.u32 %v6250_v6, %v5366_v9  ;;  %v6394_v6 = vld [vmem:[#allocation8 + $0x7c4] sm:$0xf] }
 0x4bb   :  { %v5969_v7 = vor.u32 %v6400_v36, %v5966_v13  ;;  %v8035_v36 = vld [vmem:[#allocation59_spill] sm:$0xff] }
 0x4bc   :  { %v4180_v30 = vpop.f32.mrf.mxu1  ;;  %4282 = vmatmul.bf16.gmra.mxu3 %v8033_v44  ;;  %v4038_v20 = vpop.f32.mrf.mxu2  ;;  %4326 = vmatmul.bf16.gmra.mxu0 %v8023_v25 }
 0x4bd   :  { %v7641_v37 = vadd.f32 %v4180_v30, %v4132_v19  ;;  %v4039_v58 = vadd.f32 %v4038_v20, %v7601_v50  ;;  %4553 = vmatpush.bf16.msra.mxu1 %v5969_v7  ;;  %4407 = vmatpush.bf16.msra.mxu2 %v5369_v39  ;;  %v6298_v30 = vld [vmem:[#allocation8 + $0x4c4] sm:$0xf]  ;;  %v5558_v20 = vld [vmem:[#allocation8 + $0x4d8] sm:$0xf0] }
 0x4bf   :  { %v4087_v48 = vpop.f32.mrf.mxu3  ;;  %4375 = vmatmul.bf16.gmra.mxu1 %v8024_v51 }
 0x4c0   :  { %v4088_v53 = vadd.f32 %v4087_v48, %v4039_v58  ;;  %v5561_v58 = vor.u32 %v6298_v30, %v5558_v20 }
 0x4c1   :  { %v4133_v22 = vpop.f32.mrf.mxu0 }
 0x4c2   :  { %v4134_v15 = vadd.f32 %v4133_v22, %v4085_v40  ;;  %4456 = vmatpush.bf16.msra.mxu3 %v5561_v58  ;;  %v6244_v58 = vld [vmem:[#allocation8 + $0x314] sm:$0xf] }
 0x4c4   :  { %v4182_v31 = vpop.f32.mrf.mxu1  ;;  %v4040_v25 = vpop.f32.mrf.mxu2 }
 0x4c5   :  { %v7646_v33 = vadd.f32 %v4182_v31, %v4134_v15  ;;  %v4041_v38 = vadd.f32 %v4040_v25, %v7601_v50  ;;  %v6346_v31 = vld [vmem:[#allocation8 + $0x644] sm:$0xf]  ;;  %v5750_v25 = vld [vmem:[#allocation8 + $0x658] sm:$0xf0] }
 0x4c6   :  { %v5753_v9 = vor.u32 %v6346_v31, %v5750_v25 }
 0x4c7   :  { %v4089_v51 = vpop.f32.mrf.mxu3 }
 0x4c8   :  { %v4090_v19 = vadd.f32 %v4089_v51, %v4041_v38  ;;  %4505 = vmatpush.bf16.msra.mxu0 %v5753_v9 }
 0x4c9   :  { %v4136_v48 = vpop.f32.mrf.mxu0  ;;  %4238 = vmatmul.bf16.gmra.mxu2 %v8034_v23 }
 0x4ca   :  { %v4137_v40 = vadd.f32 %v4136_v48, %v4088_v53  ;;  %v5942_v53 = vld [vmem:[#allocation8 + $0x7d8] sm:$0xf0]  ;;  %v5342_v48 = vld [vmem:[#allocation8 + $0x328] sm:$0xf0] }
 0x4cb   :  { %v5945_v51 = vor.u32 %v6394_v6, %v5942_v53  ;;  %v8037_v53 = vld [vmem:[#allocation60_spill] sm:$0xff] }
 0x4cc   :  { %v4185_v24 = vpop.f32.mrf.mxu1  ;;  %4287 = vmatmul.bf16.gmra.mxu3 %v8035_v36  ;;  %v4043_v13 = vpop.f32.mrf.mxu2  ;;  %4331 = vmatmul.bf16.gmra.mxu0 %v8025_v11 }
 0x4cd   :  { %v7651_v27 = vadd.f32 %v4185_v24, %v4137_v40  ;;  %v4044_v22 = vadd.f32 %v4043_v13, %v7601_v50  ;;  %4554 = vmatpush.bf16.msra.mxu1 %v5945_v51  ;;  %v6292_v40 = vld [vmem:[#allocation8 + $0x494] sm:$0xf]  ;;  %v5345_v13 = vor.u32 %v6244_v58, %v5342_v48 }
 0x4ce   :  { %v6340_v48 = vld [vmem:[#allocation8 + $0x614] sm:$0xf] }
 0x4cf   :  { %v4092_v7 = vpop.f32.mrf.mxu3  ;;  %4380 = vmatmul.bf16.gmra.mxu1 %v8026_v5  ;;  %4408 = vmatpush.bf16.msra.mxu2 %v5345_v13 }
 0x4d0   :  { %v4093_v15 = vadd.f32 %v4092_v7, %v4044_v22  ;;  %v5534_v22 = vld [vmem:[#allocation8 + $0x4a8] sm:$0xf0] }
 0x4d1   :  { %v4138_v38 = vpop.f32.mrf.mxu0  ;;  %v5537_v7 = vor.u32 %v6292_v40, %v5534_v22  ;;  %v5726_v40 = vld [vmem:[#allocation8 + $0x628] sm:$0xf0] }
 0x4d2   :  { %v4139_v39 = vadd.f32 %v4138_v38, %v4090_v19  ;;  %v8036_v19 = vld [vmem:[#allocation46_spill] sm:$0xff]  ;;  %v5729_v13 = vor.u32 %v6340_v48, %v5726_v40  ;;  %v5918_v22 = vld [vmem:[#allocation8 + $0x7a8] sm:$0xf0] }
 0x4d3   :  { %4457 = vmatpush.bf16.msra.mxu3 %v5537_v7 }
 0x4d4   :  { %v4187_v30 = vpop.f32.mrf.mxu1  ;;  %v4045_v11 = vpop.f32.mrf.mxu2  ;;  %4506 = vmatpush.bf16.msra.mxu0 %v5729_v13 }
 0x4d5   :  { %v7656_v20 = vadd.f32 %v4187_v30, %v4139_v39  ;;  %v4046_v5 = vadd.f32 %v4045_v11, %v7601_v50 }
 0x4d7   :  { %v4094_v24 = vpop.f32.mrf.mxu3 }
 0x4d8   :  { %v4095_v31 = vadd.f32 %v4094_v24, %v4046_v5  ;;  %v6388_v5 = vld [vmem:[#allocation8 + $0x794] sm:$0xf] }
 0x4d9   :  { %v4141_v25 = vpop.f32.mrf.mxu0  ;;  %4243 = vmatmul.bf16.gmra.mxu2 %v8036_v19  ;;  %v5921_v7 = vor.u32 %v6388_v5, %v5918_v22  ;;  %v8039_v19 = vld [vmem:[#allocation62_spill] sm:$0xff] }
 0x4da   :  { %v4142_v6 = vadd.f32 %v4141_v25, %v4093_v15 }
 0x4db   :  { %4555 = vmatpush.bf16.msra.mxu1 %v5921_v7 }
 0x4dc   :  { %v4190_v9 = vpop.f32.mrf.mxu1  ;;  %4292 = vmatmul.bf16.gmra.mxu3 %v8037_v53  ;;  %v4048_v51 = vpop.f32.mrf.mxu2  ;;  %4336 = vmatmul.bf16.gmra.mxu0 %v8027_v2 }
 0x4dd   :  { %v7661_v38 = vadd.f32 %v4190_v9, %v4142_v6  ;;  %v4049_v39 = vadd.f32 %v4048_v51, %v7601_v50 }
 0x4df   :  { %v4097_v30 = vpop.f32.mrf.mxu3  ;;  %4385 = vmatmul.bf16.gmra.mxu1 %v8028_v32 }
 0x4e0   :  { %v4098_v11 = vadd.f32 %v4097_v30, %v4049_v39  ;;  %v8038_v39 = vld [vmem:[#allocation61_spill] sm:$0xff] }
 0x4e1   :  { %v4143_v58 = vpop.f32.mrf.mxu0 }
 0x4e2   :  { %v4144_v24 = vadd.f32 %v4143_v58, %v4095_v31 }
 0x4e4   :  { %v4192_v15 = vpop.f32.mrf.mxu1  ;;  %v4050_v6 = vpop.f32.mrf.mxu2 }
 0x4e5   :  { %v7666_v25 = vadd.f32 %v4192_v15, %v4144_v24  ;;  %v4051_v2 = vadd.f32 %v4050_v6, %v7601_v50 }
 0x4e7   :  { %v4099_v9 = vpop.f32.mrf.mxu3 }
 0x4e8   :  { %v4100_v51 = vadd.f32 %v4099_v9, %v4051_v2  ;;  %v8040_v9 = vld [vmem:[#allocation28_spill] sm:$0xff] }
 0x4e9   :  { %v4146_v32 = vpop.f32.mrf.mxu0  ;;  %4248 = vmatmul.bf16.gmra.mxu2 %v8038_v39 }
 0x4ea   :  { %v4147_v30 = vadd.f32 %v4146_v32, %v4098_v11 }
 0x4ec   :  { %v4195_v53 = vpop.f32.mrf.mxu1  ;;  %4297 = vmatmul.bf16.gmra.mxu3 %v8039_v19  ;;  %v4053_v58 = vpop.f32.mrf.mxu2  ;;  %4341 = vmatmul.bf16.gmra.mxu0 %v8029_v57 }
 0x4ed   :  { %v7671_v31 = vadd.f32 %v4195_v53, %v4147_v30  ;;  %v4054_v48 = vadd.f32 %v4053_v58, %v7601_v50  ;;  %v8041_v30 = vld [vmem:[#allocation29_spill] sm:$0xff] }
 0x4ef   :  { %v4102_v40 = vpop.f32.mrf.mxu3  ;;  %4390 = vmatmul.bf16.gmra.mxu1 %v8030_v4 }
 0x4f0   :  { %v4103_v5 = vadd.f32 %v4102_v40, %v4054_v48 }
 0x4f1   :  { %v4148_v24 = vpop.f32.mrf.mxu0 }
 0x4f2   :  { %v4149_v15 = vadd.f32 %v4148_v24, %v4100_v51 }
 0x4f4   :  { %v4197_v13 = vpop.f32.mrf.mxu1  ;;  %v4055_v11 = vpop.f32.mrf.mxu2 }
 0x4f5   :  { %v7676_v22 = vadd.f32 %v4197_v13, %v4149_v15  ;;  %v4056_v7 = vadd.f32 %v4055_v11, %v7601_v50 }
 0x4f7   :  { %v4104_v6 = vpop.f32.mrf.mxu3 }
 0x4f8   :  { %v4105_v53 = vadd.f32 %v4104_v6, %v4056_v7  ;;  %v7690_v6 = vperm.slane %v7598_v47, 5 }
 0x4f9   :  { %v4151_v2 = vpop.f32.mrf.mxu0  ;;  %4409 = vmatmul.bf16.vlgmr.msra.gmra.mxu2 %v8040_v9 }
 0x4fa   :  { %v4152_v57 = vadd.f32 %v4151_v2, %v4103_v5 }
 0x4fc   :  { %v4200_v32 = vpop.f32.mrf.mxu1  ;;  %4458 = vmatmul.bf16.vlgmr.msra.gmra.mxu3 %v8041_v30  ;;  %v4214_v4 = vpop.f32.mrf.mxu2  ;;  %4346 = vmatmul.bf16.gmra.mxu0 %v7975_v41 }
 0x4fd   :  { %v7681_v58 = vadd.f32 %v4200_v32, %v4152_v57  ;;  %v4215_v51 = vadd.f32 %v4214_v4, %v7611_v52 }
 0x4ff   :  { %v4263_v48 = vpop.f32.mrf.mxu3  ;;  %4395 = vmatmul.bf16.gmra.mxu1 %v7976_v0 }
 0x500   :  { %v4264_v50 = vadd.f32 %v4263_v48, %v4215_v51 }
 0x501   :  { %v4153_v40 = vpop.f32.mrf.mxu0 }
 0x502   :  { %4601 = vst [vmem:[#allocation11 + $0x20] sm:$0xff] %v4264_v50  ;;  %v4154_v24 = vadd.f32 %v4153_v40, %v4105_v53 }
 0x504   :  { %v4202_v15 = vpop.f32.mrf.mxu1  ;;  %v4216_v5 = vpop.f32.mrf.mxu2 }
 0x505   :  { %v7686_v13 = vadd.f32 %v4202_v15, %v4154_v24  ;;  %v4217_v11 = vadd.f32 %v4216_v5, %v7616_v55 }
 0x507   :  { %v4265_v7 = vpop.f32.mrf.mxu3 }
 0x508   :  { %v4266_v41 = vadd.f32 %v4265_v7, %v4217_v11 }
 0x509   :  { %v4312_v52 = vpop.f32.mrf.mxu0  ;;  %4414 = vmatmul.bf16.gmra.mxu2 %v7977_v1 }
 0x50a   :  { %4607 = vst [vmem:[#allocation11 + $0x50] sm:$0xff] %v4266_v41  ;;  %v4313_v0 = vadd.f32 %v4312_v52, %v7690_v6 }
 0x50c   :  { %v4361_v2 = vpop.f32.mrf.mxu1  ;;  %4463 = vmatmul.bf16.gmra.mxu3 %v7978_v10  ;;  %v4219_v9 = vpop.f32.mrf.mxu2  ;;  %4507 = vmatmul.bf16.vlgmr.msra.gmra.mxu0 %v7028_v59 }
 0x50d   :  { %v7695_v53 = vadd.f32 %v4361_v2, %v4313_v0  ;;  %v4220_v55 = vadd.f32 %v4219_v9, %v7621_v8 }
 0x50f   :  { %v4268_v57 = vpop.f32.mrf.mxu3  ;;  %4556 = vmatmul.bf16.vlgmr.msra.gmra.mxu1 %v7996_v46 }
 0x510   :  { %v4269_v47 = vadd.f32 %v4268_v57, %v4220_v55 }
 0x511   :  { %v4314_v32 = vpop.f32.mrf.mxu0 }
 0x512   :  { %4613 = vst [vmem:[#allocation11 + $0x80] sm:$0xff] %v4269_v47  ;;  %v4315_v1 = vadd.f32 %v4314_v32, %v7690_v6 }
 0x514   :  { %v4363_v30 = vpop.f32.mrf.mxu1  ;;  %v4221_v51 = vpop.f32.mrf.mxu2 }
 0x515   :  { %v7701_v4 = vadd.f32 %v4363_v30, %v4315_v1  ;;  %v4222_v10 = vadd.f32 %v4221_v51, %v7626_v54 }
 0x517   :  { %v4270_v48 = vpop.f32.mrf.mxu3 }
 0x518   :  { %v4271_v50 = vadd.f32 %v4270_v48, %v4222_v10 }
 0x519   :  { %v4317_v59 = vpop.f32.mrf.mxu0  ;;  %4419 = vmatmul.bf16.gmra.mxu2 %v7979_v29 }
 0x51a   :  { %4619 = vst [vmem:[#allocation11 + $0xb0] sm:$0xff] %v4271_v50  ;;  %v4318_v8 = vadd.f32 %v4317_v59, %v7690_v6 }
 0x51c   :  { %v4366_v46 = vpop.f32.mrf.mxu1  ;;  %4468 = vmatmul.bf16.gmra.mxu3 %v7980_v26  ;;  %v4224_v24 = vpop.f32.mrf.mxu2  ;;  %4512 = vmatmul.bf16.gmra.mxu0 %v7997_v43 }
 0x51d   :  { %v7707_v40 = vadd.f32 %v4366_v46, %v4318_v8  ;;  %v4225_v15 = vadd.f32 %v4224_v24, %v7631_v42 }
 0x51f   :  { %v4273_v5 = vpop.f32.mrf.mxu3  ;;  %4561 = vmatmul.bf16.gmra.mxu1 %v7998_v34 }
 0x520   :  { %v4274_v54 = vadd.f32 %v4273_v5, %v4225_v15 }
 0x521   :  { %v4319_v11 = vpop.f32.mrf.mxu0 }
 0x522   :  { %4625 = vst [vmem:[#allocation11 + $0xe0] sm:$0xff] %v4274_v54  ;;  %v4320_v29 = vadd.f32 %v4319_v11, %v7690_v6 }
 0x524   :  { %v4368_v7 = vpop.f32.mrf.mxu1  ;;  %v4226_v52 = vpop.f32.mrf.mxu2 }
 0x525   :  { %v7713_v41 = vadd.f32 %v4368_v7, %v4320_v29  ;;  %v4227_v26 = vadd.f32 %v4226_v52, %v7636_v63 }
 0x527   :  { %v4275_v0 = vpop.f32.mrf.mxu3 }
 0x528   :  { %v4276_v2 = vadd.f32 %v4275_v0, %v4227_v26 }
 0x529   :  { %v4322_v43 = vpop.f32.mrf.mxu0  ;;  %4424 = vmatmul.bf16.gmra.mxu2 %v7981_v45 }
 0x52a   :  { %4631 = vst [vmem:[#allocation11 + $0x110] sm:$0xff] %v4276_v2  ;;  %v4323_v42 = vadd.f32 %v4322_v43, %v7690_v6 }
 0x52c   :  { %v4371_v34 = vpop.f32.mrf.mxu1  ;;  %4473 = vmatmul.bf16.gmra.mxu3 %v7982_v62  ;;  %v4229_v55 = vpop.f32.mrf.mxu2  ;;  %4517 = vmatmul.bf16.gmra.mxu0 %v8000_v17 }
 0x52d   :  { %v7719_v9 = vadd.f32 %v4371_v34, %v4323_v42  ;;  %v4230_v57 = vadd.f32 %v4229_v55, %v7641_v37 }
 0x52f   :  { %v4278_v47 = vpop.f32.mrf.mxu3  ;;  %4566 = vmatmul.bf16.gmra.mxu1 %v8001_v18 }
 0x530   :  { %v4279_v63 = vadd.f32 %v4278_v47, %v4230_v57 }
 0x531   :  { %v4324_v32 = vpop.f32.mrf.mxu0 }
 0x532   :  { %4637 = vst [vmem:[#allocation11 + $0x140] sm:$0xff] %v4279_v63  ;;  %v4325_v45 = vadd.f32 %v4324_v32, %v7690_v6 }
 0x534   :  { %v4373_v1 = vpop.f32.mrf.mxu1  ;;  %v4231_v51 = vpop.f32.mrf.mxu2 }
 0x535   :  { %v7725_v30 = vadd.f32 %v4373_v1, %v4325_v45  ;;  %v4232_v62 = vadd.f32 %v4231_v51, %v7646_v33 }
 0x537   :  { %v4280_v10 = vpop.f32.mrf.mxu3 }
 0x538   :  { %v4281_v48 = vadd.f32 %v4280_v10, %v4232_v62 }
 0x539   :  { %v4327_v17 = vpop.f32.mrf.mxu0  ;;  %4429 = vmatmul.bf16.gmra.mxu2 %v7983_v49 }
 0x53a   :  { %4643 = vst [vmem:[#allocation11 + $0x170] sm:$0xff] %v4281_v48  ;;  %v4328_v37 = vadd.f32 %v4327_v17, %v7690_v6 }
 0x53c   :  { %v4376_v18 = vpop.f32.mrf.mxu1  ;;  %4478 = vmatmul.bf16.gmra.mxu3 %v7984_v12  ;;  %v4234_v59 = vpop.f32.mrf.mxu2  ;;  %4522 = vmatmul.bf16.gmra.mxu0 %v8002_v61 }
 0x53d   :  { %v7731_v50 = vadd.f32 %v4376_v18, %v4328_v37  ;;  %v4235_v8 = vadd.f32 %v4234_v59, %v7651_v27  ;;  %v8042_v59 = vld [vmem:[#allocation46_spill] sm:$0xff] }
 0x53f   :  { %v4283_v46 = vpop.f32.mrf.mxu3  ;;  %4571 = vmatmul.bf16.gmra.mxu1 %v8031_v14 }
 0x540   :  { %v4284_v33 = vadd.f32 %v4283_v46, %v4235_v8 }
 0x541   :  { %v4329_v24 = vpop.f32.mrf.mxu0 }
 0x542   :  { %4649 = vst [vmem:[#allocation11 + $0x1a0] sm:$0xff] %v4284_v33  ;;  %v4330_v49 = vadd.f32 %v4329_v24, %v7690_v6 }
 0x544   :  { %v4378_v15 = vpop.f32.mrf.mxu1  ;;  %v4236_v54 = vpop.f32.mrf.mxu2 }
 0x545   :  { %v7737_v5 = vadd.f32 %v4378_v15, %v4330_v49  ;;  %v4237_v12 = vadd.f32 %v4236_v54, %v7656_v20 }
 0x547   :  { %v4285_v11 = vpop.f32.mrf.mxu3 }
 0x548   :  { %v4286_v29 = vadd.f32 %v4285_v11, %v4237_v12 }
 0x549   :  { %v4332_v61 = vpop.f32.mrf.mxu0  ;;  %4434 = vmatmul.bf16.gmra.mxu2 %v7985_v21 }
 0x54a   :  { %4655 = vst [vmem:[#allocation11 + $0x1d0] sm:$0xff] %v4286_v29  ;;  %v4333_v27 = vadd.f32 %v4332_v61, %v7690_v6 }
 0x54c   :  { %v4381_v14 = vpop.f32.mrf.mxu1  ;;  %4483 = vmatmul.bf16.gmra.mxu3 %v7986_v28  ;;  %v4239_v52 = vpop.f32.mrf.mxu2  ;;  %4527 = vmatmul.bf16.gmra.mxu0 %v8032_v60 }
 0x54d   :  { %v7743_v7 = vadd.f32 %v4381_v14, %v4333_v27  ;;  %v4240_v26 = vadd.f32 %v4239_v52, %v7661_v38 }
 0x54f   :  { %v4288_v0 = vpop.f32.mrf.mxu3  ;;  %4576 = vmatmul.bf16.gmra.mxu1 %v8033_v44 }
 0x550   :  { %v4289_v20 = vadd.f32 %v4288_v0, %v4240_v26 }
 0x551   :  { %v4334_v2 = vpop.f32.mrf.mxu0 }
 0x552   :  { %4661 = vst [vmem:[#allocation11 + $0x200] sm:$0xff] %v4289_v20  ;;  %v4335_v21 = vadd.f32 %v4334_v2, %v7690_v6 }
 0x554   :  { %v4383_v43 = vpop.f32.mrf.mxu1  ;;  %v4241_v34 = vpop.f32.mrf.mxu2 }
 0x555   :  { %v7749_v42 = vadd.f32 %v4383_v43, %v4335_v21  ;;  %v4242_v28 = vadd.f32 %v4241_v34, %v7666_v25 }
 0x557   :  { %v4290_v55 = vpop.f32.mrf.mxu3 }
 0x558   :  { %v4291_v57 = vadd.f32 %v4290_v55, %v4242_v28 }
 0x559   :  { %v4337_v60 = vpop.f32.mrf.mxu0  ;;  %4439 = vmatmul.bf16.gmra.mxu2 %v7987_v35 }
 0x55a   :  { %4667 = vst [vmem:[#allocation11 + $0x230] sm:$0xff] %v4291_v57  ;;  %v4338_v38 = vadd.f32 %v4337_v60, %v7690_v6 }
 0x55c   :  { %v4386_v44 = vpop.f32.mrf.mxu1  ;;  %4488 = vmatmul.bf16.gmra.mxu3 %v7988_v56  ;;  %v4244_v63 = vpop.f32.mrf.mxu2  ;;  %4532 = vmatmul.bf16.gmra.mxu0 %v8034_v23 }
 0x55d   :  { %v7755_v47 = vadd.f32 %v4386_v44, %v4338_v38  ;;  %v4245_v32 = vadd.f32 %v4244_v63, %v7671_v31 }
 0x55f   :  { %v4293_v45 = vpop.f32.mrf.mxu3  ;;  %4581 = vmatmul.bf16.gmra.mxu1 %v8035_v36 }
 0x560   :  { %v4294_v25 = vadd.f32 %v4293_v45, %v4245_v32 }
 0x561   :  { %v4339_v1 = vpop.f32.mrf.mxu0 }
 0x562   :  { %4673 = vst [vmem:[#allocation11 + $0x260] sm:$0xff] %v4294_v25  ;;  %v4340_v35 = vadd.f32 %v4339_v1, %v7690_v6 }
 0x564   :  { %v4388_v51 = vpop.f32.mrf.mxu1  ;;  %v4246_v10 = vpop.f32.mrf.mxu2 }
 0x565   :  { %v7761_v62 = vadd.f32 %v4388_v51, %v4340_v35  ;;  %v4247_v56 = vadd.f32 %v4246_v10, %v7676_v22  ;;  %v8043_v22 = vld [vmem:[#allocation60_spill] sm:$0xff] }
 0x567   :  { %v4295_v48 = vpop.f32.mrf.mxu3 }
 0x568   :  { %v4296_v17 = vadd.f32 %v4295_v48, %v4247_v56 }
 0x569   :  { %v4342_v23 = vpop.f32.mrf.mxu0  ;;  %4444 = vmatmul.bf16.gmra.mxu2 %v8012_v16 }
 0x56a   :  { %4679 = vst [vmem:[#allocation11 + $0x290] sm:$0xff] %v4296_v17  ;;  %v4343_v31 = vadd.f32 %v4342_v23, %v7690_v6 }
 0x56c   :  { %v4391_v36 = vpop.f32.mrf.mxu1  ;;  %4493 = vmatmul.bf16.gmra.mxu3 %v8013_v3  ;;  %v4249_v18 = vpop.f32.mrf.mxu2  ;;  %4537 = vmatmul.bf16.gmra.mxu0 %v8042_v59 }
 0x56d   :  { %v7767_v37 = vadd.f32 %v4391_v36, %v4343_v31  ;;  %v4250_v8 = vadd.f32 %v4249_v18, %v7681_v58 }
 0x56f   :  { %v4298_v46 = vpop.f32.mrf.mxu3  ;;  %4586 = vmatmul.bf16.gmra.mxu1 %v8043_v22 }
 0x570   :  { %v4299_v33 = vadd.f32 %v4298_v46, %v4250_v8 }
 0x571   :  { %v4344_v24 = vpop.f32.mrf.mxu0 }
 0x572   :  { %4685 = vst [vmem:[#allocation11 + $0x2c0] sm:$0xff] %v4299_v33  ;;  %v4345_v16 = vadd.f32 %v4344_v24, %v7690_v6 }
 0x574   :  { %v4393_v49 = vpop.f32.mrf.mxu1  ;;  %v4251_v54 = vpop.f32.mrf.mxu2 }
 0x575   :  { %v7773_v15 = vadd.f32 %v4393_v49, %v4345_v16  ;;  %v4252_v3 = vadd.f32 %v4251_v54, %v7686_v13 }
 0x577   :  { %v4300_v12 = vpop.f32.mrf.mxu3 }
 0x578   :  { %v4301_v11 = vadd.f32 %v4300_v12, %v4252_v3 }
 0x579   :  { %v4347_v29 = vpop.f32.mrf.mxu0 }
 0x57a   :  { %4691 = vst [vmem:[#allocation11 + $0x2f0] sm:$0xff] %v4301_v11  ;;  %v4348_v58 = vadd.f32 %v4347_v29, %v7690_v6 }
 0x57c   :  { %v4396_v61 = vpop.f32.mrf.mxu1  ;;  %v4410_v14 = vpop.f32.mrf.mxu2  ;;  %4542 = vmatmul.bf16.gmra.mxu0 %v8038_v39 }
 0x57d   :  { %v7777_v27 = vadd.f32 %v4396_v61, %v4348_v58  ;;  %v4411_v13 = vadd.f32 %v4410_v14, %v7695_v53 }
 0x57f   :  { %v4459_v52 = vpop.f32.mrf.mxu3  ;;  %4591 = vmatmul.bf16.gmra.mxu1 %v8039_v19 }
 0x580   :  { %v4460_v34 = vadd.f32 %v4459_v52, %v4411_v13 }
 0x581   :  { %v4349_v26 = vpop.f32.mrf.mxu0 }
 0x582   :  { %v4350_v0 = vadd.f32 %v4349_v26, %v7690_v6 }
 0x584   :  { %v4398_v20 = vpop.f32.mrf.mxu1  ;;  %v4412_v21 = vpop.f32.mrf.mxu2 }
 0x585   :  { %v7783_v2 = vadd.f32 %v4398_v20, %v4350_v0  ;;  %v4413_v60 = vadd.f32 %v4412_v21, %v7701_v4 }
 0x587   :  { %v4461_v43 = vpop.f32.mrf.mxu3 }
 0x588   :  { %v4462_v19 = vadd.f32 %v4461_v43, %v4413_v60 }
 0x589   :  { %v4508_v28 = vpop.f32.mrf.mxu0 }
 0x58a   :  { %v4509_v55 = vadd.f32 %v4508_v28, %v4460_v34 }
 0x58c   :  { %v4557_v57 = vpop.f32.mrf.mxu1  ;;  %v4415_v38 = vpop.f32.mrf.mxu2 }
 0x58d   :  { %v4558_v39 = vadd.f32 %v4557_v57, %v4509_v55  ;;  %v4416_v53 = vadd.f32 %v4415_v38, %v7707_v40 }
 0x58f   :  { %v4464_v44 = vpop.f32.mrf.mxu3  ;;  %4602 = vst [vmem:[#allocation11 + $0x28] sm:$0xff] %v4558_v39 }
 0x590   :  { %v4465_v35 = vadd.f32 %v4464_v44, %v4416_v53 }
 0x591   :  { %v4510_v63 = vpop.f32.mrf.mxu0 }
 0x592   :  { %v4511_v6 = vadd.f32 %v4510_v63, %v4462_v19 }
 0x594   :  { %v4559_v32 = vpop.f32.mrf.mxu1  ;;  %v4417_v25 = vpop.f32.mrf.mxu2 }
 0x595   :  { %v4560_v45 = vadd.f32 %v4559_v32, %v4511_v6  ;;  %v4418_v4 = vadd.f32 %v4417_v25, %v7713_v41 }
 0x597   :  { %v4466_v1 = vpop.f32.mrf.mxu3  ;;  %4608 = vst [vmem:[#allocation11 + $0x58] sm:$0xff] %v4560_v45 }
 0x598   :  { %v4467_v31 = vadd.f32 %v4466_v1, %v4418_v4 }
 0x599   :  { %v4513_v51 = vpop.f32.mrf.mxu0 }
 0x59a   :  { %v4514_v10 = vadd.f32 %v4513_v51, %v4465_v35 }
 0x59c   :  { %v4562_v56 = vpop.f32.mrf.mxu1  ;;  %v4420_v17 = vpop.f32.mrf.mxu2 }
 0x59d   :  { %v4563_v48 = vadd.f32 %v4562_v56, %v4514_v10  ;;  %v4421_v40 = vadd.f32 %v4420_v17, %v7719_v9 }
 0x59f   :  { %v4469_v23 = vpop.f32.mrf.mxu3  ;;  %4614 = vst [vmem:[#allocation11 + $0x88] sm:$0xff] %v4563_v48 }
 0x5a0   :  { %v4470_v33 = vadd.f32 %v4469_v23, %v4421_v40 }
 0x5a1   :  { %v4515_v36 = vpop.f32.mrf.mxu0 }
 0x5a2   :  { %v4516_v18 = vadd.f32 %v4515_v36, %v4467_v31 }
 0x5a4   :  { %v4564_v59 = vpop.f32.mrf.mxu1  ;;  %v4422_v46 = vpop.f32.mrf.mxu2 }
 0x5a5   :  { %v4565_v8 = vadd.f32 %v4564_v59, %v4516_v18  ;;  %v4423_v41 = vadd.f32 %v4422_v46, %v7725_v30 }
 0x5a7   :  { %v4471_v22 = vpop.f32.mrf.mxu3  ;;  %4620 = vst [vmem:[#allocation11 + $0xb8] sm:$0xff] %v4565_v8 }
 0x5a8   :  { %v4472_v11 = vadd.f32 %v4471_v22, %v4423_v41 }
 0x5a9   :  { %v4518_v24 = vpop.f32.mrf.mxu0 }
 0x5aa   :  { %v4519_v16 = vadd.f32 %v4518_v24, %v4470_v33 }
 0x5ac   :  { %v4567_v49 = vpop.f32.mrf.mxu1  ;;  %v4425_v3 = vpop.f32.mrf.mxu2 }
 0x5ad   :  { %v4568_v54 = vadd.f32 %v4567_v49, %v4519_v16  ;;  %v4426_v9 = vadd.f32 %v4425_v3, %v7731_v50 }
 0x5af   :  { %v4474_v12 = vpop.f32.mrf.mxu3  ;;  %4626 = vst [vmem:[#allocation11 + $0xe8] sm:$0xff] %v4568_v54 }
 0x5b0   :  { %v4475_v0 = vadd.f32 %v4474_v12, %v4426_v9 }
 0x5b1   :  { %v4520_v29 = vpop.f32.mrf.mxu0 }
 0x5b2   :  { %v4521_v58 = vadd.f32 %v4520_v29, %v4472_v11 }
 0x5b4   :  { %v4569_v61 = vpop.f32.mrf.mxu1  ;;  %v4427_v52 = vpop.f32.mrf.mxu2 }
 0x5b5   :  { %v4570_v14 = vadd.f32 %v4569_v61, %v4521_v58  ;;  %v4428_v30 = vadd.f32 %v4427_v52, %v7737_v5 }
 0x5b7   :  { %v4476_v26 = vpop.f32.mrf.mxu3  ;;  %4632 = vst [vmem:[#allocation11 + $0x118] sm:$0xff] %v4570_v14 }
 0x5b8   :  { %v4477_v55 = vadd.f32 %v4476_v26, %v4428_v30 }
 0x5b9   :  { %v4523_v20 = vpop.f32.mrf.mxu0 }
 0x5ba   :  { %v4524_v13 = vadd.f32 %v4523_v20, %v4475_v0 }
 0x5bc   :  { %v4572_v21 = vpop.f32.mrf.mxu1  ;;  %v4430_v34 = vpop.f32.mrf.mxu2 }
 0x5bd   :  { %v4573_v43 = vadd.f32 %v4572_v21, %v4524_v13  ;;  %v4431_v50 = vadd.f32 %v4430_v34, %v7743_v7 }
 0x5bf   :  { %v4479_v28 = vpop.f32.mrf.mxu3  ;;  %4638 = vst [vmem:[#allocation11 + $0x148] sm:$0xff] %v4573_v43 }
 0x5c0   :  { %v4480_v63 = vadd.f32 %v4479_v28, %v4431_v50 }
 0x5c1   :  { %v4525_v57 = vpop.f32.mrf.mxu0 }
 0x5c2   :  { %v4526_v60 = vadd.f32 %v4525_v57, %v4477_v55 }
 0x5c4   :  { %v4574_v39 = vpop.f32.mrf.mxu1  ;;  %v4432_v44 = vpop.f32.mrf.mxu2 }
 0x5c5   :  { %v4575_v38 = vadd.f32 %v4574_v39, %v4526_v60  ;;  %v4433_v5 = vadd.f32 %v4432_v44, %v7749_v42 }
 0x5c7   :  { %v4481_v19 = vpop.f32.mrf.mxu3  ;;  %4644 = vst [vmem:[#allocation11 + $0x178] sm:$0xff] %v4575_v38 }
 0x5c8   :  { %v4482_v35 = vadd.f32 %v4481_v19, %v4433_v5 }
 0x5c9   :  { %v4528_v6 = vpop.f32.mrf.mxu0 }
 0x5ca   :  { %v4529_v32 = vadd.f32 %v4528_v6, %v4480_v63 }
 0x5cc   :  { %v4577_v53 = vpop.f32.mrf.mxu1  ;;  %v4435_v25 = vpop.f32.mrf.mxu2 }
 0x5cd   :  { %v4578_v45 = vadd.f32 %v4577_v53, %v4529_v32  ;;  %v4436_v7 = vadd.f32 %v4435_v25, %v7755_v47 }
 0x5cf   :  { %v4484_v1 = vpop.f32.mrf.mxu3  ;;  %4650 = vst [vmem:[#allocation11 + $0x1a8] sm:$0xff] %v4578_v45 }
 0x5d0   :  { %v4485_v23 = vadd.f32 %v4484_v1, %v4436_v7 }
 0x5d1   :  { %v4530_v51 = vpop.f32.mrf.mxu0 }
 0x5d2   :  { %v4531_v10 = vadd.f32 %v4530_v51, %v4482_v35 }
 0x5d4   :  { %v4579_v56 = vpop.f32.mrf.mxu1  ;;  %v4437_v48 = vpop.f32.mrf.mxu2 }
 0x5d5   :  { %v4580_v4 = vadd.f32 %v4579_v56, %v4531_v10  ;;  %v4438_v42 = vadd.f32 %v4437_v48, %v7761_v62 }
 0x5d7   :  { %4656 = vst [vmem:[#allocation11 + $0x1d8] sm:$0xff] %v4580_v4  ;;  %v4486_v17 = vpop.f32.mrf.mxu3 }
 0x5d8   :  { %v4487_v8 = vadd.f32 %v4486_v17, %v4438_v42 }
 0x5d9   :  { %v4533_v31 = vpop.f32.mrf.mxu0 }
 0x5da   :  { %v4534_v36 = vadd.f32 %v4533_v31, %v4485_v23 }
 0x5dc   :  { %v4582_v18 = vpop.f32.mrf.mxu1  ;;  %v4440_v40 = vpop.f32.mrf.mxu2 }
 0x5dd   :  { %v4583_v59 = vadd.f32 %v4582_v18, %v4534_v36  ;;  %v4441_v47 = vadd.f32 %v4440_v40, %v7767_v37 }
 0x5df   :  { %4662 = vst [vmem:[#allocation11 + $0x208] sm:$0xff] %v4583_v59  ;;  %v4489_v46 = vpop.f32.mrf.mxu3 }
 0x5e0   :  { %v4490_v41 = vadd.f32 %v4489_v46, %v4441_v47 }
 0x5e1   :  { %v4535_v22 = vpop.f32.mrf.mxu0 }
 0x5e2   :  { %v4536_v33 = vadd.f32 %v4535_v22, %v4487_v8 }
 0x5e4   :  { %v4584_v24 = vpop.f32.mrf.mxu1  ;;  %v4442_v49 = vpop.f32.mrf.mxu2 }
 0x5e5   :  { %v4585_v16 = vadd.f32 %v4584_v24, %v4536_v33  ;;  %v4443_v62 = vadd.f32 %v4442_v49, %v7773_v15 }
 0x5e7   :  { %4668 = vst [vmem:[#allocation11 + $0x238] sm:$0xff] %v4585_v16  ;;  %v4491_v11 = vpop.f32.mrf.mxu3 }
 0x5e8   :  { %v4492_v61 = vadd.f32 %v4491_v11, %v4443_v62 }
 0x5e9   :  { %v4538_v54 = vpop.f32.mrf.mxu0 }
 0x5ea   :  { %v4539_v3 = vadd.f32 %v4538_v54, %v4490_v41 }
 0x5ec   :  { %v4587_v12 = vpop.f32.mrf.mxu1  ;;  %v4445_v58 = vpop.f32.mrf.mxu2 }
 0x5ed   :  { %v4588_v29 = vadd.f32 %v4587_v12, %v4539_v3  ;;  %v4446_v26 = vadd.f32 %v4445_v58, %v7777_v27 }
 0x5ef   :  { %4674 = vst [vmem:[#allocation11 + $0x268] sm:$0xff] %v4588_v29  ;;  %v4494_v0 = vpop.f32.mrf.mxu3 }
 0x5f0   :  { %v4495_v20 = vadd.f32 %v4494_v0, %v4446_v26 }
 0x5f1   :  { %v4540_v9 = vpop.f32.mrf.mxu0 }
 0x5f2   :  { %v4541_v14 = vadd.f32 %v4540_v9, %v4492_v61 }
 0x5f4   :  { %v4589_v52 = vpop.f32.mrf.mxu1  ;;  %v4447_v13 = vpop.f32.mrf.mxu2 }
 0x5f5   :  { %v4590_v37 = vadd.f32 %v4589_v52, %v4541_v14  ;;  %v4448_v34 = vadd.f32 %v4447_v13, %v7783_v2 }
 0x5f7   :  { %4680 = vst [vmem:[#allocation11 + $0x298] sm:$0xff] %v4590_v37  ;;  %v4496_v28 = vpop.f32.mrf.mxu3 }
 0x5f8   :  { %v4497_v55 = vadd.f32 %v4496_v28, %v4448_v34 }
 0x5f9   :  { %v4543_v21 = vpop.f32.mrf.mxu0 }
 0x5fa   :  { %v4544_v30 = vadd.f32 %v4543_v21, %v4495_v20 }
 0x5fc   :  { %v4592_v43 = vpop.f32.mrf.mxu1 }
 0x5fd   :  { %v4593_v15 = vadd.f32 %v4592_v43, %v4544_v30 }
 0x5ff   :  { %4686 = vst [vmem:[#allocation11 + $0x2c8] sm:$0xff] %v4593_v15 }
 0x601   :  { %v4545_v27 = vpop.f32.mrf.mxu0 }
 0x602   :  { %v4546_v57 = vadd.f32 %v4545_v27, %v4497_v55 }
 0x604   :  { %v4594_v60 = vpop.f32.mrf.mxu1 }
 0x605   :  { %v4595_v39 = vadd.f32 %v4594_v60, %v4546_v57 }
 0x607   :  { %4692 = vst [vmem:[#allocation11 + $0x2f8] sm:$0xff] %v4595_v39 }
 0x608   :  { %4705 = dma.vmem_to_hbm [thread:$0]  %s4698_s4, 12288, %s4700_s21, [#allocation4], %s6627_s22, %s6627_s22, %s6628_s23  }
 0x609   :  { %6615 = dma.done.wait [#allocation4], 12288  }
 0x60a   :  { %6616 = vsyncadd [#allocation4], 4294955008 }
 0x60b   :  { %4710 = vsyncpa [#allocation3], 1 }
 0x60c   :  { %4711 = vsyncpa [#allocation6], 1 }
 0x60d   :  { %4712 = vsyncpa [#allocation9], 1 }
 0x60e   :  { %4713 = vsyncpa [#allocation4], 1 }

</bundles_post_ra>
